<compile_context>
chip_gen: v7x
topology: tpu7x:2x2x1
jax: 0.10.0
libtpu: 0.0.40
codegen_flags: <defaults>
</compile_context>

<pallas_src>
import functools
import math

import jax
import jax.numpy as jnp
from jax.experimental import pallas as pl
from jax.experimental.pallas import tpu as pltpu


def _pick_compute_dtype():
    """bf16 matmul operands on bf16-native MXUs (v6e / v7x), f32 elsewhere."""
    try:
        kind = jax.devices()[0].device_kind.lower()
    except Exception:
        return jnp.float32
    if any(tag in kind for tag in ("v6", "v7", "7x")):
        return jnp.bfloat16
    return jnp.float32


# ----------------------------------------------------------------------------
# Fused kernel: per-scale (pad + im2col + conv + ReLU + masked avg-pool),
# feature concat with text, full MLP (ReLU layers + tanh head).
# ----------------------------------------------------------------------------
def _fused_kernel(*refs, scales, mlp, conv_out, tb):
    # refs layout:
    #   [x_0..x_{S-1}, mask_0..mask_{S-1}, text, params, out,
    #    xpad_0, col_0, ..., xpad_{S-1}, col_{S-1}, feat]
    n_s = len(scales)
    x_refs = refs[:n_s]                 # (tb, C, H*W) per scale
    pm_refs = refs[n_s:2 * n_s]         # (1, M) pool weights per scale
    text_ref = refs[2 * n_s]            # (1, T, tb)
    p_ref = refs[2 * n_s + 1]           # (R, PW) packed f32 params
    out_ref = refs[2 * n_s + 2]         # (1, 2d, tb)
    scratch = refs[2 * n_s + 3:]
    feat_ref = scratch[-1]              # (total_in, tb) f32 MLP input

    cdt = x_refs[0].dtype               # matmul operand dtype (bf16 on v6e/v7x)

    for s, (H, W, C, w_off) in enumerate(scales):
        Wp = W + 2
        M = H * Wp - 2                  # rows covering every needed shift
        K = 9 * C
        xpad_ref = scratch[2 * s]       # (C, (H+2)*Wp) f32 zero-padded map
        col_ref = scratch[2 * s + 1]    # (K, M)        f32 im2col tile
        x_ref = x_refs[s]
        pm = pm_refs[s][...]            # (1, M): 1/(H*W) on valid cols else 0

        w_s = p_ref[w_off:w_off + conv_out, 0:K].astype(cdt)     # (32, 9C)
        b_s = p_ref[w_off:w_off + conv_out, K:K + 1]             # (32, 1) f32

        # Zero once per grid step: the interior is fully overwritten for every
        # batch row below; the 1-pixel border must stay 0 ("same" padding).
        xpad_ref[...] = jnp.zeros_like(xpad_ref)

        for bi in range(tb):
            # ---- in-kernel zero padding (no host-side jnp.pad) -------------
            for h in range(H):
                dst = (h + 1) * Wp + 1
                xpad_ref[:, dst:dst + W] = (
                    x_ref[bi, :, h * W:(h + 1) * W].astype(jnp.float32))
            # ---- im2col: 9 contiguous shifted copies -> (9C, M) ------------
            for ky in range(3):
                for kx in range(3):
                    t = ky * 3 + kx
                    off = ky * Wp + kx
                    col_ref[t * C:(t + 1) * C, :] = xpad_ref[:, off:off + M]
            # ---- ONE MXU matmul per scale: (32, 9C) x (9C, M) --------------
            y = jnp.dot(w_s, col_ref[...].astype(cdt),
                        preferred_element_type=jnp.float32)
            y = jnp.maximum(y + b_s, 0.0)                        # bias + ReLU
            # ---- masked global average pool (mask precomputed) -------------
            pooled = jnp.sum(y * pm, axis=1, keepdims=True)      # (32, 1)
            feat_ref[s * conv_out:(s + 1) * conv_out, bi:bi + 1] = pooled

    # text features, already feature-major (T, tb)
    t_dim = text_ref.shape[1]
    base = n_s * conv_out
    feat_ref[base:base + t_dim, :] = text_ref[0]

    # ---- batched MLP: one (dout, din) x (din, tb) matmul per layer ---------
    h = feat_ref[...]
    last = len(mlp) - 1
    for i, (off, din, dout) in enumerate(mlp):
        w = p_ref[off:off + dout, 0:din].astype(cdt)
        b = p_ref[off:off + dout, din:din + 1]
        z = jnp.dot(w, h.astype(cdt), preferred_element_type=jnp.float32) + b
        h = jnp.tanh(z) if i == last else jnp.maximum(z, 0.0)
    out_ref[0] = h                                               # (2d, tb)


def _linear_init(key, fan_in, fan_out):
    kw, kb = jax.random.split(key)
    bound = 1.0 / math.sqrt(fan_in)
    w = jax.random.uniform(kw, (fan_in, fan_out), jnp.float32, -bound, bound)
    b = jax.random.uniform(kb, (fan_out,), jnp.float32, -bound, bound)
    return w, b


# ----------------------------------------------------------------------------
# Module: parameter construction + forward
# ----------------------------------------------------------------------------
class ConvFlowCombinerPallas:
    CONV_OUT = 32

    def __init__(self, image_feature_shapes, text_latent_dim,
                 combined_latent_dim, num_flow_layers=3, key=None,
                 compute_dtype=None):
        if key is None:
            key = jax.random.PRNGKey(0)
        self.compute_dtype = (_pick_compute_dtype() if compute_dtype is None
                              else compute_dtype)
        self.image_feature_shapes = [tuple(s) for s in image_feature_shapes]
        n_s = len(self.image_feature_shapes)
        self.total_conv_features = self.CONV_OUT * n_s
        self.text_latent_dim = int(text_latent_dim)
        self.total_in = self.total_conv_features + self.text_latent_dim
        d = int(combined_latent_dim)
        self.out_dim = 2 * d

        n_keys = n_s + 1 + (num_flow_layers - 1) + 1
        keys = list(jax.random.split(key, n_keys))

        # Conv2d(C_in, 32, kernel_size=3, padding=1) params, stored HWIO.
        self.conv_params = []
        for (c_in, _, _) in self.image_feature_shapes:
            kw, kb = jax.random.split(keys.pop(0))
            bound = 1.0 / math.sqrt(c_in * 9)
            w = jax.random.uniform(kw, (3, 3, c_in, self.CONV_OUT),
                                   jnp.float32, -bound, bound)
            b = jax.random.uniform(kb, (self.CONV_OUT,),
                                   jnp.float32, -bound, bound)
            self.conv_params.append((w, b))

        # feature_combiner + flow layers + final layer, stored (din, dout).
        self.mlp_layers = [_linear_init(keys.pop(0), self.total_in, d)]
        for _ in range(num_flow_layers - 1):
            self.mlp_layers.append(_linear_init(keys.pop(0), d, d))
        self.mlp_layers.append(_linear_init(keys.pop(0), d, 2 * d))

        # ---- pack every parameter into one (R, PW) f32 buffer ---------------
        #  conv block s: rows [off,off+32), cols [0,9C)=weights (out-major,
        #                tap-major, in-channel minor), col 9C = bias
        #  mlp  block l: rows [off,off+dout), cols [0,din)=W^T, col din = bias
        pw = max([9 * c + 1 for (c, _, _) in self.image_feature_shapes]
                 + [w.shape[0] + 1 for w, _ in self.mlp_layers])
        blocks, cursor = [], 0
        self.scales = []                       # (H, W, C, row_offset)
        for (c_in, H, W), (w, b) in zip(self.image_feature_shapes,
                                        self.conv_params):
            w2 = jnp.transpose(w, (3, 0, 1, 2)).reshape(self.CONV_OUT, 9 * c_in)
            blk = jnp.concatenate([w2, b.reshape(self.CONV_OUT, 1)], axis=1)
            blk = jnp.pad(blk, ((0, 0), (0, pw - blk.shape[1])))
            self.scales.append((H, W, c_in, cursor))
            blocks.append(blk)
            cursor += self.CONV_OUT
        self.mlp_meta = []
        for w, b in self.mlp_layers:
            din, dout = w.shape
            blk = jnp.concatenate([w.T, b.reshape(dout, 1)], axis=1)
            blk = jnp.pad(blk, ((0, 0), (0, pw - blk.shape[1])))
            self.mlp_meta.append((cursor, din, dout))
            blocks.append(blk)
            cursor += dout
        self.packed_params = jnp.concatenate(blocks, axis=0)     # (R, PW) f32

        # ---- static pool masks: 1/(H*W) on valid columns, 0 on the 2 junk
        #      columns per image row introduced by the flattened shift trick.
        self.pool_masks = []
        for (H, W, _, _) in self.scales:
            Wp = W + 2
            M = H * Wp - 2
            pos = jnp.arange(M, dtype=jnp.int32)
            pm = jnp.where((pos % Wp) < W, 1.0 / (H * W), 0.0)
            self.pool_masks.append(pm.reshape(1, M).astype(jnp.float32))

    def __call__(self, image_features, text_z):
        B = text_z.shape[0]
        cdt = self.compute_dtype
        # Several batch rows per grid step, but keep the grid >= 2 wide
        # (marked "parallel") so both v7x TensorCores get work.
        tb = max(1, min(8, -(-B // 2))) if B > 1 else 1
        nb = -(-B // tb)
        bp = nb * tb

        xs, in_specs = [], []
        for feat, (H, W, C, _) in zip(image_features, self.scales):
            assert feat.shape == (B, C, H, W), feat.shape
            x = feat.reshape(B, C, H * W).astype(cdt)            # NCHW, flat
            if bp != B:
                x = jnp.pad(x, ((0, bp - B), (0, 0), (0, 0)))
            xs.append(x)
            in_specs.append(pl.BlockSpec((tb, C, H * W), lambda b: (b, 0, 0)))
        for pm in self.pool_masks:
            in_specs.append(pl.BlockSpec(pm.shape, lambda b: (0, 0)))

        txt = text_z.astype(jnp.float32)
        if bp != B:
            txt = jnp.pad(txt, ((0, bp - B), (0, 0)))
        T = txt.shape[1]
        txt3 = txt.reshape(nb, tb, T).transpose(0, 2, 1)         # (nb, T, tb)
        in_specs.append(pl.BlockSpec((1, T, tb), lambda b: (b, 0, 0)))

        R, PW = self.packed_params.shape
        in_specs.append(pl.BlockSpec((R, PW), lambda b: (0, 0)))  # resident

        # TODO(synk): add a row-strip ("arbitrary") grid axis over H for very
        # large feature maps (v7x has half the VMEM of v5e/v6e); at these
        # shapes the whole padded map fits VMEM with huge margin.
        scratch = []
        for (H, W, C, _) in self.scales:
            Wp = W + 2
            scratch.append(pltpu.VMEM((C, (H + 2) * Wp), jnp.float32))
            scratch.append(pltpu.VMEM((9 * C, H * Wp - 2), jnp.float32))
        scratch.append(pltpu.VMEM((self.total_in, tb), jnp.float32))

        flops, transc = 0, bp * self.out_dim
        for (H, W, C, _) in self.scales:
            flops += 2 * bp * (H * (W + 2) - 2) * 9 * C * self.CONV_OUT
        for (_, din, dout) in self.mlp_meta:
            flops += 2 * bp * din * dout
        bytes_accessed = int(sum(int(x.size) * x.dtype.itemsize for x in xs)
                             + int(txt3.size) * 4
                             + int(self.packed_params.size) * 4
                             + sum(int(p.size) * 4 for p in self.pool_masks)
                             + bp * self.out_dim * 4)

        kern = functools.partial(_fused_kernel, scales=tuple(self.scales),
                                 mlp=tuple(self.mlp_meta),
                                 conv_out=self.CONV_OUT, tb=tb)
        out = pl.pallas_call(
            kern,
            out_shape=jax.ShapeDtypeStruct((nb, self.out_dim, tb), jnp.float32),
            grid=(nb,),
            in_specs=in_specs,
            out_specs=pl.BlockSpec((1, self.out_dim, tb), lambda b: (b, 0, 0)),
            scratch_shapes=scratch,
            compiler_params=pltpu.CompilerParams(
                dimension_semantics=("parallel",),
                vmem_limit_bytes=32 * 1024 * 1024),
            cost_estimate=pl.CostEstimate(flops=flops, transcendentals=transc,
                                          bytes_accessed=bytes_accessed),
        )(*xs, *self.pool_masks, txt3, self.packed_params)

        # (nb, 2d, tb) -> (B, 2d): trivial host-side epilogue on a tiny array.
        out = out.transpose(0, 2, 1).reshape(bp, self.out_dim)
        return out[:B]


# ----------------------------------------------------------------------------
# Pure-JAX reference (correctness check only)
# ----------------------------------------------------------------------------
def _reference_forward(model, image_features, text_z):
    outs = []
    for (w, b), feat in zip(model.conv_params, image_features):
        y = jax.lax.conv_general_dilated(
            feat, w, window_strides=(1, 1), padding="SAME",
            dimension_numbers=("NCHW", "HWIO", "NCHW"))
        y = jax.nn.relu(y + b.reshape(1, -1, 1, 1))
        outs.append(jnp.mean(y, axis=(2, 3)))
    x = jnp.concatenate(outs + [text_z], axis=1)
    for w, b in model.mlp_layers[:-1]:
        x = jax.nn.relu(x @ w + b)
    wf, bf = model.mlp_layers[-1]
    return jnp.tanh(x @ wf + bf)


if __name__ == "__main__":
    key = jax.random.PRNGKey(0)
    k_params, k_x0, k_x1, k_txt = jax.random.split(key, 4)

    # image_feature_shapes given as (C, H, W) like the PyTorch module expects.
    image_feature_shapes = [(4, 16, 16), (8, 8, 8)]
    batch, text_latent_dim, combined_latent_dim = 4, 16, 32

    model = ConvFlowCombinerPallas(image_feature_shapes, text_latent_dim,
                                   combined_latent_dim, num_flow_layers=3,
                                   key=k_params)

    # NCHW image features, exactly like the PyTorch reference.
    image_features = [
        jax.random.normal(k_x0, (batch, 4, 16, 16), jnp.float32),
        jax.random.normal(k_x1, (batch, 8, 8, 8), jnp.float32),
    ]
    text_z = jax.random.normal(k_txt, (batch, text_latent_dim), jnp.float32)

    out = jax.block_until_ready(model(image_features, text_z))
    assert out.shape == (batch, 2 * combined_latent_dim), out.shape

    ref = jax.block_until_ready(_reference_forward(model, image_features,
                                                   text_z))
    if model.compute_dtype == jnp.bfloat16:
        rtol, atol = 5e-2, 1e-2        # bf16 MXU operands (v6e / v7x)
    else:
        rtol, atol = 1e-3, 1e-4        # full f32 path (v5e and older)
    err = float(jnp.max(jnp.abs(out - ref)))
    assert jnp.allclose(out, ref, rtol=rtol, atol=atol), f"max err {err}"

    print("KERNEL_OK")
</pallas_src>

<mosaic_0001>
module attributes {stable_mosaic.version = 11 : i64} {
  func.func @_fused_kernel(%arg0: i32, %arg1: memref<2x4x256xf32, #tpu.memory_space<vmem>>, %arg2: memref<2x8x64xf32, #tpu.memory_space<vmem>>, %arg3: memref<1x286xf32, #tpu.memory_space<vmem>>, %arg4: memref<1x78xf32, #tpu.memory_space<vmem>>, %arg5: memref<1x16x2xf32, #tpu.memory_space<vmem>>, %arg6: memref<224x81xf32, #tpu.memory_space<vmem>>, %arg7: memref<1x64x2xf32, #tpu.memory_space<vmem>>, %arg8: memref<4x324xf32, #tpu.memory_space<vmem>>, %arg9: memref<36x286xf32, #tpu.memory_space<vmem>>, %arg10: memref<8x100xf32, #tpu.memory_space<vmem>>, %arg11: memref<72x78xf32, #tpu.memory_space<vmem>>, %arg12: memref<80x2xf32, #tpu.memory_space<vmem>>) attributes {dimension_semantics = [#tpu.dimension_semantics<parallel>], iteration_bounds = array<i64: 2>, scalar_prefetch = 0 : i64, scratch_operands = 5 : i64, tpu.core_type = #tpu.core_type<tc>, window_params = [{transform_indices = @transform_0, window_bounds = array<i64: 2, 4, 256>}, {transform_indices = @transform_1, window_bounds = array<i64: 2, 8, 64>}, {pipeline_mode = #tpu.pipeline_mode<synchronous>, transform_indices = @transform_2, window_bounds = array<i64: 1, 286>}, {pipeline_mode = #tpu.pipeline_mode<synchronous>, transform_indices = @transform_3, window_bounds = array<i64: 1, 78>}, {transform_indices = @transform_4, window_bounds = array<i64: 1, 16, 2>}, {pipeline_mode = #tpu.pipeline_mode<synchronous>, transform_indices = @transform_5, window_bounds = array<i64: 224, 81>}, {transform_indices = @transform_6, window_bounds = array<i64: 1, 64, 2>}]} {
    %c0 = arith.constant 0 : index
    %c0_0 = arith.constant 0 : index
    %0 = vector.load %arg3[%c0, %c0_0] : memref<1x286xf32, #tpu.memory_space<vmem>>, vector<1x286xf32>
    %c0_1 = arith.constant 0 : index
    %c0_2 = arith.constant 0 : index
    %1 = vector.load %arg6[%c0_1, %c0_2] : memref<224x81xf32, #tpu.memory_space<vmem>>, vector<32x36xf32>
    %c0_3 = arith.constant 0 : index
    %c36 = arith.constant 36 : index
    %2 = vector.load %arg6[%c0_3, %c36] : memref<224x81xf32, #tpu.memory_space<vmem>>, vector<32x1xf32>
    %cst = arith.constant 0.000000e+00 : f32
    %3 = vector.broadcast %cst : f32 to vector<4x324xf32>
    %c0_4 = arith.constant 0 : index
    %c0_5 = arith.constant 0 : index
    %4 = vector.load %arg8[%c0_4, %c0_5] : memref<4x324xf32, #tpu.memory_space<vmem>>, vector<4x324xf32>
    tpu.vector_store %arg8[%c0_4, %c0_5], %3 {strides = array<i32>} : memref<4x324xf32, #tpu.memory_space<vmem>>, vector<4x324xf32>,
    %c0_6 = arith.constant 0 : index
    %c0_7 = arith.constant 0 : index
    %c0_8 = arith.constant 0 : index
    %5 = vector.load %arg1[%c0_6, %c0_7, %c0_8] : memref<2x4x256xf32, #tpu.memory_space<vmem>>, vector<1x4x16xf32>
    %6 = vector.shape_cast %5 : vector<1x4x16xf32> to vector<4x16xf32>
    %c0_9 = arith.constant 0 : index
    %c19 = arith.constant 19 : index
    %7 = vector.load %arg8[%c0_9, %c19] : memref<4x324xf32, #tpu.memory_space<vmem>>, vector<4x16xf32>
    tpu.vector_store %arg8[%c0_9, %c19], %6 {strides = array<i32>} : memref<4x324xf32, #tpu.memory_space<vmem>>, vector<4x16xf32>,
    %c0_10 = arith.constant 0 : index
    %c0_11 = arith.constant 0 : index
    %c16 = arith.constant 16 : index
    %8 = vector.load %arg1[%c0_10, %c0_11, %c16] : memref<2x4x256xf32, #tpu.memory_space<vmem>>, vector<1x4x16xf32>
    %9 = vector.shape_cast %8 : vector<1x4x16xf32> to vector<4x16xf32>
    %c0_12 = arith.constant 0 : index
    %c37 = arith.constant 37 : index
    %10 = vector.load %arg8[%c0_12, %c37] : memref<4x324xf32, #tpu.memory_space<vmem>>, vector<4x16xf32>
    tpu.vector_store %arg8[%c0_12, %c37], %9 {strides = array<i32>} : memref<4x324xf32, #tpu.memory_space<vmem>>, vector<4x16xf32>,
    %c0_13 = arith.constant 0 : index
    %c0_14 = arith.constant 0 : index
    %c32 = arith.constant 32 : index
    %11 = vector.load %arg1[%c0_13, %c0_14, %c32] : memref<2x4x256xf32, #tpu.memory_space<vmem>>, vector<1x4x16xf32>
    %12 = vector.shape_cast %11 : vector<1x4x16xf32> to vector<4x16xf32>
    %c0_15 = arith.constant 0 : index
    %c55 = arith.constant 55 : index
    %13 = vector.load %arg8[%c0_15, %c55] : memref<4x324xf32, #tpu.memory_space<vmem>>, vector<4x16xf32>
    tpu.vector_store %arg8[%c0_15, %c55], %12 {strides = array<i32>} : memref<4x324xf32, #tpu.memory_space<vmem>>, vector<4x16xf32>,
    %c0_16 = arith.constant 0 : index
    %c0_17 = arith.constant 0 : index
    %c48 = arith.constant 48 : index
    %14 = vector.load %arg1[%c0_16, %c0_17, %c48] : memref<2x4x256xf32, #tpu.memory_space<vmem>>, vector<1x4x16xf32>
    %15 = vector.shape_cast %14 : vector<1x4x16xf32> to vector<4x16xf32>
    %c0_18 = arith.constant 0 : index
    %c73 = arith.constant 73 : index
    %16 = vector.load %arg8[%c0_18, %c73] : memref<4x324xf32, #tpu.memory_space<vmem>>, vector<4x16xf32>
    tpu.vector_store %arg8[%c0_18, %c73], %15 {strides = array<i32>} : memref<4x324xf32, #tpu.memory_space<vmem>>, vector<4x16xf32>,
    %c0_19 = arith.constant 0 : index
    %c0_20 = arith.constant 0 : index
    %c64 = arith.constant 64 : index
    %17 = vector.load %arg1[%c0_19, %c0_20, %c64] : memref<2x4x256xf32, #tpu.memory_space<vmem>>, vector<1x4x16xf32>
    %18 = vector.shape_cast %17 : vector<1x4x16xf32> to vector<4x16xf32>
    %c0_21 = arith.constant 0 : index
    %c91 = arith.constant 91 : index
    %19 = vector.load %arg8[%c0_21, %c91] : memref<4x324xf32, #tpu.memory_space<vmem>>, vector<4x16xf32>
    tpu.vector_store %arg8[%c0_21, %c91], %18 {strides = array<i32>} : memref<4x324xf32, #tpu.memory_space<vmem>>, vector<4x16xf32>,
    %c0_22 = arith.constant 0 : index
    %c0_23 = arith.constant 0 : index
    %c80 = arith.constant 80 : index
    %20 = vector.load %arg1[%c0_22, %c0_23, %c80] : memref<2x4x256xf32, #tpu.memory_space<vmem>>, vector<1x4x16xf32>
    %21 = vector.shape_cast %20 : vector<1x4x16xf32> to vector<4x16xf32>
    %c0_24 = arith.constant 0 : index
    %c109 = arith.constant 109 : index
    %22 = vector.load %arg8[%c0_24, %c109] : memref<4x324xf32, #tpu.memory_space<vmem>>, vector<4x16xf32>
    tpu.vector_store %arg8[%c0_24, %c109], %21 {strides = array<i32>} : memref<4x324xf32, #tpu.memory_space<vmem>>, vector<4x16xf32>,
    %c0_25 = arith.constant 0 : index
    %c0_26 = arith.constant 0 : index
    %c96 = arith.constant 96 : index
    %23 = vector.load %arg1[%c0_25, %c0_26, %c96] : memref<2x4x256xf32, #tpu.memory_space<vmem>>, vector<1x4x16xf32>
    %24 = vector.shape_cast %23 : vector<1x4x16xf32> to vector<4x16xf32>
    %c0_27 = arith.constant 0 : index
    %c127 = arith.constant 127 : index
    %25 = vector.load %arg8[%c0_27, %c127] : memref<4x324xf32, #tpu.memory_space<vmem>>, vector<4x16xf32>
    tpu.vector_store %arg8[%c0_27, %c127], %24 {strides = array<i32>} : memref<4x324xf32, #tpu.memory_space<vmem>>, vector<4x16xf32>,
    %c0_28 = arith.constant 0 : index
    %c0_29 = arith.constant 0 : index
    %c112 = arith.constant 112 : index
    %26 = vector.load %arg1[%c0_28, %c0_29, %c112] : memref<2x4x256xf32, #tpu.memory_space<vmem>>, vector<1x4x16xf32>
    %27 = vector.shape_cast %26 : vector<1x4x16xf32> to vector<4x16xf32>
    %c0_30 = arith.constant 0 : index
    %c145 = arith.constant 145 : index
    %28 = vector.load %arg8[%c0_30, %c145] : memref<4x324xf32, #tpu.memory_space<vmem>>, vector<4x16xf32>
    tpu.vector_store %arg8[%c0_30, %c145], %27 {strides = array<i32>} : memref<4x324xf32, #tpu.memory_space<vmem>>, vector<4x16xf32>,
    %c0_31 = arith.constant 0 : index
    %c0_32 = arith.constant 0 : index
    %c128 = arith.constant 128 : index
    %29 = vector.load %arg1[%c0_31, %c0_32, %c128] : memref<2x4x256xf32, #tpu.memory_space<vmem>>, vector<1x4x16xf32>
    %30 = vector.shape_cast %29 : vector<1x4x16xf32> to vector<4x16xf32>
    %c0_33 = arith.constant 0 : index
    %c163 = arith.constant 163 : index
    %31 = vector.load %arg8[%c0_33, %c163] : memref<4x324xf32, #tpu.memory_space<vmem>>, vector<4x16xf32>
    tpu.vector_store %arg8[%c0_33, %c163], %30 {strides = array<i32>} : memref<4x324xf32, #tpu.memory_space<vmem>>, vector<4x16xf32>,
    %c0_34 = arith.constant 0 : index
    %c0_35 = arith.constant 0 : index
    %c144 = arith.constant 144 : index
    %32 = vector.load %arg1[%c0_34, %c0_35, %c144] : memref<2x4x256xf32, #tpu.memory_space<vmem>>, vector<1x4x16xf32>
    %33 = vector.shape_cast %32 : vector<1x4x16xf32> to vector<4x16xf32>
    %c0_36 = arith.constant 0 : index
    %c181 = arith.constant 181 : index
    %34 = vector.load %arg8[%c0_36, %c181] : memref<4x324xf32, #tpu.memory_space<vmem>>, vector<4x16xf32>
    tpu.vector_store %arg8[%c0_36, %c181], %33 {strides = array<i32>} : memref<4x324xf32, #tpu.memory_space<vmem>>, vector<4x16xf32>,
    %c0_37 = arith.constant 0 : index
    %c0_38 = arith.constant 0 : index
    %c160 = arith.constant 160 : index
    %35 = vector.load %arg1[%c0_37, %c0_38, %c160] : memref<2x4x256xf32, #tpu.memory_space<vmem>>, vector<1x4x16xf32>
    %36 = vector.shape_cast %35 : vector<1x4x16xf32> to vector<4x16xf32>
    %c0_39 = arith.constant 0 : index
    %c199 = arith.constant 199 : index
    %37 = vector.load %arg8[%c0_39, %c199] : memref<4x324xf32, #tpu.memory_space<vmem>>, vector<4x16xf32>
    tpu.vector_store %arg8[%c0_39, %c199], %36 {strides = array<i32>} : memref<4x324xf32, #tpu.memory_space<vmem>>, vector<4x16xf32>,
    %c0_40 = arith.constant 0 : index
    %c0_41 = arith.constant 0 : index
    %c176 = arith.constant 176 : index
    %38 = vector.load %arg1[%c0_40, %c0_41, %c176] : memref<2x4x256xf32, #tpu.memory_space<vmem>>, vector<1x4x16xf32>
    %39 = vector.shape_cast %38 : vector<1x4x16xf32> to vector<4x16xf32>
    %c0_42 = arith.constant 0 : index
    %c217 = arith.constant 217 : index
    %40 = vector.load %arg8[%c0_42, %c217] : memref<4x324xf32, #tpu.memory_space<vmem>>, vector<4x16xf32>
    tpu.vector_store %arg8[%c0_42, %c217], %39 {strides = array<i32>} : memref<4x324xf32, #tpu.memory_space<vmem>>, vector<4x16xf32>,
    %c0_43 = arith.constant 0 : index
    %c0_44 = arith.constant 0 : index
    %c192 = arith.constant 192 : index
    %41 = vector.load %arg1[%c0_43, %c0_44, %c192] : memref<2x4x256xf32, #tpu.memory_space<vmem>>, vector<1x4x16xf32>
    %42 = vector.shape_cast %41 : vector<1x4x16xf32> to vector<4x16xf32>
    %c0_45 = arith.constant 0 : index
    %c235 = arith.constant 235 : index
    %43 = vector.load %arg8[%c0_45, %c235] : memref<4x324xf32, #tpu.memory_space<vmem>>, vector<4x16xf32>
    tpu.vector_store %arg8[%c0_45, %c235], %42 {strides = array<i32>} : memref<4x324xf32, #tpu.memory_space<vmem>>, vector<4x16xf32>,
    %c0_46 = arith.constant 0 : index
    %c0_47 = arith.constant 0 : index
    %c208 = arith.constant 208 : index
    %44 = vector.load %arg1[%c0_46, %c0_47, %c208] : memref<2x4x256xf32, #tpu.memory_space<vmem>>, vector<1x4x16xf32>
    %45 = vector.shape_cast %44 : vector<1x4x16xf32> to vector<4x16xf32>
    %c0_48 = arith.constant 0 : index
    %c253 = arith.constant 253 : index
    %46 = vector.load %arg8[%c0_48, %c253] : memref<4x324xf32, #tpu.memory_space<vmem>>, vector<4x16xf32>
    tpu.vector_store %arg8[%c0_48, %c253], %45 {strides = array<i32>} : memref<4x324xf32, #tpu.memory_space<vmem>>, vector<4x16xf32>,
    %c0_49 = arith.constant 0 : index
    %c0_50 = arith.constant 0 : index
    %c224 = arith.constant 224 : index
    %47 = vector.load %arg1[%c0_49, %c0_50, %c224] : memref<2x4x256xf32, #tpu.memory_space<vmem>>, vector<1x4x16xf32>
    %48 = vector.shape_cast %47 : vector<1x4x16xf32> to vector<4x16xf32>
    %c0_51 = arith.constant 0 : index
    %c271 = arith.constant 271 : index
    %49 = vector.load %arg8[%c0_51, %c271] : memref<4x324xf32, #tpu.memory_space<vmem>>, vector<4x16xf32>
    tpu.vector_store %arg8[%c0_51, %c271], %48 {strides = array<i32>} : memref<4x324xf32, #tpu.memory_space<vmem>>, vector<4x16xf32>,
    %c0_52 = arith.constant 0 : index
    %c0_53 = arith.constant 0 : index
    %c240 = arith.constant 240 : index
    %50 = vector.load %arg1[%c0_52, %c0_53, %c240] : memref<2x4x256xf32, #tpu.memory_space<vmem>>, vector<1x4x16xf32>
    %51 = vector.shape_cast %50 : vector<1x4x16xf32> to vector<4x16xf32>
    %c0_54 = arith.constant 0 : index
    %c289 = arith.constant 289 : index
    %52 = vector.load %arg8[%c0_54, %c289] : memref<4x324xf32, #tpu.memory_space<vmem>>, vector<4x16xf32>
    tpu.vector_store %arg8[%c0_54, %c289], %51 {strides = array<i32>} : memref<4x324xf32, #tpu.memory_space<vmem>>, vector<4x16xf32>,
    %c0_55 = arith.constant 0 : index
    %c0_56 = arith.constant 0 : index
    %53 = vector.load %arg8[%c0_55, %c0_56] : memref<4x324xf32, #tpu.memory_space<vmem>>, vector<4x286xf32>
    %c0_57 = arith.constant 0 : index
    %c0_58 = arith.constant 0 : index
    %54 = vector.load %arg9[%c0_57, %c0_58] : memref<36x286xf32, #tpu.memory_space<vmem>>, vector<4x286xf32>
    tpu.vector_store %arg9[%c0_57, %c0_58], %53 {strides = array<i32>} : memref<36x286xf32, #tpu.memory_space<vmem>>, vector<4x286xf32>,
    %c0_59 = arith.constant 0 : index
    %c1 = arith.constant 1 : index
    %55 = vector.load %arg8[%c0_59, %c1] : memref<4x324xf32, #tpu.memory_space<vmem>>, vector<4x286xf32>
    %c4 = arith.constant 4 : index
    %c0_60 = arith.constant 0 : index
    %56 = vector.load %arg9[%c4, %c0_60] : memref<36x286xf32, #tpu.memory_space<vmem>>, vector<4x286xf32>
    tpu.vector_store %arg9[%c4, %c0_60], %55 {strides = array<i32>} : memref<36x286xf32, #tpu.memory_space<vmem>>, vector<4x286xf32>,
    %c0_61 = arith.constant 0 : index
    %c2 = arith.constant 2 : index
    %57 = vector.load %arg8[%c0_61, %c2] : memref<4x324xf32, #tpu.memory_space<vmem>>, vector<4x286xf32>
    %c8 = arith.constant 8 : index
    %c0_62 = arith.constant 0 : index
    %58 = vector.load %arg9[%c8, %c0_62] : memref<36x286xf32, #tpu.memory_space<vmem>>, vector<4x286xf32>
    tpu.vector_store %arg9[%c8, %c0_62], %57 {strides = array<i32>} : memref<36x286xf32, #tpu.memory_space<vmem>>, vector<4x286xf32>,
    %c0_63 = arith.constant 0 : index
    %c18 = arith.constant 18 : index
    %59 = vector.load %arg8[%c0_63, %c18] : memref<4x324xf32, #tpu.memory_space<vmem>>, vector<4x286xf32>
    %c12 = arith.constant 12 : index
    %c0_64 = arith.constant 0 : index
    %60 = vector.load %arg9[%c12, %c0_64] : memref<36x286xf32, #tpu.memory_space<vmem>>, vector<4x286xf32>
    tpu.vector_store %arg9[%c12, %c0_64], %59 {strides = array<i32>} : memref<36x286xf32, #tpu.memory_space<vmem>>, vector<4x286xf32>,
    %c0_65 = arith.constant 0 : index
    %c19_66 = arith.constant 19 : index
    %61 = vector.load %arg8[%c0_65, %c19_66] : memref<4x324xf32, #tpu.memory_space<vmem>>, vector<4x286xf32>
    %c16_67 = arith.constant 16 : index
    %c0_68 = arith.constant 0 : index
    %62 = vector.load %arg9[%c16_67, %c0_68] : memref<36x286xf32, #tpu.memory_space<vmem>>, vector<4x286xf32>
    tpu.vector_store %arg9[%c16_67, %c0_68], %61 {strides = array<i32>} : memref<36x286xf32, #tpu.memory_space<vmem>>, vector<4x286xf32>,
    %c0_69 = arith.constant 0 : index
    %c20 = arith.constant 20 : index
    %63 = vector.load %arg8[%c0_69, %c20] : memref<4x324xf32, #tpu.memory_space<vmem>>, vector<4x286xf32>
    %c20_70 = arith.constant 20 : index
    %c0_71 = arith.constant 0 : index
    %64 = vector.load %arg9[%c20_70, %c0_71] : memref<36x286xf32, #tpu.memory_space<vmem>>, vector<4x286xf32>
    tpu.vector_store %arg9[%c20_70, %c0_71], %63 {strides = array<i32>} : memref<36x286xf32, #tpu.memory_space<vmem>>, vector<4x286xf32>,
    %c0_72 = arith.constant 0 : index
    %c36_73 = arith.constant 36 : index
    %65 = vector.load %arg8[%c0_72, %c36_73] : memref<4x324xf32, #tpu.memory_space<vmem>>, vector<4x286xf32>
    %c24 = arith.constant 24 : index
    %c0_74 = arith.constant 0 : index
    %66 = vector.load %arg9[%c24, %c0_74] : memref<36x286xf32, #tpu.memory_space<vmem>>, vector<4x286xf32>
    tpu.vector_store %arg9[%c24, %c0_74], %65 {strides = array<i32>} : memref<36x286xf32, #tpu.memory_space<vmem>>, vector<4x286xf32>,
    %c0_75 = arith.constant 0 : index
    %c37_76 = arith.constant 37 : index
    %67 = vector.load %arg8[%c0_75, %c37_76] : memref<4x324xf32, #tpu.memory_space<vmem>>, vector<4x286xf32>
    %c28 = arith.constant 28 : index
    %c0_77 = arith.constant 0 : index
    %68 = vector.load %arg9[%c28, %c0_77] : memref<36x286xf32, #tpu.memory_space<vmem>>, vector<4x286xf32>
    tpu.vector_store %arg9[%c28, %c0_77], %67 {strides = array<i32>} : memref<36x286xf32, #tpu.memory_space<vmem>>, vector<4x286xf32>,
    %c0_78 = arith.constant 0 : index
    %c38 = arith.constant 38 : index
    %69 = vector.load %arg8[%c0_78, %c38] : memref<4x324xf32, #tpu.memory_space<vmem>>, vector<4x286xf32>
    %c32_79 = arith.constant 32 : index
    %c0_80 = arith.constant 0 : index
    %70 = vector.load %arg9[%c32_79, %c0_80] : memref<36x286xf32, #tpu.memory_space<vmem>>, vector<4x286xf32>
    tpu.vector_store %arg9[%c32_79, %c0_80], %69 {strides = array<i32>} : memref<36x286xf32, #tpu.memory_space<vmem>>, vector<4x286xf32>,
    %c0_81 = arith.constant 0 : index
    %c0_82 = arith.constant 0 : index
    %71 = vector.load %arg9[%c0_81, %c0_82] : memref<36x286xf32, #tpu.memory_space<vmem>>, vector<36x286xf32>
    %cst_83 = arith.constant dense<0.000000e+00> : vector<32x286xf32>
    %72 = tpu.matmul %1, %71, %cst_83 {dimension_numbers = #tpu.dot_dimension_numbers<[1], [0], [0], [1], [0, 0, 1, 1], [], []>} : vector<32x36xf32>, vector<36x286xf32>, vector<32x286xf32> -> vector<32x286xf32>
    %73 = vector.broadcast %2 : vector<32x1xf32> to vector<32x286xf32>
    %74 = arith.addf %72, %73 : vector<32x286xf32>
    %cst_84 = arith.constant 0.000000e+00 : f32
    %75 = vector.broadcast %cst_84 : f32 to vector<32x286xf32>
    %76 = arith.maximumf %74, %75 : vector<32x286xf32>
    %77 = vector.broadcast %0 : vector<1x286xf32> to vector<32x286xf32>
    %78 = arith.mulf %76, %77 : vector<32x286xf32>
    %cst_85 = arith.constant dense<0.000000e+00> : vector<32xf32>
    %79 = vector.multi_reduction <add>, %78, %cst_85 [1] : vector<32x286xf32> to vector<32xf32>
    %80 = vector.shape_cast %79 : vector<32xf32> to vector<32x1xf32>
    %c0_86 = arith.constant 0 : index
    %c0_87 = arith.constant 0 : index
    %81 = vector.load %arg12[%c0_86, %c0_87] : memref<80x2xf32, #tpu.memory_space<vmem>>, vector<32x1xf32>
    tpu.vector_store %arg12[%c0_86, %c0_87], %80 {strides = array<i32>} : memref<80x2xf32, #tpu.memory_space<vmem>>, vector<32x1xf32>,
    %c1_88 = arith.constant 1 : index
    %c0_89 = arith.constant 0 : index
    %c0_90 = arith.constant 0 : index
    %82 = vector.load %arg1[%c1_88, %c0_89, %c0_90] : memref<2x4x256xf32, #tpu.memory_space<vmem>>, vector<1x4x16xf32>
    %83 = vector.shape_cast %82 : vector<1x4x16xf32> to vector<4x16xf32>
    %c0_91 = arith.constant 0 : index
    %c19_92 = arith.constant 19 : index
    %84 = vector.load %arg8[%c0_91, %c19_92] : memref<4x324xf32, #tpu.memory_space<vmem>>, vector<4x16xf32>
    tpu.vector_store %arg8[%c0_91, %c19_92], %83 {strides = array<i32>} : memref<4x324xf32, #tpu.memory_space<vmem>>, vector<4x16xf32>,
    %c1_93 = arith.constant 1 : index
    %c0_94 = arith.constant 0 : index
    %c16_95 = arith.constant 16 : index
    %85 = vector.load %arg1[%c1_93, %c0_94, %c16_95] : memref<2x4x256xf32, #tpu.memory_space<vmem>>, vector<1x4x16xf32>
    %86 = vector.shape_cast %85 : vector<1x4x16xf32> to vector<4x16xf32>
    %c0_96 = arith.constant 0 : index
    %c37_97 = arith.constant 37 : index
    %87 = vector.load %arg8[%c0_96, %c37_97] : memref<4x324xf32, #tpu.memory_space<vmem>>, vector<4x16xf32>
    tpu.vector_store %arg8[%c0_96, %c37_97], %86 {strides = array<i32>} : memref<4x324xf32, #tpu.memory_space<vmem>>, vector<4x16xf32>,
    %c1_98 = arith.constant 1 : index
    %c0_99 = arith.constant 0 : index
    %c32_100 = arith.constant 32 : index
    %88 = vector.load %arg1[%c1_98, %c0_99, %c32_100] : memref<2x4x256xf32, #tpu.memory_space<vmem>>, vector<1x4x16xf32>
    %89 = vector.shape_cast %88 : vector<1x4x16xf32> to vector<4x16xf32>
    %c0_101 = arith.constant 0 : index
    %c55_102 = arith.constant 55 : index
    %90 = vector.load %arg8[%c0_101, %c55_102] : memref<4x324xf32, #tpu.memory_space<vmem>>, vector<4x16xf32>
    tpu.vector_store %arg8[%c0_101, %c55_102], %89 {strides = array<i32>} : memref<4x324xf32, #tpu.memory_space<vmem>>, vector<4x16xf32>,
    %c1_103 = arith.constant 1 : index
    %c0_104 = arith.constant 0 : index
    %c48_105 = arith.constant 48 : index
    %91 = vector.load %arg1[%c1_103, %c0_104, %c48_105] : memref<2x4x256xf32, #tpu.memory_space<vmem>>, vector<1x4x16xf32>
    %92 = vector.shape_cast %91 : vector<1x4x16xf32> to vector<4x16xf32>
    %c0_106 = arith.constant 0 : index
    %c73_107 = arith.constant 73 : index
    %93 = vector.load %arg8[%c0_106, %c73_107] : memref<4x324xf32, #tpu.memory_space<vmem>>, vector<4x16xf32>
    tpu.vector_store %arg8[%c0_106, %c73_107], %92 {strides = array<i32>} : memref<4x324xf32, #tpu.memory_space<vmem>>, vector<4x16xf32>,
    %c1_108 = arith.constant 1 : index
    %c0_109 = arith.constant 0 : index
    %c64_110 = arith.constant 64 : index
    %94 = vector.load %arg1[%c1_108, %c0_109, %c64_110] : memref<2x4x256xf32, #tpu.memory_space<vmem>>, vector<1x4x16xf32>
    %95 = vector.shape_cast %94 : vector<1x4x16xf32> to vector<4x16xf32>
    %c0_111 = arith.constant 0 : index
    %c91_112 = arith.constant 91 : index
    %96 = vector.load %arg8[%c0_111, %c91_112] : memref<4x324xf32, #tpu.memory_space<vmem>>, vector<4x16xf32>
    tpu.vector_store %arg8[%c0_111, %c91_112], %95 {strides = array<i32>} : memref<4x324xf32, #tpu.memory_space<vmem>>, vector<4x16xf32>,
    %c1_113 = arith.constant 1 : index
    %c0_114 = arith.constant 0 : index
    %c80_115 = arith.constant 80 : index
    %97 = vector.load %arg1[%c1_113, %c0_114, %c80_115] : memref<2x4x256xf32, #tpu.memory_space<vmem>>, vector<1x4x16xf32>
    %98 = vector.shape_cast %97 : vector<1x4x16xf32> to vector<4x16xf32>
    %c0_116 = arith.constant 0 : index
    %c109_117 = arith.constant 109 : index
    %99 = vector.load %arg8[%c0_116, %c109_117] : memref<4x324xf32, #tpu.memory_space<vmem>>, vector<4x16xf32>
    tpu.vector_store %arg8[%c0_116, %c109_117], %98 {strides = array<i32>} : memref<4x324xf32, #tpu.memory_space<vmem>>, vector<4x16xf32>,
    %c1_118 = arith.constant 1 : index
    %c0_119 = arith.constant 0 : index
    %c96_120 = arith.constant 96 : index
    %100 = vector.load %arg1[%c1_118, %c0_119, %c96_120] : memref<2x4x256xf32, #tpu.memory_space<vmem>>, vector<1x4x16xf32>
    %101 = vector.shape_cast %100 : vector<1x4x16xf32> to vector<4x16xf32>
    %c0_121 = arith.constant 0 : index
    %c127_122 = arith.constant 127 : index
    %102 = vector.load %arg8[%c0_121, %c127_122] : memref<4x324xf32, #tpu.memory_space<vmem>>, vector<4x16xf32>
    tpu.vector_store %arg8[%c0_121, %c127_122], %101 {strides = array<i32>} : memref<4x324xf32, #tpu.memory_space<vmem>>, vector<4x16xf32>,
    %c1_123 = arith.constant 1 : index
    %c0_124 = arith.constant 0 : index
    %c112_125 = arith.constant 112 : index
    %103 = vector.load %arg1[%c1_123, %c0_124, %c112_125] : memref<2x4x256xf32, #tpu.memory_space<vmem>>, vector<1x4x16xf32>
    %104 = vector.shape_cast %103 : vector<1x4x16xf32> to vector<4x16xf32>
    %c0_126 = arith.constant 0 : index
    %c145_127 = arith.constant 145 : index
    %105 = vector.load %arg8[%c0_126, %c145_127] : memref<4x324xf32, #tpu.memory_space<vmem>>, vector<4x16xf32>
    tpu.vector_store %arg8[%c0_126, %c145_127], %104 {strides = array<i32>} : memref<4x324xf32, #tpu.memory_space<vmem>>, vector<4x16xf32>,
    %c1_128 = arith.constant 1 : index
    %c0_129 = arith.constant 0 : index
    %c128_130 = arith.constant 128 : index
    %106 = vector.load %arg1[%c1_128, %c0_129, %c128_130] : memref<2x4x256xf32, #tpu.memory_space<vmem>>, vector<1x4x16xf32>
    %107 = vector.shape_cast %106 : vector<1x4x16xf32> to vector<4x16xf32>
    %c0_131 = arith.constant 0 : index
    %c163_132 = arith.constant 163 : index
    %108 = vector.load %arg8[%c0_131, %c163_132] : memref<4x324xf32, #tpu.memory_space<vmem>>, vector<4x16xf32>
    tpu.vector_store %arg8[%c0_131, %c163_132], %107 {strides = array<i32>} : memref<4x324xf32, #tpu.memory_space<vmem>>, vector<4x16xf32>,
    %c1_133 = arith.constant 1 : index
    %c0_134 = arith.constant 0 : index
    %c144_135 = arith.constant 144 : index
    %109 = vector.load %arg1[%c1_133, %c0_134, %c144_135] : memref<2x4x256xf32, #tpu.memory_space<vmem>>, vector<1x4x16xf32>
    %110 = vector.shape_cast %109 : vector<1x4x16xf32> to vector<4x16xf32>
    %c0_136 = arith.constant 0 : index
    %c181_137 = arith.constant 181 : index
    %111 = vector.load %arg8[%c0_136, %c181_137] : memref<4x324xf32, #tpu.memory_space<vmem>>, vector<4x16xf32>
    tpu.vector_store %arg8[%c0_136, %c181_137], %110 {strides = array<i32>} : memref<4x324xf32, #tpu.memory_space<vmem>>, vector<4x16xf32>,
    %c1_138 = arith.constant 1 : index
    %c0_139 = arith.constant 0 : index
    %c160_140 = arith.constant 160 : index
    %112 = vector.load %arg1[%c1_138, %c0_139, %c160_140] : memref<2x4x256xf32, #tpu.memory_space<vmem>>, vector<1x4x16xf32>
    %113 = vector.shape_cast %112 : vector<1x4x16xf32> to vector<4x16xf32>
    %c0_141 = arith.constant 0 : index
    %c199_142 = arith.constant 199 : index
    %114 = vector.load %arg8[%c0_141, %c199_142] : memref<4x324xf32, #tpu.memory_space<vmem>>, vector<4x16xf32>
    tpu.vector_store %arg8[%c0_141, %c199_142], %113 {strides = array<i32>} : memref<4x324xf32, #tpu.memory_space<vmem>>, vector<4x16xf32>,
    %c1_143 = arith.constant 1 : index
    %c0_144 = arith.constant 0 : index
    %c176_145 = arith.constant 176 : index
    %115 = vector.load %arg1[%c1_143, %c0_144, %c176_145] : memref<2x4x256xf32, #tpu.memory_space<vmem>>, vector<1x4x16xf32>
    %116 = vector.shape_cast %115 : vector<1x4x16xf32> to vector<4x16xf32>
    %c0_146 = arith.constant 0 : index
    %c217_147 = arith.constant 217 : index
    %117 = vector.load %arg8[%c0_146, %c217_147] : memref<4x324xf32, #tpu.memory_space<vmem>>, vector<4x16xf32>
    tpu.vector_store %arg8[%c0_146, %c217_147], %116 {strides = array<i32>} : memref<4x324xf32, #tpu.memory_space<vmem>>, vector<4x16xf32>,
    %c1_148 = arith.constant 1 : index
    %c0_149 = arith.constant 0 : index
    %c192_150 = arith.constant 192 : index
    %118 = vector.load %arg1[%c1_148, %c0_149, %c192_150] : memref<2x4x256xf32, #tpu.memory_space<vmem>>, vector<1x4x16xf32>
    %119 = vector.shape_cast %118 : vector<1x4x16xf32> to vector<4x16xf32>
    %c0_151 = arith.constant 0 : index
    %c235_152 = arith.constant 235 : index
    %120 = vector.load %arg8[%c0_151, %c235_152] : memref<4x324xf32, #tpu.memory_space<vmem>>, vector<4x16xf32>
    tpu.vector_store %arg8[%c0_151, %c235_152], %119 {strides = array<i32>} : memref<4x324xf32, #tpu.memory_space<vmem>>, vector<4x16xf32>,
    %c1_153 = arith.constant 1 : index
    %c0_154 = arith.constant 0 : index
    %c208_155 = arith.constant 208 : index
    %121 = vector.load %arg1[%c1_153, %c0_154, %c208_155] : memref<2x4x256xf32, #tpu.memory_space<vmem>>, vector<1x4x16xf32>
    %122 = vector.shape_cast %121 : vector<1x4x16xf32> to vector<4x16xf32>
    %c0_156 = arith.constant 0 : index
    %c253_157 = arith.constant 253 : index
    %123 = vector.load %arg8[%c0_156, %c253_157] : memref<4x324xf32, #tpu.memory_space<vmem>>, vector<4x16xf32>
    tpu.vector_store %arg8[%c0_156, %c253_157], %122 {strides = array<i32>} : memref<4x324xf32, #tpu.memory_space<vmem>>, vector<4x16xf32>,
    %c1_158 = arith.constant 1 : index
    %c0_159 = arith.constant 0 : index
    %c224_160 = arith.constant 224 : index
    %124 = vector.load %arg1[%c1_158, %c0_159, %c224_160] : memref<2x4x256xf32, #tpu.memory_space<vmem>>, vector<1x4x16xf32>
    %125 = vector.shape_cast %124 : vector<1x4x16xf32> to vector<4x16xf32>
    %c0_161 = arith.constant 0 : index
    %c271_162 = arith.constant 271 : index
    %126 = vector.load %arg8[%c0_161, %c271_162] : memref<4x324xf32, #tpu.memory_space<vmem>>, vector<4x16xf32>
    tpu.vector_store %arg8[%c0_161, %c271_162], %125 {strides = array<i32>} : memref<4x324xf32, #tpu.memory_space<vmem>>, vector<4x16xf32>,
    %c1_163 = arith.constant 1 : index
    %c0_164 = arith.constant 0 : index
    %c240_165 = arith.constant 240 : index
    %127 = vector.load %arg1[%c1_163, %c0_164, %c240_165] : memref<2x4x256xf32, #tpu.memory_space<vmem>>, vector<1x4x16xf32>
    %128 = vector.shape_cast %127 : vector<1x4x16xf32> to vector<4x16xf32>
    %c0_166 = arith.constant 0 : index
    %c289_167 = arith.constant 289 : index
    %129 = vector.load %arg8[%c0_166, %c289_167] : memref<4x324xf32, #tpu.memory_space<vmem>>, vector<4x16xf32>
    tpu.vector_store %arg8[%c0_166, %c289_167], %128 {strides = array<i32>} : memref<4x324xf32, #tpu.memory_space<vmem>>, vector<4x16xf32>,
    %c0_168 = arith.constant 0 : index
    %c0_169 = arith.constant 0 : index
    %130 = vector.load %arg8[%c0_168, %c0_169] : memref<4x324xf32, #tpu.memory_space<vmem>>, vector<4x286xf32>
    %c0_170 = arith.constant 0 : index
    %c0_171 = arith.constant 0 : index
    %131 = vector.load %arg9[%c0_170, %c0_171] : memref<36x286xf32, #tpu.memory_space<vmem>>, vector<4x286xf32>
    tpu.vector_store %arg9[%c0_170, %c0_171], %130 {strides = array<i32>} : memref<36x286xf32, #tpu.memory_space<vmem>>, vector<4x286xf32>,
    %c0_172 = arith.constant 0 : index
    %c1_173 = arith.constant 1 : index
    %132 = vector.load %arg8[%c0_172, %c1_173] : memref<4x324xf32, #tpu.memory_space<vmem>>, vector<4x286xf32>
    %c4_174 = arith.constant 4 : index
    %c0_175 = arith.constant 0 : index
    %133 = vector.load %arg9[%c4_174, %c0_175] : memref<36x286xf32, #tpu.memory_space<vmem>>, vector<4x286xf32>
    tpu.vector_store %arg9[%c4_174, %c0_175], %132 {strides = array<i32>} : memref<36x286xf32, #tpu.memory_space<vmem>>, vector<4x286xf32>,
    %c0_176 = arith.constant 0 : index
    %c2_177 = arith.constant 2 : index
    %134 = vector.load %arg8[%c0_176, %c2_177] : memref<4x324xf32, #tpu.memory_space<vmem>>, vector<4x286xf32>
    %c8_178 = arith.constant 8 : index
    %c0_179 = arith.constant 0 : index
    %135 = vector.load %arg9[%c8_178, %c0_179] : memref<36x286xf32, #tpu.memory_space<vmem>>, vector<4x286xf32>
    tpu.vector_store %arg9[%c8_178, %c0_179], %134 {strides = array<i32>} : memref<36x286xf32, #tpu.memory_space<vmem>>, vector<4x286xf32>,
    %c0_180 = arith.constant 0 : index
    %c18_181 = arith.constant 18 : index
    %136 = vector.load %arg8[%c0_180, %c18_181] : memref<4x324xf32, #tpu.memory_space<vmem>>, vector<4x286xf32>
    %c12_182 = arith.constant 12 : index
    %c0_183 = arith.constant 0 : index
    %137 = vector.load %arg9[%c12_182, %c0_183] : memref<36x286xf32, #tpu.memory_space<vmem>>, vector<4x286xf32>
    tpu.vector_store %arg9[%c12_182, %c0_183], %136 {strides = array<i32>} : memref<36x286xf32, #tpu.memory_space<vmem>>, vector<4x286xf32>,
    %c0_184 = arith.constant 0 : index
    %c19_185 = arith.constant 19 : index
    %138 = vector.load %arg8[%c0_184, %c19_185] : memref<4x324xf32, #tpu.memory_space<vmem>>, vector<4x286xf32>
    %c16_186 = arith.constant 16 : index
    %c0_187 = arith.constant 0 : index
    %139 = vector.load %arg9[%c16_186, %c0_187] : memref<36x286xf32, #tpu.memory_space<vmem>>, vector<4x286xf32>
    tpu.vector_store %arg9[%c16_186, %c0_187], %138 {strides = array<i32>} : memref<36x286xf32, #tpu.memory_space<vmem>>, vector<4x286xf32>,
    %c0_188 = arith.constant 0 : index
    %c20_189 = arith.constant 20 : index
    %140 = vector.load %arg8[%c0_188, %c20_189] : memref<4x324xf32, #tpu.memory_space<vmem>>, vector<4x286xf32>
    %c20_190 = arith.constant 20 : index
    %c0_191 = arith.constant 0 : index
    %141 = vector.load %arg9[%c20_190, %c0_191] : memref<36x286xf32, #tpu.memory_space<vmem>>, vector<4x286xf32>
    tpu.vector_store %arg9[%c20_190, %c0_191], %140 {strides = array<i32>} : memref<36x286xf32, #tpu.memory_space<vmem>>, vector<4x286xf32>,
    %c0_192 = arith.constant 0 : index
    %c36_193 = arith.constant 36 : index
    %142 = vector.load %arg8[%c0_192, %c36_193] : memref<4x324xf32, #tpu.memory_space<vmem>>, vector<4x286xf32>
    %c24_194 = arith.constant 24 : index
    %c0_195 = arith.constant 0 : index
    %143 = vector.load %arg9[%c24_194, %c0_195] : memref<36x286xf32, #tpu.memory_space<vmem>>, vector<4x286xf32>
    tpu.vector_store %arg9[%c24_194, %c0_195], %142 {strides = array<i32>} : memref<36x286xf32, #tpu.memory_space<vmem>>, vector<4x286xf32>,
    %c0_196 = arith.constant 0 : index
    %c37_197 = arith.constant 37 : index
    %144 = vector.load %arg8[%c0_196, %c37_197] : memref<4x324xf32, #tpu.memory_space<vmem>>, vector<4x286xf32>
    %c28_198 = arith.constant 28 : index
    %c0_199 = arith.constant 0 : index
    %145 = vector.load %arg9[%c28_198, %c0_199] : memref<36x286xf32, #tpu.memory_space<vmem>>, vector<4x286xf32>
    tpu.vector_store %arg9[%c28_198, %c0_199], %144 {strides = array<i32>} : memref<36x286xf32, #tpu.memory_space<vmem>>, vector<4x286xf32>,
    %c0_200 = arith.constant 0 : index
    %c38_201 = arith.constant 38 : index
    %146 = vector.load %arg8[%c0_200, %c38_201] : memref<4x324xf32, #tpu.memory_space<vmem>>, vector<4x286xf32>
    %c32_202 = arith.constant 32 : index
    %c0_203 = arith.constant 0 : index
    %147 = vector.load %arg9[%c32_202, %c0_203] : memref<36x286xf32, #tpu.memory_space<vmem>>, vector<4x286xf32>
    tpu.vector_store %arg9[%c32_202, %c0_203], %146 {strides = array<i32>} : memref<36x286xf32, #tpu.memory_space<vmem>>, vector<4x286xf32>,
    %c0_204 = arith.constant 0 : index
    %c0_205 = arith.constant 0 : index
    %148 = vector.load %arg9[%c0_204, %c0_205] : memref<36x286xf32, #tpu.memory_space<vmem>>, vector<36x286xf32>
    %cst_206 = arith.constant dense<0.000000e+00> : vector<32x286xf32>
    %149 = tpu.matmul %1, %148, %cst_206 {dimension_numbers = #tpu.dot_dimension_numbers<[1], [0], [0], [1], [0, 0, 1, 1], [], []>} : vector<32x36xf32>, vector<36x286xf32>, vector<32x286xf32> -> vector<32x286xf32>
    %150 = vector.broadcast %2 : vector<32x1xf32> to vector<32x286xf32>
    %151 = arith.addf %149, %150 : vector<32x286xf32>
    %cst_207 = arith.constant 0.000000e+00 : f32
    %152 = vector.broadcast %cst_207 : f32 to vector<32x286xf32>
    %153 = arith.maximumf %151, %152 : vector<32x286xf32>
    %154 = vector.broadcast %0 : vector<1x286xf32> to vector<32x286xf32>
    %155 = arith.mulf %153, %154 : vector<32x286xf32>
    %cst_208 = arith.constant dense<0.000000e+00> : vector<32xf32>
    %156 = vector.multi_reduction <add>, %155, %cst_208 [1] : vector<32x286xf32> to vector<32xf32>
    %157 = vector.shape_cast %156 : vector<32xf32> to vector<32x1xf32>
    %c0_209 = arith.constant 0 : index
    %c1_210 = arith.constant 1 : index
    %158 = vector.load %arg12[%c0_209, %c1_210] : memref<80x2xf32, #tpu.memory_space<vmem>>, vector<32x1xf32>
    tpu.vector_store %arg12[%c0_209, %c1_210], %157 {strides = array<i32>} : memref<80x2xf32, #tpu.memory_space<vmem>>, vector<32x1xf32>,
    %c0_211 = arith.constant 0 : index
    %c0_212 = arith.constant 0 : index
    %159 = vector.load %arg4[%c0_211, %c0_212] : memref<1x78xf32, #tpu.memory_space<vmem>>, vector<1x78xf32>
    %c32_213 = arith.constant 32 : index
    %c0_214 = arith.constant 0 : index
    %160 = vector.load %arg6[%c32_213, %c0_214] : memref<224x81xf32, #tpu.memory_space<vmem>>, vector<32x72xf32>
    %c32_215 = arith.constant 32 : index
    %c72 = arith.constant 72 : index
    %161 = vector.load %arg6[%c32_215, %c72] : memref<224x81xf32, #tpu.memory_space<vmem>>, vector<32x1xf32>
    %cst_216 = arith.constant 0.000000e+00 : f32
    %162 = vector.broadcast %cst_216 : f32 to vector<8x100xf32>
    %c0_217 = arith.constant 0 : index
    %c0_218 = arith.constant 0 : index
    %163 = vector.load %arg10[%c0_217, %c0_218] : memref<8x100xf32, #tpu.memory_space<vmem>>, vector<8x100xf32>
    tpu.vector_store %arg10[%c0_217, %c0_218], %162 {strides = array<i32>} : memref<8x100xf32, #tpu.memory_space<vmem>>, vector<8x100xf32>,
    %c0_219 = arith.constant 0 : index
    %c0_220 = arith.constant 0 : index
    %c0_221 = arith.constant 0 : index
    %164 = vector.load %arg2[%c0_219, %c0_220, %c0_221] : memref<2x8x64xf32, #tpu.memory_space<vmem>>, vector<1x8x8xf32>
    %165 = vector.shape_cast %164 : vector<1x8x8xf32> to vector<8x8xf32>
    %c0_222 = arith.constant 0 : index
    %c11 = arith.constant 11 : index
    %166 = vector.load %arg10[%c0_222, %c11] : memref<8x100xf32, #tpu.memory_space<vmem>>, vector<8x8xf32>
    tpu.vector_store %arg10[%c0_222, %c11], %165 {strides = array<i32>} : memref<8x100xf32, #tpu.memory_space<vmem>>, vector<8x8xf32>,
    %c0_223 = arith.constant 0 : index
    %c0_224 = arith.constant 0 : index
    %c8_225 = arith.constant 8 : index
    %167 = vector.load %arg2[%c0_223, %c0_224, %c8_225] : memref<2x8x64xf32, #tpu.memory_space<vmem>>, vector<1x8x8xf32>
    %168 = vector.shape_cast %167 : vector<1x8x8xf32> to vector<8x8xf32>
    %c0_226 = arith.constant 0 : index
    %c21 = arith.constant 21 : index
    %169 = vector.load %arg10[%c0_226, %c21] : memref<8x100xf32, #tpu.memory_space<vmem>>, vector<8x8xf32>
    tpu.vector_store %arg10[%c0_226, %c21], %168 {strides = array<i32>} : memref<8x100xf32, #tpu.memory_space<vmem>>, vector<8x8xf32>,
    %c0_227 = arith.constant 0 : index
    %c0_228 = arith.constant 0 : index
    %c16_229 = arith.constant 16 : index
    %170 = vector.load %arg2[%c0_227, %c0_228, %c16_229] : memref<2x8x64xf32, #tpu.memory_space<vmem>>, vector<1x8x8xf32>
    %171 = vector.shape_cast %170 : vector<1x8x8xf32> to vector<8x8xf32>
    %c0_230 = arith.constant 0 : index
    %c31 = arith.constant 31 : index
    %172 = vector.load %arg10[%c0_230, %c31] : memref<8x100xf32, #tpu.memory_space<vmem>>, vector<8x8xf32>
    tpu.vector_store %arg10[%c0_230, %c31], %171 {strides = array<i32>} : memref<8x100xf32, #tpu.memory_space<vmem>>, vector<8x8xf32>,
    %c0_231 = arith.constant 0 : index
    %c0_232 = arith.constant 0 : index
    %c24_233 = arith.constant 24 : index
    %173 = vector.load %arg2[%c0_231, %c0_232, %c24_233] : memref<2x8x64xf32, #tpu.memory_space<vmem>>, vector<1x8x8xf32>
    %174 = vector.shape_cast %173 : vector<1x8x8xf32> to vector<8x8xf32>
    %c0_234 = arith.constant 0 : index
    %c41 = arith.constant 41 : index
    %175 = vector.load %arg10[%c0_234, %c41] : memref<8x100xf32, #tpu.memory_space<vmem>>, vector<8x8xf32>
    tpu.vector_store %arg10[%c0_234, %c41], %174 {strides = array<i32>} : memref<8x100xf32, #tpu.memory_space<vmem>>, vector<8x8xf32>,
    %c0_235 = arith.constant 0 : index
    %c0_236 = arith.constant 0 : index
    %c32_237 = arith.constant 32 : index
    %176 = vector.load %arg2[%c0_235, %c0_236, %c32_237] : memref<2x8x64xf32, #tpu.memory_space<vmem>>, vector<1x8x8xf32>
    %177 = vector.shape_cast %176 : vector<1x8x8xf32> to vector<8x8xf32>
    %c0_238 = arith.constant 0 : index
    %c51 = arith.constant 51 : index
    %178 = vector.load %arg10[%c0_238, %c51] : memref<8x100xf32, #tpu.memory_space<vmem>>, vector<8x8xf32>
    tpu.vector_store %arg10[%c0_238, %c51], %177 {strides = array<i32>} : memref<8x100xf32, #tpu.memory_space<vmem>>, vector<8x8xf32>,
    %c0_239 = arith.constant 0 : index
    %c0_240 = arith.constant 0 : index
    %c40 = arith.constant 40 : index
    %179 = vector.load %arg2[%c0_239, %c0_240, %c40] : memref<2x8x64xf32, #tpu.memory_space<vmem>>, vector<1x8x8xf32>
    %180 = vector.shape_cast %179 : vector<1x8x8xf32> to vector<8x8xf32>
    %c0_241 = arith.constant 0 : index
    %c61 = arith.constant 61 : index
    %181 = vector.load %arg10[%c0_241, %c61] : memref<8x100xf32, #tpu.memory_space<vmem>>, vector<8x8xf32>
    tpu.vector_store %arg10[%c0_241, %c61], %180 {strides = array<i32>} : memref<8x100xf32, #tpu.memory_space<vmem>>, vector<8x8xf32>,
    %c0_242 = arith.constant 0 : index
    %c0_243 = arith.constant 0 : index
    %c48_244 = arith.constant 48 : index
    %182 = vector.load %arg2[%c0_242, %c0_243, %c48_244] : memref<2x8x64xf32, #tpu.memory_space<vmem>>, vector<1x8x8xf32>
    %183 = vector.shape_cast %182 : vector<1x8x8xf32> to vector<8x8xf32>
    %c0_245 = arith.constant 0 : index
    %c71 = arith.constant 71 : index
    %184 = vector.load %arg10[%c0_245, %c71] : memref<8x100xf32, #tpu.memory_space<vmem>>, vector<8x8xf32>
    tpu.vector_store %arg10[%c0_245, %c71], %183 {strides = array<i32>} : memref<8x100xf32, #tpu.memory_space<vmem>>, vector<8x8xf32>,
    %c0_246 = arith.constant 0 : index
    %c0_247 = arith.constant 0 : index
    %c56 = arith.constant 56 : index
    %185 = vector.load %arg2[%c0_246, %c0_247, %c56] : memref<2x8x64xf32, #tpu.memory_space<vmem>>, vector<1x8x8xf32>
    %186 = vector.shape_cast %185 : vector<1x8x8xf32> to vector<8x8xf32>
    %c0_248 = arith.constant 0 : index
    %c81 = arith.constant 81 : index
    %187 = vector.load %arg10[%c0_248, %c81] : memref<8x100xf32, #tpu.memory_space<vmem>>, vector<8x8xf32>
    tpu.vector_store %arg10[%c0_248, %c81], %186 {strides = array<i32>} : memref<8x100xf32, #tpu.memory_space<vmem>>, vector<8x8xf32>,
    %c0_249 = arith.constant 0 : index
    %c0_250 = arith.constant 0 : index
    %188 = vector.load %arg10[%c0_249, %c0_250] : memref<8x100xf32, #tpu.memory_space<vmem>>, vector<8x78xf32>
    %c0_251 = arith.constant 0 : index
    %c0_252 = arith.constant 0 : index
    %189 = vector.load %arg11[%c0_251, %c0_252] : memref<72x78xf32, #tpu.memory_space<vmem>>, vector<8x78xf32>
    tpu.vector_store %arg11[%c0_251, %c0_252], %188 {strides = array<i32>} : memref<72x78xf32, #tpu.memory_space<vmem>>, vector<8x78xf32>,
    %c0_253 = arith.constant 0 : index
    %c1_254 = arith.constant 1 : index
    %190 = vector.load %arg10[%c0_253, %c1_254] : memref<8x100xf32, #tpu.memory_space<vmem>>, vector<8x78xf32>
    %c8_255 = arith.constant 8 : index
    %c0_256 = arith.constant 0 : index
    %191 = vector.load %arg11[%c8_255, %c0_256] : memref<72x78xf32, #tpu.memory_space<vmem>>, vector<8x78xf32>
    tpu.vector_store %arg11[%c8_255, %c0_256], %190 {strides = array<i32>} : memref<72x78xf32, #tpu.memory_space<vmem>>, vector<8x78xf32>,
    %c0_257 = arith.constant 0 : index
    %c2_258 = arith.constant 2 : index
    %192 = vector.load %arg10[%c0_257, %c2_258] : memref<8x100xf32, #tpu.memory_space<vmem>>, vector<8x78xf32>
    %c16_259 = arith.constant 16 : index
    %c0_260 = arith.constant 0 : index
    %193 = vector.load %arg11[%c16_259, %c0_260] : memref<72x78xf32, #tpu.memory_space<vmem>>, vector<8x78xf32>
    tpu.vector_store %arg11[%c16_259, %c0_260], %192 {strides = array<i32>} : memref<72x78xf32, #tpu.memory_space<vmem>>, vector<8x78xf32>,
    %c0_261 = arith.constant 0 : index
    %c10 = arith.constant 10 : index
    %194 = vector.load %arg10[%c0_261, %c10] : memref<8x100xf32, #tpu.memory_space<vmem>>, vector<8x78xf32>
    %c24_262 = arith.constant 24 : index
    %c0_263 = arith.constant 0 : index
    %195 = vector.load %arg11[%c24_262, %c0_263] : memref<72x78xf32, #tpu.memory_space<vmem>>, vector<8x78xf32>
    tpu.vector_store %arg11[%c24_262, %c0_263], %194 {strides = array<i32>} : memref<72x78xf32, #tpu.memory_space<vmem>>, vector<8x78xf32>,
    %c0_264 = arith.constant 0 : index
    %c11_265 = arith.constant 11 : index
    %196 = vector.load %arg10[%c0_264, %c11_265] : memref<8x100xf32, #tpu.memory_space<vmem>>, vector<8x78xf32>
    %c32_266 = arith.constant 32 : index
    %c0_267 = arith.constant 0 : index
    %197 = vector.load %arg11[%c32_266, %c0_267] : memref<72x78xf32, #tpu.memory_space<vmem>>, vector<8x78xf32>
    tpu.vector_store %arg11[%c32_266, %c0_267], %196 {strides = array<i32>} : memref<72x78xf32, #tpu.memory_space<vmem>>, vector<8x78xf32>,
    %c0_268 = arith.constant 0 : index
    %c12_269 = arith.constant 12 : index
    %198 = vector.load %arg10[%c0_268, %c12_269] : memref<8x100xf32, #tpu.memory_space<vmem>>, vector<8x78xf32>
    %c40_270 = arith.constant 40 : index
    %c0_271 = arith.constant 0 : index
    %199 = vector.load %arg11[%c40_270, %c0_271] : memref<72x78xf32, #tpu.memory_space<vmem>>, vector<8x78xf32>
    tpu.vector_store %arg11[%c40_270, %c0_271], %198 {strides = array<i32>} : memref<72x78xf32, #tpu.memory_space<vmem>>, vector<8x78xf32>,
    %c0_272 = arith.constant 0 : index
    %c20_273 = arith.constant 20 : index
    %200 = vector.load %arg10[%c0_272, %c20_273] : memref<8x100xf32, #tpu.memory_space<vmem>>, vector<8x78xf32>
    %c48_274 = arith.constant 48 : index
    %c0_275 = arith.constant 0 : index
    %201 = vector.load %arg11[%c48_274, %c0_275] : memref<72x78xf32, #tpu.memory_space<vmem>>, vector<8x78xf32>
    tpu.vector_store %arg11[%c48_274, %c0_275], %200 {strides = array<i32>} : memref<72x78xf32, #tpu.memory_space<vmem>>, vector<8x78xf32>,
    %c0_276 = arith.constant 0 : index
    %c21_277 = arith.constant 21 : index
    %202 = vector.load %arg10[%c0_276, %c21_277] : memref<8x100xf32, #tpu.memory_space<vmem>>, vector<8x78xf32>
    %c56_278 = arith.constant 56 : index
    %c0_279 = arith.constant 0 : index
    %203 = vector.load %arg11[%c56_278, %c0_279] : memref<72x78xf32, #tpu.memory_space<vmem>>, vector<8x78xf32>
    tpu.vector_store %arg11[%c56_278, %c0_279], %202 {strides = array<i32>} : memref<72x78xf32, #tpu.memory_space<vmem>>, vector<8x78xf32>,
    %c0_280 = arith.constant 0 : index
    %c22 = arith.constant 22 : index
    %204 = vector.load %arg10[%c0_280, %c22] : memref<8x100xf32, #tpu.memory_space<vmem>>, vector<8x78xf32>
    %c64_281 = arith.constant 64 : index
    %c0_282 = arith.constant 0 : index
    %205 = vector.load %arg11[%c64_281, %c0_282] : memref<72x78xf32, #tpu.memory_space<vmem>>, vector<8x78xf32>
    tpu.vector_store %arg11[%c64_281, %c0_282], %204 {strides = array<i32>} : memref<72x78xf32, #tpu.memory_space<vmem>>, vector<8x78xf32>,
    %c0_283 = arith.constant 0 : index
    %c0_284 = arith.constant 0 : index
    %206 = vector.load %arg11[%c0_283, %c0_284] : memref<72x78xf32, #tpu.memory_space<vmem>>, vector<72x78xf32>
    %cst_285 = arith.constant dense<0.000000e+00> : vector<32x78xf32>
    %207 = tpu.matmul %160, %206, %cst_285 {dimension_numbers = #tpu.dot_dimension_numbers<[1], [0], [0], [1], [0, 0, 1, 1], [], []>} : vector<32x72xf32>, vector<72x78xf32>, vector<32x78xf32> -> vector<32x78xf32>
    %208 = vector.broadcast %161 : vector<32x1xf32> to vector<32x78xf32>
    %209 = arith.addf %207, %208 : vector<32x78xf32>
    %cst_286 = arith.constant 0.000000e+00 : f32
    %210 = vector.broadcast %cst_286 : f32 to vector<32x78xf32>
    %211 = arith.maximumf %209, %210 : vector<32x78xf32>
    %212 = vector.broadcast %159 : vector<1x78xf32> to vector<32x78xf32>
    %213 = arith.mulf %211, %212 : vector<32x78xf32>
    %cst_287 = arith.constant dense<0.000000e+00> : vector<32xf32>
    %214 = vector.multi_reduction <add>, %213, %cst_287 [1] : vector<32x78xf32> to vector<32xf32>
    %215 = vector.shape_cast %214 : vector<32xf32> to vector<32x1xf32>
    %c32_288 = arith.constant 32 : index
    %c0_289 = arith.constant 0 : index
    %216 = vector.load %arg12[%c32_288, %c0_289] : memref<80x2xf32, #tpu.memory_space<vmem>>, vector<32x1xf32>
    tpu.vector_store %arg12[%c32_288, %c0_289], %215 {strides = array<i32>} : memref<80x2xf32, #tpu.memory_space<vmem>>, vector<32x1xf32>,
    %c1_290 = arith.constant 1 : index
    %c0_291 = arith.constant 0 : index
    %c0_292 = arith.constant 0 : index
    %217 = vector.load %arg2[%c1_290, %c0_291, %c0_292] : memref<2x8x64xf32, #tpu.memory_space<vmem>>, vector<1x8x8xf32>
    %218 = vector.shape_cast %217 : vector<1x8x8xf32> to vector<8x8xf32>
    %c0_293 = arith.constant 0 : index
    %c11_294 = arith.constant 11 : index
    %219 = vector.load %arg10[%c0_293, %c11_294] : memref<8x100xf32, #tpu.memory_space<vmem>>, vector<8x8xf32>
    tpu.vector_store %arg10[%c0_293, %c11_294], %218 {strides = array<i32>} : memref<8x100xf32, #tpu.memory_space<vmem>>, vector<8x8xf32>,
    %c1_295 = arith.constant 1 : index
    %c0_296 = arith.constant 0 : index
    %c8_297 = arith.constant 8 : index
    %220 = vector.load %arg2[%c1_295, %c0_296, %c8_297] : memref<2x8x64xf32, #tpu.memory_space<vmem>>, vector<1x8x8xf32>
    %221 = vector.shape_cast %220 : vector<1x8x8xf32> to vector<8x8xf32>
    %c0_298 = arith.constant 0 : index
    %c21_299 = arith.constant 21 : index
    %222 = vector.load %arg10[%c0_298, %c21_299] : memref<8x100xf32, #tpu.memory_space<vmem>>, vector<8x8xf32>
    tpu.vector_store %arg10[%c0_298, %c21_299], %221 {strides = array<i32>} : memref<8x100xf32, #tpu.memory_space<vmem>>, vector<8x8xf32>,
    %c1_300 = arith.constant 1 : index
    %c0_301 = arith.constant 0 : index
    %c16_302 = arith.constant 16 : index
    %223 = vector.load %arg2[%c1_300, %c0_301, %c16_302] : memref<2x8x64xf32, #tpu.memory_space<vmem>>, vector<1x8x8xf32>
    %224 = vector.shape_cast %223 : vector<1x8x8xf32> to vector<8x8xf32>
    %c0_303 = arith.constant 0 : index
    %c31_304 = arith.constant 31 : index
    %225 = vector.load %arg10[%c0_303, %c31_304] : memref<8x100xf32, #tpu.memory_space<vmem>>, vector<8x8xf32>
    tpu.vector_store %arg10[%c0_303, %c31_304], %224 {strides = array<i32>} : memref<8x100xf32, #tpu.memory_space<vmem>>, vector<8x8xf32>,
    %c1_305 = arith.constant 1 : index
    %c0_306 = arith.constant 0 : index
    %c24_307 = arith.constant 24 : index
    %226 = vector.load %arg2[%c1_305, %c0_306, %c24_307] : memref<2x8x64xf32, #tpu.memory_space<vmem>>, vector<1x8x8xf32>
    %227 = vector.shape_cast %226 : vector<1x8x8xf32> to vector<8x8xf32>
    %c0_308 = arith.constant 0 : index
    %c41_309 = arith.constant 41 : index
    %228 = vector.load %arg10[%c0_308, %c41_309] : memref<8x100xf32, #tpu.memory_space<vmem>>, vector<8x8xf32>
    tpu.vector_store %arg10[%c0_308, %c41_309], %227 {strides = array<i32>} : memref<8x100xf32, #tpu.memory_space<vmem>>, vector<8x8xf32>,
    %c1_310 = arith.constant 1 : index
    %c0_311 = arith.constant 0 : index
    %c32_312 = arith.constant 32 : index
    %229 = vector.load %arg2[%c1_310, %c0_311, %c32_312] : memref<2x8x64xf32, #tpu.memory_space<vmem>>, vector<1x8x8xf32>
    %230 = vector.shape_cast %229 : vector<1x8x8xf32> to vector<8x8xf32>
    %c0_313 = arith.constant 0 : index
    %c51_314 = arith.constant 51 : index
    %231 = vector.load %arg10[%c0_313, %c51_314] : memref<8x100xf32, #tpu.memory_space<vmem>>, vector<8x8xf32>
    tpu.vector_store %arg10[%c0_313, %c51_314], %230 {strides = array<i32>} : memref<8x100xf32, #tpu.memory_space<vmem>>, vector<8x8xf32>,
    %c1_315 = arith.constant 1 : index
    %c0_316 = arith.constant 0 : index
    %c40_317 = arith.constant 40 : index
    %232 = vector.load %arg2[%c1_315, %c0_316, %c40_317] : memref<2x8x64xf32, #tpu.memory_space<vmem>>, vector<1x8x8xf32>
    %233 = vector.shape_cast %232 : vector<1x8x8xf32> to vector<8x8xf32>
    %c0_318 = arith.constant 0 : index
    %c61_319 = arith.constant 61 : index
    %234 = vector.load %arg10[%c0_318, %c61_319] : memref<8x100xf32, #tpu.memory_space<vmem>>, vector<8x8xf32>
    tpu.vector_store %arg10[%c0_318, %c61_319], %233 {strides = array<i32>} : memref<8x100xf32, #tpu.memory_space<vmem>>, vector<8x8xf32>,
    %c1_320 = arith.constant 1 : index
    %c0_321 = arith.constant 0 : index
    %c48_322 = arith.constant 48 : index
    %235 = vector.load %arg2[%c1_320, %c0_321, %c48_322] : memref<2x8x64xf32, #tpu.memory_space<vmem>>, vector<1x8x8xf32>
    %236 = vector.shape_cast %235 : vector<1x8x8xf32> to vector<8x8xf32>
    %c0_323 = arith.constant 0 : index
    %c71_324 = arith.constant 71 : index
    %237 = vector.load %arg10[%c0_323, %c71_324] : memref<8x100xf32, #tpu.memory_space<vmem>>, vector<8x8xf32>
    tpu.vector_store %arg10[%c0_323, %c71_324], %236 {strides = array<i32>} : memref<8x100xf32, #tpu.memory_space<vmem>>, vector<8x8xf32>,
    %c1_325 = arith.constant 1 : index
    %c0_326 = arith.constant 0 : index
    %c56_327 = arith.constant 56 : index
    %238 = vector.load %arg2[%c1_325, %c0_326, %c56_327] : memref<2x8x64xf32, #tpu.memory_space<vmem>>, vector<1x8x8xf32>
    %239 = vector.shape_cast %238 : vector<1x8x8xf32> to vector<8x8xf32>
    %c0_328 = arith.constant 0 : index
    %c81_329 = arith.constant 81 : index
    %240 = vector.load %arg10[%c0_328, %c81_329] : memref<8x100xf32, #tpu.memory_space<vmem>>, vector<8x8xf32>
    tpu.vector_store %arg10[%c0_328, %c81_329], %239 {strides = array<i32>} : memref<8x100xf32, #tpu.memory_space<vmem>>, vector<8x8xf32>,
    %c0_330 = arith.constant 0 : index
    %c0_331 = arith.constant 0 : index
    %241 = vector.load %arg10[%c0_330, %c0_331] : memref<8x100xf32, #tpu.memory_space<vmem>>, vector<8x78xf32>
    %c0_332 = arith.constant 0 : index
    %c0_333 = arith.constant 0 : index
    %242 = vector.load %arg11[%c0_332, %c0_333] : memref<72x78xf32, #tpu.memory_space<vmem>>, vector<8x78xf32>
    tpu.vector_store %arg11[%c0_332, %c0_333], %241 {strides = array<i32>} : memref<72x78xf32, #tpu.memory_space<vmem>>, vector<8x78xf32>,
    %c0_334 = arith.constant 0 : index
    %c1_335 = arith.constant 1 : index
    %243 = vector.load %arg10[%c0_334, %c1_335] : memref<8x100xf32, #tpu.memory_space<vmem>>, vector<8x78xf32>
    %c8_336 = arith.constant 8 : index
    %c0_337 = arith.constant 0 : index
    %244 = vector.load %arg11[%c8_336, %c0_337] : memref<72x78xf32, #tpu.memory_space<vmem>>, vector<8x78xf32>
    tpu.vector_store %arg11[%c8_336, %c0_337], %243 {strides = array<i32>} : memref<72x78xf32, #tpu.memory_space<vmem>>, vector<8x78xf32>,
    %c0_338 = arith.constant 0 : index
    %c2_339 = arith.constant 2 : index
    %245 = vector.load %arg10[%c0_338, %c2_339] : memref<8x100xf32, #tpu.memory_space<vmem>>, vector<8x78xf32>
    %c16_340 = arith.constant 16 : index
    %c0_341 = arith.constant 0 : index
    %246 = vector.load %arg11[%c16_340, %c0_341] : memref<72x78xf32, #tpu.memory_space<vmem>>, vector<8x78xf32>
    tpu.vector_store %arg11[%c16_340, %c0_341], %245 {strides = array<i32>} : memref<72x78xf32, #tpu.memory_space<vmem>>, vector<8x78xf32>,
    %c0_342 = arith.constant 0 : index
    %c10_343 = arith.constant 10 : index
    %247 = vector.load %arg10[%c0_342, %c10_343] : memref<8x100xf32, #tpu.memory_space<vmem>>, vector<8x78xf32>
    %c24_344 = arith.constant 24 : index
    %c0_345 = arith.constant 0 : index
    %248 = vector.load %arg11[%c24_344, %c0_345] : memref<72x78xf32, #tpu.memory_space<vmem>>, vector<8x78xf32>
    tpu.vector_store %arg11[%c24_344, %c0_345], %247 {strides = array<i32>} : memref<72x78xf32, #tpu.memory_space<vmem>>, vector<8x78xf32>,
    %c0_346 = arith.constant 0 : index
    %c11_347 = arith.constant 11 : index
    %249 = vector.load %arg10[%c0_346, %c11_347] : memref<8x100xf32, #tpu.memory_space<vmem>>, vector<8x78xf32>
    %c32_348 = arith.constant 32 : index
    %c0_349 = arith.constant 0 : index
    %250 = vector.load %arg11[%c32_348, %c0_349] : memref<72x78xf32, #tpu.memory_space<vmem>>, vector<8x78xf32>
    tpu.vector_store %arg11[%c32_348, %c0_349], %249 {strides = array<i32>} : memref<72x78xf32, #tpu.memory_space<vmem>>, vector<8x78xf32>,
    %c0_350 = arith.constant 0 : index
    %c12_351 = arith.constant 12 : index
    %251 = vector.load %arg10[%c0_350, %c12_351] : memref<8x100xf32, #tpu.memory_space<vmem>>, vector<8x78xf32>
    %c40_352 = arith.constant 40 : index
    %c0_353 = arith.constant 0 : index
    %252 = vector.load %arg11[%c40_352, %c0_353] : memref<72x78xf32, #tpu.memory_space<vmem>>, vector<8x78xf32>
    tpu.vector_store %arg11[%c40_352, %c0_353], %251 {strides = array<i32>} : memref<72x78xf32, #tpu.memory_space<vmem>>, vector<8x78xf32>,
    %c0_354 = arith.constant 0 : index
    %c20_355 = arith.constant 20 : index
    %253 = vector.load %arg10[%c0_354, %c20_355] : memref<8x100xf32, #tpu.memory_space<vmem>>, vector<8x78xf32>
    %c48_356 = arith.constant 48 : index
    %c0_357 = arith.constant 0 : index
    %254 = vector.load %arg11[%c48_356, %c0_357] : memref<72x78xf32, #tpu.memory_space<vmem>>, vector<8x78xf32>
    tpu.vector_store %arg11[%c48_356, %c0_357], %253 {strides = array<i32>} : memref<72x78xf32, #tpu.memory_space<vmem>>, vector<8x78xf32>,
    %c0_358 = arith.constant 0 : index
    %c21_359 = arith.constant 21 : index
    %255 = vector.load %arg10[%c0_358, %c21_359] : memref<8x100xf32, #tpu.memory_space<vmem>>, vector<8x78xf32>
    %c56_360 = arith.constant 56 : index
    %c0_361 = arith.constant 0 : index
    %256 = vector.load %arg11[%c56_360, %c0_361] : memref<72x78xf32, #tpu.memory_space<vmem>>, vector<8x78xf32>
    tpu.vector_store %arg11[%c56_360, %c0_361], %255 {strides = array<i32>} : memref<72x78xf32, #tpu.memory_space<vmem>>, vector<8x78xf32>,
    %c0_362 = arith.constant 0 : index
    %c22_363 = arith.constant 22 : index
    %257 = vector.load %arg10[%c0_362, %c22_363] : memref<8x100xf32, #tpu.memory_space<vmem>>, vector<8x78xf32>
    %c64_364 = arith.constant 64 : index
    %c0_365 = arith.constant 0 : index
    %258 = vector.load %arg11[%c64_364, %c0_365] : memref<72x78xf32, #tpu.memory_space<vmem>>, vector<8x78xf32>
    tpu.vector_store %arg11[%c64_364, %c0_365], %257 {strides = array<i32>} : memref<72x78xf32, #tpu.memory_space<vmem>>, vector<8x78xf32>,
    %c0_366 = arith.constant 0 : index
    %c0_367 = arith.constant 0 : index
    %259 = vector.load %arg11[%c0_366, %c0_367] : memref<72x78xf32, #tpu.memory_space<vmem>>, vector<72x78xf32>
    %cst_368 = arith.constant dense<0.000000e+00> : vector<32x78xf32>
    %260 = tpu.matmul %160, %259, %cst_368 {dimension_numbers = #tpu.dot_dimension_numbers<[1], [0], [0], [1], [0, 0, 1, 1], [], []>} : vector<32x72xf32>, vector<72x78xf32>, vector<32x78xf32> -> vector<32x78xf32>
    %261 = vector.broadcast %161 : vector<32x1xf32> to vector<32x78xf32>
    %262 = arith.addf %260, %261 : vector<32x78xf32>
    %cst_369 = arith.constant 0.000000e+00 : f32
    %263 = vector.broadcast %cst_369 : f32 to vector<32x78xf32>
    %264 = arith.maximumf %262, %263 : vector<32x78xf32>
    %265 = vector.broadcast %159 : vector<1x78xf32> to vector<32x78xf32>
    %266 = arith.mulf %264, %265 : vector<32x78xf32>
    %cst_370 = arith.constant dense<0.000000e+00> : vector<32xf32>
    %267 = vector.multi_reduction <add>, %266, %cst_370 [1] : vector<32x78xf32> to vector<32xf32>
    %268 = vector.shape_cast %267 : vector<32xf32> to vector<32x1xf32>
    %c32_371 = arith.constant 32 : index
    %c1_372 = arith.constant 1 : index
    %269 = vector.load %arg12[%c32_371, %c1_372] : memref<80x2xf32, #tpu.memory_space<vmem>>, vector<32x1xf32>
    tpu.vector_store %arg12[%c32_371, %c1_372], %268 {strides = array<i32>} : memref<80x2xf32, #tpu.memory_space<vmem>>, vector<32x1xf32>,
    %c0_373 = arith.constant 0 : index
    %c0_374 = arith.constant 0 : index
    %c0_375 = arith.constant 0 : index
    %270 = vector.load %arg5[%c0_373, %c0_374, %c0_375] : memref<1x16x2xf32, #tpu.memory_space<vmem>>, vector<1x16x2xf32>
    %271 = vector.shape_cast %270 : vector<1x16x2xf32> to vector<16x2xf32>
    %c64_376 = arith.constant 64 : index
    %c0_377 = arith.constant 0 : index
    %272 = vector.load %arg12[%c64_376, %c0_377] : memref<80x2xf32, #tpu.memory_space<vmem>>, vector<16x2xf32>
    tpu.vector_store %arg12[%c64_376, %c0_377], %271 {strides = array<i32>} : memref<80x2xf32, #tpu.memory_space<vmem>>, vector<16x2xf32>,
    %c0_378 = arith.constant 0 : index
    %c0_379 = arith.constant 0 : index
    %273 = vector.load %arg12[%c0_378, %c0_379] : memref<80x2xf32, #tpu.memory_space<vmem>>, vector<80x2xf32>
    %c64_380 = arith.constant 64 : index
    %c0_381 = arith.constant 0 : index
    %274 = vector.load %arg6[%c64_380, %c0_381] : memref<224x81xf32, #tpu.memory_space<vmem>>, vector<32x80xf32>
    %c64_382 = arith.constant 64 : index
    %c80_383 = arith.constant 80 : index
    %275 = vector.load %arg6[%c64_382, %c80_383] : memref<224x81xf32, #tpu.memory_space<vmem>>, vector<32x1xf32>
    %cst_384 = arith.constant dense<0.000000e+00> : vector<32x2xf32>
    %276 = tpu.matmul %274, %273, %cst_384 {dimension_numbers = #tpu.dot_dimension_numbers<[1], [0], [0], [1], [0, 0, 1, 1], [], []>} : vector<32x80xf32>, vector<80x2xf32>, vector<32x2xf32> -> vector<32x2xf32>
    %277 = vector.broadcast %275 : vector<32x1xf32> to vector<32x2xf32>
    %278 = arith.addf %276, %277 : vector<32x2xf32>
    %cst_385 = arith.constant 0.000000e+00 : f32
    %279 = vector.broadcast %cst_385 : f32 to vector<32x2xf32>
    %280 = arith.maximumf %278, %279 : vector<32x2xf32>
    %c96_386 = arith.constant 96 : index
    %c0_387 = arith.constant 0 : index
    %281 = vector.load %arg6[%c96_386, %c0_387] : memref<224x81xf32, #tpu.memory_space<vmem>>, vector<32x32xf32>
    %c96_388 = arith.constant 96 : index
    %c32_389 = arith.constant 32 : index
    %282 = vector.load %arg6[%c96_388, %c32_389] : memref<224x81xf32, #tpu.memory_space<vmem>>, vector<32x1xf32>
    %cst_390 = arith.constant dense<0.000000e+00> : vector<32x2xf32>
    %283 = tpu.matmul %281, %280, %cst_390 {dimension_numbers = #tpu.dot_dimension_numbers<[1], [0], [0], [1], [0, 0, 1, 1], [], []>} : vector<32x32xf32>, vector<32x2xf32>, vector<32x2xf32> -> vector<32x2xf32>
    %284 = vector.broadcast %282 : vector<32x1xf32> to vector<32x2xf32>
    %285 = arith.addf %283, %284 : vector<32x2xf32>
    %cst_391 = arith.constant 0.000000e+00 : f32
    %286 = vector.broadcast %cst_391 : f32 to vector<32x2xf32>
    %287 = arith.maximumf %285, %286 : vector<32x2xf32>
    %c128_392 = arith.constant 128 : index
    %c0_393 = arith.constant 0 : index
    %288 = vector.load %arg6[%c128_392, %c0_393] : memref<224x81xf32, #tpu.memory_space<vmem>>, vector<32x32xf32>
    %c128_394 = arith.constant 128 : index
    %c32_395 = arith.constant 32 : index
    %289 = vector.load %arg6[%c128_394, %c32_395] : memref<224x81xf32, #tpu.memory_space<vmem>>, vector<32x1xf32>
    %cst_396 = arith.constant dense<0.000000e+00> : vector<32x2xf32>
    %290 = tpu.matmul %288, %287, %cst_396 {dimension_numbers = #tpu.dot_dimension_numbers<[1], [0], [0], [1], [0, 0, 1, 1], [], []>} : vector<32x32xf32>, vector<32x2xf32>, vector<32x2xf32> -> vector<32x2xf32>
    %291 = vector.broadcast %289 : vector<32x1xf32> to vector<32x2xf32>
    %292 = arith.addf %290, %291 : vector<32x2xf32>
    %cst_397 = arith.constant 0.000000e+00 : f32
    %293 = vector.broadcast %cst_397 : f32 to vector<32x2xf32>
    %294 = arith.maximumf %292, %293 : vector<32x2xf32>
    %c160_398 = arith.constant 160 : index
    %c0_399 = arith.constant 0 : index
    %295 = vector.load %arg6[%c160_398, %c0_399] : memref<224x81xf32, #tpu.memory_space<vmem>>, vector<64x32xf32>
    %c160_400 = arith.constant 160 : index
    %c32_401 = arith.constant 32 : index
    %296 = vector.load %arg6[%c160_400, %c32_401] : memref<224x81xf32, #tpu.memory_space<vmem>>, vector<64x1xf32>
    %cst_402 = arith.constant dense<0.000000e+00> : vector<64x2xf32>
    %297 = tpu.matmul %295, %294, %cst_402 {dimension_numbers = #tpu.dot_dimension_numbers<[1], [0], [0], [1], [0, 0, 1, 1], [], []>} : vector<64x32xf32>, vector<32x2xf32>, vector<64x2xf32> -> vector<64x2xf32>
    %298 = vector.broadcast %296 : vector<64x1xf32> to vector<64x2xf32>
    %299 = arith.addf %297, %298 : vector<64x2xf32>
    %300 = math.tanh %299 : vector<64x2xf32>
    %c0_403 = arith.constant 0 : index
    %c0_404 = arith.constant 0 : index
    %c0_405 = arith.constant 0 : index
    %301 = vector.load %arg7[%c0_403, %c0_404, %c0_405] : memref<1x64x2xf32, #tpu.memory_space<vmem>>, vector<1x64x2xf32>
    %302 = vector.shape_cast %301 : vector<1x64x2xf32> to vector<64x2xf32>
    %303 = vector.shape_cast %300 : vector<64x2xf32> to vector<1x64x2xf32>
    tpu.vector_store %arg7[%c0_403, %c0_404, %c0_405], %303 {strides = array<i32>} : memref<1x64x2xf32, #tpu.memory_space<vmem>>, vector<1x64x2xf32>,
    return
  }
  func.func @transform_0(%arg0: i32) -> (i32, i32, i32) {
    %c0_i32 = arith.constant 0 : i32
    %c0_i32_0 = arith.constant 0 : i32
    %c0_i32_1 = arith.constant 0 : i32
    return %arg0, %c0_i32, %c0_i32_0 : i32, i32, i32
  }
  func.func @transform_1(%arg0: i32) -> (i32, i32, i32) {
    %c0_i32 = arith.constant 0 : i32
    %c0_i32_0 = arith.constant 0 : i32
    %c0_i32_1 = arith.constant 0 : i32
    return %arg0, %c0_i32, %c0_i32_0 : i32, i32, i32
  }
  func.func @transform_2(%arg0: i32) -> (i32, i32) {
    %c0_i32 = arith.constant 0 : i32
    %c0_i32_0 = arith.constant 0 : i32
    %c0_i32_1 = arith.constant 0 : i32
    return %c0_i32, %c0_i32_0 : i32, i32
  }
  func.func @transform_3(%arg0: i32) -> (i32, i32) {
    %c0_i32 = arith.constant 0 : i32
    %c0_i32_0 = arith.constant 0 : i32
    %c0_i32_1 = arith.constant 0 : i32
    return %c0_i32, %c0_i32_0 : i32, i32
  }
  func.func @transform_4(%arg0: i32) -> (i32, i32, i32) {
    %c0_i32 = arith.constant 0 : i32
    %c0_i32_0 = arith.constant 0 : i32
    %c0_i32_1 = arith.constant 0 : i32
    return %arg0, %c0_i32, %c0_i32_0 : i32, i32, i32
  }
  func.func @transform_5(%arg0: i32) -> (i32, i32) {
    %c0_i32 = arith.constant 0 : i32
    %c0_i32_0 = arith.constant 0 : i32
    %c0_i32_1 = arith.constant 0 : i32
    return %c0_i32, %c0_i32_0 : i32, i32
  }
  func.func @transform_6(%arg0: i32) -> (i32, i32, i32) {
    %c0_i32 = arith.constant 0 : i32
    %c0_i32_0 = arith.constant 0 : i32
    %c0_i32_1 = arith.constant 0 : i32
    return %arg0, %c0_i32, %c0_i32_0 : i32, i32, i32
  }
}

</mosaic_0001>

<bundles_post_ra>
// kernel: tpu_custom_call.1
= control target key start
LH: loop header
LB: loop body
LE: loop exit
PB: predicated region body
PF: predicated region fallthrough
CT: control target
= control target key end

     0   :  { %s3140_s21 = smov 0   ;;  %s3854_s0 = inlined_call_operand.vmem [shape: f32[4,4,256], index: 0, kind: input, shape index: {}]   ;;  %s3855_s1 = inlined_call_operand.vmem [shape: f32[4,8,64], index: 1, kind: input, shape index: {}]   ;;  %s3856_s2 = inlined_call_operand.vmem [shape: f32[1,286], index: 2, kind: input, shape index: {}]   ;;  %s3857_s3 = inlined_call_operand.vmem [shape: f32[1,78], index: 3, kind: input, shape index: {}]   ;;  %s3858_s4 = inlined_call_operand.vmem [shape: f32[2,16,2], index: 4, kind: input, shape index: {}]   ;;  %s3859_s5 = inlined_call_operand.vmem [shape: f32[224,81], index: 5, kind: input, shape index: {}]   ;;  %s3860_s6 = inlined_call_operand.vmem [shape: f32[2,64,2], index: 6, kind: output, shape index: {}]  }
   0x1 LB: > { %s3146_s22 = sadd.s32 4294967295, %s3065_s21   ;;  %p2541_p0 = scmp.ge.s32.totalorder %s3065_s21, 1  ;;  %s3065_s21 = sphi %s3140_s21, %s16_s21  }
   0x2   : > { %p235_p1 = scmp.lt.s32.totalorder %s3065_s21, 3 }
   0x4   : > { %p236_p2 = pnand %p2541_p0, %p235_p1 }
   0x5   : > { %s2542_s23 = sshll.u32 (!%p236_p2), %s3146_s22, 1  ;;  %v3067_v0 = vmov (!%p236_p2), 0.0   ;;  %s3068_s28 = smov (!%p236_p2), 23   ;;  %vm305_vm0 = vcmask (!%p236_p2), 551936   ;;  %vm1414_vm1 = vcmask (!%p236_p2), 818176   ;;  %vm312_vm2 = vcmask (!%p236_p2), 281752  }
   0x6   : > { %239 = sbr.rel (%p236_p2) target bundleno = 1730 (0x6c2), region = 44  ;;  %p277_p3 = scmp.lt.s32.totalorder (!%p236_p2), %s2542_s23, 3  ;;  %304 = vst [vmem:[#allocation2] sm:$0xff] (!%p236_p2), %v3067_v0  ;;  %721 = vmatprep.mubr.f32.mxu0 (!%p236_p2), %v3067_v0  ;;  %1250 = vmatprep.mubr.f32.mxu1 (!%p236_p2), %v3067_v0  ;;  %306 = vst.msk [vmem:[#allocation2 + $0x8] sm:$0xf] (!%p236_p2), %vm305_vm0, %v3067_v0  ;;  %vm319_vm3 = vcmask (!%p236_p2), 429352  }
   0x7   : > { %s3069_s29 = smov (!%p236_p2), 19   ;;  %s3070_s30 = smov (!%p236_p2), 25   ;;  %1415 = vst.msk [vmem:[#allocation4] sm:$0xff] (!%p236_p2), %vm1414_vm1, %v3067_v0  ;;  %vm326_vm4 = vcmask (!%p236_p2), 576952   ;;  %vm333_vm5 = vcmask (!%p236_p2), 724552   ;;  %vm340_vm6 = vcmask (!%p236_p2), 872152  }
   0x8   : > { %s3071_s7 = smov (!%p236_p2), 21   ;;  %s3072_s8 = smov (!%p236_p2), 27   ;;  %vm357_vm7 = vcmask (!%p236_p2), 1044472   ;;  %vm358_vm8 = vcmask (!%p236_p2), 121860   ;;  %vm354_vm9 = vcmask (!%p236_p2), 252928   ;;  %vm3861_vm10 = vcmask (!%p236_p2), 1019752  }
   0x9   : > { %s3073_s9 = smov (!%p236_p2), 31   ;;  %s3074_s10 = smov (!%p236_p2), 33   ;;  %vm3252_vm11 = vmor (!%p236_p2), %vm358_vm8, %vm357_vm7  ;;  %vm3862_vm12 = vcmask (!%p236_p2), 265352   ;;  %vm373_vm13 = vcmask (!%p236_p2), 412952   ;;  %vm3863_vm14 = vcmask (!%p236_p2), 560552   ;;  %vm3864_vm15 = vcmask (!%p236_p2), 708152  }
   0xa   : > { %s3075_s11 = smov (!%p236_p2), 29   ;;  %s3076_s12 = smov (!%p236_p2), 37   ;;  %vm411_vm0 = vcmask (!%p236_p2), 1044456   ;;  %vm412_vm1 = vcmask (!%p236_p2), 105476   ;;  %vm394_vm7 = vcmask (!%p236_p2), 855752   ;;  %vm408_vm8 = vcmask (!%p236_p2), 367616  }
   0xb   : > { %s3077_s13 = smov (!%p236_p2), 35   ;;  %s3078_s14 = smov (!%p236_p2), 45  }
   0xc   : > { %s3079_s15 = smov (!%p236_p2), 39   ;;  %s3080_s16 = smov (!%p236_p2), 41  }
   0xd   : > { %s3874_s23 = smov (!%p277_p3, %s2542_s23), 3  ;;  %s3081_s17 = smov 43  }
   0xe   : > { %s2628_s24 = sshll.u32 %s3874_s23, 3  ;;  %s3082_s18 = smov 47  }
   0xf   : > { %s3162_s27 = scalar_lea.vmem %s3854_s0, %s2628_s24  ;;  %s3083_s19 = smov 49  }
  0x10   : > { %v321_v1 = vld [vmem:[%s3162_s27] sm:$0xf]  ;;  %v375_v9 = vld [vmem:[%s3162_s27 + $0x4] sm:$0xf]  ;;  %v2562_v17 = vld [vmem:[%s3162_s27 + $0x8] sm:$0xf]  ;;  %s3217_s26 = scalar_lea.vmem %s3855_s1, %s2628_s24 }
  0x11   : > { %v307_v2 = vld [vmem:[%s3162_s27] sm:$0xf]  ;;  %323 = vrot.lane.b32.xlu1 %v321_v1, %s3068_s28  ;;  %v368_v10 = vld [vmem:[%s3162_s27 + $0x4] sm:$0xf]  ;;  %v2563_v18 = vld [vmem:[%s3162_s27 + $0x8] sm:$0xf] }
  0x12   : > { %309 = vrot.lane.b32.xlu0 %v307_v2, %s3069_s29  ;;  %v328_v3 = vld [vmem:[%s3162_s27] sm:$0xf]  ;;  %v403_v11 = vld [vmem:[%s3162_s27 + $0x4] sm:$0xf]  ;;  %v2564_v19 = vld [vmem:[%s3162_s27 + $0x8] sm:$0xf] }
  0x13   : > { %v314_v4 = vld [vmem:[%s3162_s27] sm:$0xf]  ;;  %v382_v12 = vld [vmem:[%s3162_s27 + $0x4] sm:$0xf]  ;;  %v2565_v20 = vld [vmem:[%s3162_s27 + $0x8] sm:$0xf] }
  0x14   : > { %v335_v5 = vld [vmem:[%s3162_s27] sm:$0xf]  ;;  %v389_v13 = vld [vmem:[%s3162_s27 + $0x4] sm:$0xf]  ;;  %v2568_v21 = vld [vmem:[%s3162_s27 + $0x8] sm:$0xf] }
  0x15   : > { %330 = vrot.lane.b32.xlu1 %v328_v3, %s3070_s30  ;;  %v349_v6 = vld [vmem:[%s3162_s27] sm:$0xf]  ;;  %v396_v14 = vld [vmem:[%s3162_s27 + $0x4] sm:$0xf]  ;;  %v2566_v22 = vld [vmem:[%s3162_s27 + $0x8] sm:$0xf] }
  0x16   : > { %316 = vrot.lane.b32.xlu0 %v314_v4, %s3071_s7  ;;  %v361_v7 = vld [vmem:[%s3162_s27] sm:$0xf]  ;;  %v415_v15 = vld [vmem:[%s3162_s27 + $0x4] sm:$0xf]  ;;  %v2567_v23 = vld [vmem:[%s3162_s27 + $0x8] sm:$0xf] }
  0x17   : > { %v342_v8 = vld [vmem:[%s3162_s27] sm:$0xf]  ;;  %v422_v16 = vld [vmem:[%s3162_s27 + $0x4] sm:$0xf]  ;;  %v2569_v24 = vld [vmem:[%s3162_s27 + $0x8] sm:$0xf] }
  0x18   : > { %v1416_v25 = vld [vmem:[%s3217_s26] sm:$0xff]  ;;  %v2570_v26 = vld [vmem:[%s3162_s27 + $0xc] sm:$0xf]  ;;  %s3085_s23 = smov 13   ;;  %s3086_s24 = smov 15  }
  0x19   : > { %337 = vrot.lane.b32.xlu1 %v335_v5, %s3072_s8  ;;  %v2571_v27 = vld [vmem:[%s3162_s27 + $0xc] sm:$0xf]  ;;  %p289_p4 = scmp.lt.s32.totalorder %s3146_s22, 1 }
  0x1a   : > { %351 = vrot.lane.b32.xlu0 %v349_v6, %s3073_s9  ;;  %v2572_v28 = vld [vmem:[%s3162_s27 + $0xc] sm:$0xf] }
  0x1b   : > { %v2575_v29 = vld [vmem:[%s3162_s27 + $0xc] sm:$0xf]  ;;  %s3876_s22 = smov (!%p289_p4, %s3146_s22), 1 }
  0x1c   : > { %v2573_v30 = vld [vmem:[%s3162_s27 + $0xc] sm:$0xf] }
  0x1d   : > { %363 = vrot.lane.b32.xlu1 %v361_v7, %s3074_s10  ;;  %v2574_v31 = vld [vmem:[%s3162_s27 + $0xc] sm:$0xf] }
  0x1e   : > { %344 = vrot.lane.b32.xlu0 %v342_v8, %s3075_s11  ;;  %v2576_v32 = vld [vmem:[%s3162_s27 + $0xc] sm:$0xf] }
  0x1f   : > { %v2577_v33 = vld [vmem:[%s3162_s27 + $0xc] sm:$0xf]  ;;  %s3088_s27 = smov 126  }
  0x20   : > { %v2594_v34 = vld [vmem:[%s3217_s26 + $0x8] sm:$0xff] }
  0x21   : > { %377 = vrot.lane.b32.xlu1 %v375_v9, %s3076_s12 }
  0x22   : > { %370 = vrot.lane.b32.xlu0 %v368_v10, %s3077_s13 }
  0x25   : > { %405 = vrot.lane.b32.xlu1 %v403_v11, %s3078_s14 }
  0x26   : > { %384 = vrot.lane.b32.xlu0 %v382_v12, %s3079_s15 }
  0x29   : > { %398 = vrot.lane.b32.xlu1 %v396_v14, %s3081_s17 }
  0x2a   : > { %391 = vrot.lane.b32.xlu0 %v389_v13, %s3080_s16 }
  0x2d   : > { %424 = vrot.lane.b32.xlu1 %v422_v16, %s3083_s19 }
  0x2e   : > { %417 = vrot.lane.b32.xlu0 %v415_v15, %s3082_s18 }
  0x31   : > { %906 = vrot.lane.b32.xlu1 %v2563_v18, %s3071_s7 }
  0x32   : > { %900 = vrot.lane.b32.xlu0 %v2562_v17, %s3069_s29 }
  0x35   : > { %918 = vrot.lane.b32.xlu1 %v2565_v20, %s3070_s30 }
  0x36   : > { %912 = vrot.lane.b32.xlu0 %v2564_v19, %s3068_s28 }
  0x39   : > { %924 = vrot.lane.b32.xlu1 %v2566_v22, %s3072_s8  ;;  %s3087_s8 = smov 17  }
  0x3a   : > { %936 = vrot.lane.b32.xlu0 %v2568_v21, %s3073_s9  ;;  %s3084_s9 = smov 11  }
  0x3d   : > { %944 = vrot.lane.b32.xlu1 %v2569_v24, %s3074_s10  ;;  %s3093_s10 = smov 109  }
  0x3e   : > { %930 = vrot.lane.b32.xlu0 %v2567_v23, %s3075_s11  ;;  %s3094_s11 = smov 92  }
  0x41   : > { %950 = vrot.lane.b32.xlu1 %v2570_v26, %s3077_s13  ;;  %s3096_s13 = smov 118  }
  0x42   : > { %1418 = vrot.lane.b32.xlu0 %v1416_v25, %s3084_s9 }
  0x45   : > { %956 = vrot.lane.b32.xlu1 %v2571_v27, %s3076_s12  ;;  %s3095_s12 = smov 90  }
  0x46   : > { %1425 = vrot.lane.b32.xlu0 %v1416_v25, %s3085_s23 }
  0x49   : > { %962 = vrot.lane.b32.xlu1 %v2572_v28, %s3079_s15  ;;  %s3098_s15 = smov 116  }
  0x4a   : > { %1432 = vrot.lane.b32.xlu0 %v1416_v25, %s3086_s24 }
  0x4d   : > { %1439 = vrot.lane.b32.xlu1 %v1416_v25, %s3087_s8 }
  0x4e   : > { %980 = vrot.lane.b32.xlu0 %v2575_v29, %s3078_s14  ;;  %s3097_s14 = smov 117  }
  0x51   : > { %1446 = vrot.lane.b32.xlu1 %v1416_v25, %s3069_s29 }
  0x52   : > { %968 = vrot.lane.b32.xlu0 %v2573_v30, %s3080_s16  ;;  %s3099_s16 = smov 107  }
  0x55   : > { %1453 = vrot.lane.b32.xlu1 %v1416_v25, %s3071_s7 }
  0x56   : > { %974 = vrot.lane.b32.xlu0 %v2574_v31, %s3081_s17  ;;  %s3100_s17 = smov 106  }
  0x59   : > { %988 = vrot.lane.b32.xlu1 %v2576_v32, %s3082_s18 }
  0x5a   : > { %1460 = vrot.lane.b32.xlu0 %v1416_v25, %s3068_s28 }
  0x5d   : > { %994 = vrot.lane.b32.xlu1 %v2577_v33, %s3083_s19 }
  0x5e   : > { %1467 = vrot.lane.b32.xlu0 %v1416_v25, %s3070_s30 }
  0x61   : > { %1685 = vrot.lane.b32.xlu1 %v2594_v34, %s3085_s23 }
  0x62   : > { %1679 = vrot.lane.b32.xlu0 %v2594_v34, %s3084_s9 }
  0x65   : > { %1697 = vrot.lane.b32.xlu1 %v2594_v34, %s3087_s8 }
  0x66   : > { %1691 = vrot.lane.b32.xlu0 %v2594_v34, %s3086_s24 }
  0x69   : > { %1709 = vrot.lane.b32.xlu1 %v2594_v34, %s3071_s7  ;;  %s3092_s7 = smov 91  }
  0x6a   : > { %1703 = vrot.lane.b32.xlu0 %v2594_v34, %s3069_s29  ;;  %s3090_s29 = smov 108  }
  0x6d   : > { %1721 = vrot.lane.b32.xlu1 %v2594_v34, %s3070_s30  ;;  %s3091_s30 = smov 110  }
  0x6e   : > { %1715 = vrot.lane.b32.xlu0 %v2594_v34, %s3068_s28  ;;  %s3089_s28 = smov 127  }
  0x83   : > { %v324_v35 = vpop.permute.xlu1 %323 }
  0x84   : > { %v310_v36 = vpop.permute.xlu0 %309 }
  0x85   : > { %313 = vst.msk [vmem:[#allocation2] sm:$0xf] %vm312_vm2, %v310_v36 }
  0x87   : > { %v331_v37 = vpop.permute.xlu1 %330 }
  0x88   : > { %v317_v38 = vpop.permute.xlu0 %316 }
  0x89   : > { %320 = vst.msk [vmem:[#allocation2] sm:$0xf] %vm319_vm3, %v317_v38 }
  0x8a   : > { %327 = vst.msk [vmem:[#allocation2] sm:$0xf] %vm326_vm4, %v324_v35 }
  0x8b   : > { %334 = vst.msk [vmem:[#allocation2] sm:$0xf] %vm333_vm5, %v331_v37  ;;  %v338_v39 = vpop.permute.xlu1 %337 }
  0x8c   : > { %v352_v40 = vpop.permute.xlu0 %351  ;;  %341 = vst.msk [vmem:[#allocation2] sm:$0xf] %vm340_vm6, %v338_v39 }
  0x8d   : > { %v353_v41 = vrot.slane %v352_v40, 4 }
  0x8f   : > { %v364_v43 = vpop.permute.xlu1 %363  ;;  %v355_v45 = vsel %vm354_vm9, %v353_v41, %v352_v40 }
  0x90   : > { %v345_v44 = vpop.permute.xlu0 %344 }
  0x91   : > { %348 = vst.msk [vmem:[#allocation2] sm:$0xf] %vm3861_vm10, %v345_v44  ;;  %vm401_vm10 = vcmask 1003352  }
  0x92   : > { %360 = vst.msk [vmem:[#allocation2] sm:$0xff] %vm3252_vm11, %v355_v45 }
  0x93   : > { %367 = vst.msk [vmem:[#allocation2 + $0x4] sm:$0xf] %vm3862_vm12, %v364_v43  ;;  %v378_v46 = vpop.permute.xlu1 %377  ;;  %vm3264_vm12 = vmor %vm412_vm1, %vm411_vm0  ;;  %vm436_vm0 = vcmask 240640   ;;  %vm1449_vm1 = vcmask 482712  }
  0x94   : > { %v371_v47 = vpop.permute.xlu0 %370 }
  0x95   : > { %374 = vst.msk [vmem:[#allocation2 + $0x4] sm:$0xf] %vm373_vm13, %v371_v47 }
  0x96   : > { %381 = vst.msk [vmem:[#allocation2 + $0x4] sm:$0xf] %vm3863_vm14, %v378_v46  ;;  %vm420_vm14 = vcmask 248952  }
  0x97   : > { %v406_v48 = vpop.permute.xlu1 %405 }
  0x98   : > { %v385_v49 = vpop.permute.xlu0 %384  ;;  %v407_v50 = vrot.slane %v406_v48, 4 }
  0x99   : > { %388 = vst.msk [vmem:[#allocation2 + $0x4] sm:$0xf] %vm3864_vm15, %v385_v49  ;;  %vm427_vm15 = vcmask 396552  }
  0x9a   : > { %v409_v54 = vsel %vm408_vm8, %v407_v50, %v406_v48 }
  0x9b   : > { %v399_v53 = vpop.permute.xlu1 %398 }
  0x9c   : > { %v392_v51 = vpop.permute.xlu0 %391 }
  0x9d   : > { %395 = vst.msk [vmem:[#allocation2 + $0x4] sm:$0xf] %vm394_vm7, %v392_v51 }
  0x9e   : > { %402 = vst.msk [vmem:[#allocation2 + $0x4] sm:$0xf] %vm401_vm10, %v399_v53 }
  0x9f   : > { %414 = vst.msk [vmem:[#allocation2 + $0x4] sm:$0xff] %vm3264_vm12, %v409_v54  ;;  %v425_v56 = vpop.permute.xlu1 %424 }
  0xa0   : > { %v418_v55 = vpop.permute.xlu0 %417 }
  0xa1   : > { %421 = vst.msk [vmem:[#allocation2 + $0x8] sm:$0xf] %vm420_vm14, %v418_v55 }
  0xa2   : > { %428 = vst.msk [vmem:[#allocation2 + $0x8] sm:$0xf] %vm427_vm15, %v425_v56 }
  0xa3   : > { %v907_v58 = vpop.permute.xlu1 %906 }
  0xa4   : > { %v901_v57 = vpop.permute.xlu0 %900 }
  0xa6   : > { %v429_v59 = vld [vmem:[#allocation2] sm:$0xff] }
  0xa7   : > { %434 = vst [vmem:[#allocation3] sm:$0xf] %v429_v59  ;;  %903 = vst.msk [vmem:[#allocation2] sm:$0xf] %vm312_vm2, %v901_v57  ;;  %465 = vrot.lane.b32.xlu1 %v429_v59, %s3088_s27  ;;  %446 = vrot.lane.b32.xlu0 %v429_v59, %s3089_s28  ;;  %v3278_v60 = vcombine.high %v429_v59, %v429_v59  ;;  %v919_v62 = vpop.permute.xlu1 %918  ;;  %vm3869_vm2 = vcmask 1019752   ;;  %v442_v7 = vcombine.low %v429_v59, %v429_v59 }
  0xa8   : > { %909 = vst.msk [vmem:[#allocation2] sm:$0xf] %vm319_vm3, %v907_v58  ;;  %v913_v61 = vpop.permute.xlu0 %912  ;;  %vm1421_vm3 = vcmask 154712  }
  0xa9   : > { %v430_v63 = vld [vmem:[#allocation2 + $0x8] sm:$0xf]  ;;  %915 = vst.msk [vmem:[#allocation2] sm:$0xf] %vm326_vm4, %v913_v61  ;;  %435 = vst [vmem:[#allocation3 + $0x8] sm:$0xf] %v3278_v60 }
  0xaa   : > { %921 = vst.msk [vmem:[#allocation2] sm:$0xf] %vm333_vm5, %v919_v62  ;;  %vm3870_vm4 = vcmask 265352   ;;  %vm1428_vm5 = vcmask 236712   ;;  %v502_v12 = vld [vmem:[#allocation2 + $0x8] sm:$0xf] }
  0xab   : > { %437 = vst.msk [vmem:[#allocation3 + $0x10] sm:$0xf] %vm436_vm0, %v430_v63  ;;  %529 = vrot.lane.b32.xlu1 %v429_v59, %s3090_s29  ;;  %488 = vrot.lane.b32.xlu0 %v429_v59, %s3091_s30  ;;  %v925_v2 = vpop.permute.xlu1 %924  ;;  %v543_v15 = vld [vmem:[#allocation2 + $0x8] sm:$0xf] }
  0xac   : > { %v937_v1 = vpop.permute.xlu0 %936  ;;  %927 = vst.msk [vmem:[#allocation2] sm:$0xf] %vm340_vm6, %v925_v2  ;;  %vm3871_vm6 = vcmask 560552   ;;  %v461_v16 = vld [vmem:[#allocation2 + $0x8] sm:$0xf] }
  0xad   : > { %v938_v3 = vrot.slane %v937_v1, 4  ;;  %v584_v23 = vld [vmem:[#allocation2 + $0x8] sm:$0xf] }
  0xae   : > { %v3033_v25 = vld [vmem:[#allocation2 + $0x8] ss:$0 sps:$4 sm:$0xff]  }
  0xaf   : > { %v939_v4 = vsel %vm354_vm9, %v938_v3, %v937_v1  ;;  %570 = vrot.lane.b32.xlu1 %v429_v59, %s3092_s7  ;;  %467 = vrot.lane.b32.xlu0 %v3278_v60, %s3088_s27  ;;  %v945_v6 = vpop.permute.xlu1 %944  ;;  %vm1435_vm9 = vcmask 318712   ;;  %v3034_v27 = vld [vmem:[#allocation2 + $0x8] ss:$0 sps:$4 sm:$0xff]  }
  0xb0   : > { %v931_v5 = vpop.permute.xlu0 %930  ;;  %v3035_v28 = vld [vmem:[#allocation2 + $0x8] ss:$0 sps:$4 sm:$0xff]  }
  0xb1   : > { %933 = vst.msk [vmem:[#allocation2] sm:$0xf] %vm3869_vm2, %v931_v5  ;;  %vm1456_vm2 = vcmask 564712   ;;  %v3036_v29 = vld [vmem:[#allocation2 + $0x8] ss:$0 sps:$4 sm:$0xff]  }
  0xb2   : > { %941 = vst.msk [vmem:[#allocation2] sm:$0xff] %vm3252_vm11, %v939_v4  ;;  %vm3872_vm11 = vcmask 708152  }
  0xb3   : > { %506 = vrot.lane.b32.xlu1 %v429_v59, %s3093_s10  ;;  %444 = vrot.lane.b32.xlu0 %v442_v7, %s3089_s28  ;;  %947 = vst.msk [vmem:[#allocation2 + $0x4] sm:$0xf] %vm3870_vm4, %v945_v6  ;;  %v951_v9 = vpop.permute.xlu1 %950  ;;  %v3424_v6 = vld [vmem:[%s3859_s5] sm:$0xff]  ;;  %vm533_vm4 = vcmask 883712  }
  0xb4   : > { %v1419_v8 = vpop.permute.xlu0 %1418  ;;  %953 = vst.msk [vmem:[#allocation2 + $0x4] sm:$0xf] %vm373_vm13, %v951_v9  ;;  %vm1442_vm13 = vcmask 400712  }
  0xb5   : > { %1422 = vst.msk [vmem:[#allocation4] sm:$0xff] %vm1421_vm3, %v1419_v8  ;;  %v3101_v8 = vmov 36  }
  0xb6   : > { %3025 = vset.pattern.permute.xlu0 %v3101_v8  ;;  %3026 = vset.pattern.permute.xlu1 %v3101_v8 }
  0xb7   : > { %547 = vrot.lane.b32.xlu1 %v429_v59, %s3094_s11  ;;  %486 = vrot.lane.b32.xlu0 %v442_v7, %s3091_s30  ;;  %v957_v11 = vpop.permute.xlu1 %956 }
  0xb8   : > { %v1426_v10 = vpop.permute.xlu0 %1425  ;;  %959 = vst.msk [vmem:[#allocation2 + $0x4] sm:$0xf] %vm3871_vm6, %v957_v11  ;;  %vm574_vm6 = vcmask 744448  }
  0xb9   : > { %1429 = vst.msk [vmem:[#allocation4] sm:$0xff] %vm1428_vm5, %v1426_v10 }
  0xbb   : > { %588 = vrot.lane.b32.xlu1 %v429_v59, %s3095_s12  ;;  %510 = vrot.lane.b32.xlu0 %v502_v12, %s3093_s10  ;;  %v963_v14 = vpop.permute.xlu1 %962  ;;  %v3440_v12 = vld [vmem:[%s3859_s5 + $0x10] sm:$0xff] }
  0xbc   : > { %v1433_v13 = vpop.permute.xlu0 %1432  ;;  %965 = vst.msk [vmem:[#allocation2 + $0x4] sm:$0xf] %vm3872_vm11, %v963_v14  ;;  %vm458_vm11 = vcmask 244740  }
  0xbd   : > { %1436 = vst.msk [vmem:[#allocation4] sm:$0xff] %vm1435_vm9, %v1433_v13  ;;  %v3445_v13 = vld [vmem:[%s3859_s5 + $0x18] sm:$0xff] }
  0xbf   : > { %551 = vrot.lane.b32.xlu0 %v543_v15, %s3094_s11  ;;  %469 = vrot.lane.b32.xlu1 %v461_v16, %s3088_s27  ;;  %v1440_v18 = vpop.permute.xlu1 %1439 }
  0xc0   : > { %v981_v17 = vpop.permute.xlu0 %980  ;;  %1443 = vst.msk [vmem:[#allocation4] sm:$0xff] %vm1442_vm13, %v1440_v18  ;;  %v3460_v18 = vld [vmem:[%s3859_s5 + $0x28] sm:$0xff] }
  0xc1   : > { %v982_v21 = vrot.slane %v981_v17, 4 }
  0xc3   : > { %527 = vrot.lane.b32.xlu0 %v442_v7, %s3090_s29  ;;  %508 = vrot.lane.b32.xlu1 %v3278_v60, %s3093_s10  ;;  %v1447_v20 = vpop.permute.xlu1 %1446  ;;  %v983_v26 = vsel %vm408_vm8, %v982_v21, %v981_v17  ;;  %vm492_vm8 = vcmask 900096   ;;  %v3455_v17 = vld [vmem:[%s3859_s5 + $0x20] sm:$0xff] }
  0xc4   : > { %v969_v19 = vpop.permute.xlu0 %968  ;;  %1450 = vst.msk [vmem:[#allocation4] sm:$0xff] %vm1449_vm1, %v1447_v20 }
  0xc5   : > { %971 = vst.msk [vmem:[#allocation2 + $0x4] sm:$0xf] %vm394_vm7, %v969_v19  ;;  %vm1463_vm7 = vcmask 646712   ;;  %v3102_v19 = vmov 72  }
  0xc7   : > { %568 = vrot.lane.b32.xlu0 %v442_v7, %s3092_s7  ;;  %549 = vrot.lane.b32.xlu1 %v3278_v60, %s3094_s11  ;;  %v1454_v24 = vpop.permute.xlu1 %1453  ;;  %v3429_v7 = vld [vmem:[%s3859_s5 + $0x8] sm:$0xff] }
  0xc8   : > { %v975_v22 = vpop.permute.xlu0 %974  ;;  %1457 = vst.msk [vmem:[#allocation4] sm:$0xff] %vm1456_vm2, %v1454_v24 }
  0xc9   : > { %977 = vst.msk [vmem:[#allocation2 + $0x4] sm:$0xf] %vm401_vm10, %v975_v22  ;;  %vm1470_vm10 = vcmask 728712  }
  0xca   : > { %985 = vst.msk [vmem:[#allocation2 + $0x4] sm:$0xff] %vm3264_vm12, %v983_v26  ;;  %vm1473_vm12 = vcmask 637952  }
  0xcb   : > { %592 = vrot.lane.b32.xlu0 %v584_v23, %s3095_s12  ;;  %590 = vrot.lane.b32.xlu1 %v3278_v60, %s3095_s12  ;;  %v989_v30 = vpop.permute.xlu1 %988 }
  0xcc   : > { %v1461_v31 = vpop.permute.xlu0 %1460  ;;  %991 = vst.msk [vmem:[#allocation2 + $0x8] sm:$0xf] %vm420_vm14, %v989_v30  ;;  %vm471_vm14 = vcmask 1031168  }
  0xcd   : > { %1464 = vst.msk [vmem:[#allocation4] sm:$0xff] %vm1463_vm7, %v1461_v31  ;;  %v3481_v31 = vld [vmem:[%s3859_s5 + $0x38] sm:$0xff] }
  0xcf   : > { %531 = vrot.lane.b32.xlu0 %v3033_v25, %s3090_s29  ;;  %448 = vrot.lane.b32.xlu1 %v3034_v27, %s3089_s28  ;;  %v995_v32 = vpop.permute.xlu1 %994  ;;  %v3471_v25 = vld [vmem:[%s3859_s5 + $0x30] sm:$0xff] }
  0xd0   : > { %v1468_v33 = vpop.permute.xlu0 %1467  ;;  %997 = vst.msk [vmem:[#allocation2 + $0x8] sm:$0xf] %vm427_vm15, %v995_v32  ;;  %vm450_vm15 = vcmask 1039360  }
  0xd1   : > { %1471 = vst.msk [vmem:[#allocation4] sm:$0xff] %vm1470_vm10, %v1468_v33  ;;  %v3335_v36 = vld [vmem:[#allocation2] sm:$0xff] }
  0xd2   : > { %v3354_v43 = vcombine.high %v3335_v36, %v3335_v36  ;;  %v1010_v46 = vcombine.low %v3335_v36, %v3335_v36 }
  0xd3   : > { %572 = vrot.lane.b32.xlu0 %v3035_v28, %s3092_s7  ;;  %490 = vrot.lane.b32.xlu1 %v3036_v29, %s3091_s30  ;;  %v1686_v35 = vpop.permute.xlu1 %1685 }
  0xd4   : > { %v1680_v34 = vpop.permute.xlu0 %1679 }
  0xd7   : > { %1031 = vrot.lane.b32.xlu1 %v3335_v36, %s3088_s27  ;;  %1014 = vrot.lane.b32.xlu0 %v3335_v36, %s3089_s28  ;;  %v1698_v38 = vpop.permute.xlu1 %1697  ;;  %v1027_v40 = vld [vmem:[#allocation2 + $0x8] sm:$0xf] }
  0xd8   : > { %v1692_v37 = vpop.permute.xlu0 %1691  ;;  %v3341_v39 = vld [vmem:[#allocation4] sm:$0xff] }
  0xd9   : > { %1682 = vst.msk [vmem:[#allocation4] sm:$0xff] %vm1421_vm3, %v1680_v34  ;;  %v3039_v47 = vld [vmem:[#allocation2 + $0x8] ss:$0 sps:$4 sm:$0xff]   ;;  %vm512_vm3 = vcmask 891904  }
  0xda   : > { %1474 = vst.msk [vmem:[#allocation5] sm:$0xff] %vm1473_vm12, %v3341_v39  ;;  %v1066_v50 = vld [vmem:[#allocation2 + $0x8] sm:$0xf] }
  0xdb   : > { %1092 = vrot.lane.b32.xlu1 %v3335_v36, %s3090_s29  ;;  %1053 = vrot.lane.b32.xlu0 %v3335_v36, %s3091_s30  ;;  %1688 = vst.msk [vmem:[#allocation4] sm:$0xff] %vm1428_vm5, %v1686_v35  ;;  %v1710_v42 = vpop.permute.xlu1 %1709  ;;  %v3040_v51 = vld [vmem:[#allocation2 + $0x8] ss:$0 sps:$4 sm:$0xff]   ;;  %vm553_vm5 = vcmask 752640  }
  0xdc   : > { %1694 = vst.msk [vmem:[#allocation4] sm:$0xff] %vm1435_vm9, %v1692_v37  ;;  %v1704_v41 = vpop.permute.xlu0 %1703  ;;  %v3041_v52 = vld [vmem:[#allocation2 + $0x8] ss:$0 sps:$4 sm:$0xff]   ;;  %vm594_vm9 = vcmask 736256  }
  0xdd   : > { %1700 = vst.msk [vmem:[#allocation4] sm:$0xff] %vm1442_vm13, %v1698_v38  ;;  %v1105_v53 = vld [vmem:[#allocation2 + $0x8] sm:$0xf]  ;;  %vm647_vm13 = vcmask 1043456  }
  0xde   : > { %1706 = vst.msk [vmem:[#allocation4] sm:$0xff] %vm1449_vm1, %v1704_v41  ;;  %v3042_v54 = vld [vmem:[#allocation2 + $0x8] ss:$0 sps:$4 sm:$0xff]   ;;  %vm638_vm1 = vcmask 293888  }
  0xdf   : > { %1033 = vrot.lane.b32.xlu0 %v3354_v43, %s3088_s27  ;;  %1035 = vrot.lane.b32.xlu1 %v1027_v40, %s3088_s27  ;;  %1712 = vst.msk [vmem:[#allocation4] sm:$0xff] %vm1456_vm2, %v1710_v42  ;;  %v1722_v45 = vpop.permute.xlu1 %1721  ;;  %v1144_v55 = vld [vmem:[#allocation2 + $0x8] sm:$0xf]  ;;  %vm872_vm2 = vcmask 244736  }
  0xe0   : > { %v1716_v44 = vpop.permute.xlu0 %1715 }
  0xe1   : > { %1718 = vst.msk [vmem:[#allocation4] sm:$0xff] %vm1463_vm7, %v1716_v44  ;;  %v3372_v49 = vld [vmem:[#allocation5] sm:$0xff]  ;;  %vm1895_vm7 = vcmask 15360  }
  0xe2   : > { %1724 = vst.msk [vmem:[#allocation4] sm:$0xff] %vm1470_vm10, %v1722_v45  ;;  %vm1932_vm10 = vcmask 654336  }
  0xe3   : > { %1012 = vrot.lane.b32.xlu0 %v1010_v46, %s3089_s28  ;;  %1072 = vrot.lane.b32.xlu1 %v3354_v43, %s3093_s10 }
  0xe7   : > { %1051 = vrot.lane.b32.xlu0 %v1010_v46, %s3091_s30  ;;  %1111 = vrot.lane.b32.xlu1 %v3354_v43, %s3094_s11 }
  0xe9   : > { %v1727_v48 = vld [vmem:[#allocation4] sm:$0xff] }
  0xea   : > { %1726 = vst.msk [vmem:[#allocation5] sm:$0xff] %vm1473_vm12, %v1727_v48 }
  0xeb   : > { %1074 = vrot.lane.b32.xlu0 %v1066_v50, %s3093_s10  ;;  %1016 = vrot.lane.b32.xlu1 %v3039_v47, %s3089_s28 }
  0xef   : > { %1094 = vrot.lane.b32.xlu0 %v3040_v51, %s3090_s29  ;;  %1055 = vrot.lane.b32.xlu1 %v3041_v52, %s3091_s30 }
  0xf3   : > { %1113 = vrot.lane.b32.xlu0 %v1105_v53, %s3094_s11  ;;  %1131 = vrot.lane.b32.xlu1 %v3335_v36, %s3092_s7 }
  0xf7   : > { %1133 = vrot.lane.b32.xlu0 %v3042_v54, %s3092_s7  ;;  %1477 = vrot.lane.b32.xlu1 %v3341_v39, %s3089_s28 }
  0xfb   : > { %1070 = vrot.lane.b32.xlu0 %v3335_v36, %s3093_s10  ;;  %1090 = vrot.lane.b32.xlu1 %v1010_v46, %s3090_s29 }
  0xff   : > { %1109 = vrot.lane.b32.xlu0 %v3335_v36, %s3094_s11  ;;  %1129 = vrot.lane.b32.xlu1 %v1010_v46, %s3092_s7 }
 0x103   : > { %1483 = vrot.lane.b32.xlu0 %v3341_v39, %s3088_s27  ;;  %1489 = vrot.lane.b32.xlu1 %v3341_v39, %s3096_s13 }
 0x107   : > { %1150 = vrot.lane.b32.xlu0 %v3354_v43, %s3095_s12  ;;  %1152 = vrot.lane.b32.xlu1 %v1144_v55, %s3095_s12 }
 0x10b   : > { %1148 = vrot.lane.b32.xlu0 %v3335_v36, %s3095_s12  ;;  %1495 = vrot.lane.b32.xlu1 %v3341_v39, %s3097_s14 }
 0x10f   : > { %1501 = vrot.lane.b32.xlu0 %v3341_v39, %s3098_s15  ;;  %1729 = vrot.lane.b32.xlu1 %v1727_v48, %s3089_s28 }
 0x113   : > { %1507 = vrot.lane.b32.xlu0 %v3341_v39, %s3090_s29  ;;  %1513 = vrot.lane.b32.xlu1 %v3341_v39, %s3099_s16 }
 0x117   : > { %1735 = vrot.lane.b32.xlu0 %v1727_v48, %s3088_s27  ;;  %1741 = vrot.lane.b32.xlu1 %v1727_v48, %s3096_s13 }
 0x119   : > { %v466_v56 = vpop.permute.xlu1 %465  ;;  %v3406_v57 = vpop.permute.xlu0 %446 }
 0x11b   : > { %1747 = vrot.lane.b32.xlu0 %v1727_v48, %s3097_s14  ;;  %1753 = vrot.lane.b32.xlu1 %v1727_v48, %s3098_s15 }
 0x11d   : > { %v3408_v58 = vpop.permute.xlu1 %529  ;;  %v3410_v59 = vpop.permute.xlu0 %488 }
 0x11f   : > { %1519 = vrot.lane.b32.xlu0 %v3341_v39, %s3100_s17  ;;  %1759 = vrot.lane.b32.xlu1 %v1727_v48, %s3090_s29 }
 0x121   : > { %v3414_v60 = vpop.permute.xlu1 %570  ;;  %v468_v61 = vpop.permute.xlu0 %467 }
 0x122   : > { %v472_v62 = vsel %vm471_vm14, %v466_v56, %v468_v61 }
 0x123   : > { %477 = vst [vmem:[#allocation3 + $0x18] sm:$0xf] %v472_v62  ;;  %1765 = vrot.lane.b32.xlu0 %v1727_v48, %s3099_s16  ;;  %1771 = vrot.lane.b32.xlu1 %v1727_v48, %s3100_s17  ;;  %v999_v48 = vld [vmem:[#allocation2 + $0x8] sm:$0xf]  ;;  %s2629_s16 = sshll.u32 %s3876_s22, 4 }
 0x124   : > { %s293_s19 = scalar_lea.vmem %s3858_s4, %s2629_s16  ;;  %s2630_s16 = sshll.u32 %s3876_s22, 6 }
 0x125   : > { %v507_v63 = vpop.permute.xlu1 %506  ;;  %v445_v1 = vpop.permute.xlu0 %444 }
 0x126   : > { %v451_v2 = vsel %vm450_vm15, %v445_v1, %v3406_v57 }
 0x127   : > { %456 = vst [vmem:[#allocation3] sm:$0xf0] %v451_v2  ;;  %620 = vperm.xlu0 %3025, %v3424_v6   ;;  %625 = vperm.xlu1 %3026, %v3429_v7  }
 0x129   : > { %v548_v3 = vpop.permute.xlu1 %547  ;;  %v487_v4 = vpop.permute.xlu0 %486 }
 0x12a   : > { %v493_v5 = vsel %vm492_vm8, %v487_v4, %v3410_v59 }
 0x12b   : > { %498 = vst [vmem:[#allocation3 + $0x18] sm:$0xf0] %v493_v5  ;;  %630 = vperm.xlu1 %3026, %v3440_v12   ;;  %635 = vperm.xlu0 %3025, %v3445_v13  }
 0x12d   : > { %v589_v9 = vpop.permute.xlu1 %588  ;;  %v511_v10 = vpop.permute.xlu0 %510 }
 0x12e   : > { %520 = vst.msk [vmem:[#allocation3 + $0x40] sm:$0xf] %vm436_vm0, %v511_v10  ;;  %v3434_v11 = vld [vmem:[#allocation3] sm:$0xff] }
 0x12f   : > { %1003 = vst [vmem:[#allocation3] sm:$0xf] %v3335_v36  ;;  %3027 = vset.pattern.permute.xlu1 %v3102_v19  ;;  %3028 = vset.pattern.permute.xlu0 %v3102_v19 }
 0x130   : > { %1534 = vperm.xlu1 %3027, %v3455_v17   ;;  %1539 = vperm.xlu0 %3028, %v3460_v18  }
 0x131   : > { %v470_v14 = vpop.permute.xlu1 %469  ;;  %v552_v15 = vpop.permute.xlu0 %551 }
 0x132   : > { %v473_v16 = vsel %vm471_vm14, %v468_v61, %v470_v14  ;;  %479 = vst.msk [vmem:[#allocation3 + $0x28] sm:$0xf] %vm436_vm0, %v470_v14  ;;  %561 = vst.msk [vmem:[#allocation3 + $0x58] sm:$0xf] %vm436_vm0, %v552_v15  ;;  %v606_v53 = vld [vmem:[#allocation3 + $0x18] sm:$0xff] }
 0x133   : > { %478 = vst [vmem:[#allocation3 + $0x20] sm:$0xf] %v473_v16 }
 0x134   : > { %1544 = vperm.xlu1 %3027, %v3471_v25  }
 0x135   : > { %v509_v20 = vpop.permute.xlu1 %508  ;;  %v528_v21 = vpop.permute.xlu0 %527 }
 0x136   : > { %v513_v22 = vsel %vm512_vm3, %v507_v63, %v509_v20  ;;  %v514_v23 = vsel %vm512_vm3, %v509_v20, %v511_v10  ;;  %v534_v24 = vsel %vm533_vm4, %v528_v21, %v3408_v58 }
 0x137   : > { %518 = vst [vmem:[#allocation3 + $0x30] sm:$0xf] %v513_v22  ;;  %519 = vst [vmem:[#allocation3 + $0x38] sm:$0xf] %v514_v23 }
 0x138   : > { %539 = vst [vmem:[#allocation3 + $0x30] sm:$0xf0] %v534_v24  ;;  %1549 = vperm.xlu1 %3027, %v3481_v31  }
 0x139   : > { %v550_v26 = vpop.permute.xlu1 %549  ;;  %v569_v27 = vpop.permute.xlu0 %568 }
 0x13a   : > { %v554_v28 = vsel %vm553_vm5, %v548_v3, %v550_v26  ;;  %v555_v29 = vsel %vm553_vm5, %v550_v26, %v552_v15  ;;  %v575_v30 = vsel %vm574_vm6, %v569_v27, %v3414_v60 }
 0x13b   : > { %559 = vst [vmem:[#allocation3 + $0x48] sm:$0xf] %v554_v28  ;;  %560 = vst [vmem:[#allocation3 + $0x50] sm:$0xf] %v555_v29 }
 0x13c   : > { %580 = vst [vmem:[#allocation3 + $0x48] sm:$0xf0] %v575_v30 }
 0x13d   : > { %v591_v32 = vpop.permute.xlu1 %590  ;;  %v593_v33 = vpop.permute.xlu0 %592 }
 0x13e   : > { %v595_v34 = vsel %vm594_vm9, %v589_v9, %v591_v32  ;;  %v596_v35 = vsel %vm594_vm9, %v591_v32, %v593_v33  ;;  %602 = vst.msk [vmem:[#allocation3 + $0x70] sm:$0xf] %vm436_vm0, %v593_v33 }
 0x13f   : > { %600 = vst [vmem:[#allocation3 + $0x60] sm:$0xf] %v595_v34  ;;  %601 = vst [vmem:[#allocation3 + $0x68] sm:$0xf] %v596_v35  ;;  %v609_v2 = vld [vmem:[#allocation3 + $0x30] sm:$0xff] }
 0x141   : > { %v449_v36 = vpop.permute.xlu1 %448  ;;  %v532_v37 = vpop.permute.xlu0 %531 }
 0x142   : > { %v452_v38 = vsel %vm450_vm15, %v3406_v57, %v449_v36  ;;  %459 = vst.msk [vmem:[#allocation3 + $0x10] sm:$0xf0] %vm458_vm11, %v449_v36  ;;  %v535_v39 = vsel %vm533_vm4, %v3408_v58, %v532_v37  ;;  %541 = vst.msk [vmem:[#allocation3 + $0x40] sm:$0xf0] %vm458_vm11, %v532_v37  ;;  %v2873_v57 = vpack.c.bf16 %v606_v53, %v3434_v11 }
 0x143   : > { %457 = vst [vmem:[#allocation3 + $0x8] sm:$0xf0] %v452_v38  ;;  %540 = vst [vmem:[#allocation3 + $0x38] sm:$0xf0] %v535_v39  ;;  %v612_v63 = vld [vmem:[#allocation3 + $0x48] sm:$0xff] }
 0x144   : > { %v2877_v3 = vpack.c.bf16 %v612_v63, %v609_v2 }
 0x145   : > { %v491_v40 = vpop.permute.xlu1 %490  ;;  %v573_v41 = vpop.permute.xlu0 %572  ;;  %v617_v27 = vld [vmem:[#allocation3 + $0x70] sm:$0xf] }
 0x146   : > { %v494_v42 = vsel %vm492_vm8, %v3410_v59, %v491_v40  ;;  %500 = vst.msk [vmem:[#allocation3 + $0x28] sm:$0xf0] %vm458_vm11, %v491_v40  ;;  %v576_v44 = vsel %vm574_vm6, %v3414_v60, %v573_v41  ;;  %582 = vst.msk [vmem:[#allocation3 + $0x58] sm:$0xf0] %vm458_vm11, %v573_v41  ;;  %v616_v9 = vld [vmem:[#allocation3 + $0x68] sm:$0xf] }
 0x147   : > { %499 = vst [vmem:[#allocation3 + $0x20] sm:$0xf0] %v494_v42  ;;  %581 = vst [vmem:[#allocation3 + $0x50] sm:$0xf0] %v576_v44  ;;  %v615_v15 = vld [vmem:[#allocation3 + $0x60] sm:$0xf] }
 0x149   : > { %v1032_v45 = vpop.permute.xlu1 %1031  ;;  %v1015_v46 = vpop.permute.xlu0 %1014  ;;  %v605_v47 = vld [vmem:[#allocation3 + $0x10] sm:$0xff]  ;;  %v611_v20 = vld [vmem:[#allocation3 + $0x40] sm:$0xff] }
 0x14a   : > { %v604_v50 = vld [vmem:[#allocation3 + $0x8] sm:$0xff]  ;;  %1005 = vst.msk [vmem:[#allocation3 + $0x10] sm:$0xf] %vm436_vm0, %v999_v48  ;;  %v610_v58 = vld [vmem:[#allocation3 + $0x38] sm:$0xff] }
 0x14b   : > { %1004 = vst [vmem:[#allocation3 + $0x8] sm:$0xf] %v3354_v43 }
 0x14d   : > { %v3501_v51 = vpop.permute.xlu1 %1092  ;;  %v1054_v52 = vpop.permute.xlu0 %1053  ;;  %v608_v59 = vld [vmem:[#allocation3 + $0x28] sm:$0xff]  ;;  %v614_v10 = vld [vmem:[#allocation3 + $0x58] sm:$0xff] }
 0x14e   : > { %v607_v54 = vld [vmem:[#allocation3 + $0x20] sm:$0xff]  ;;  %v613_v55 = vld [vmem:[#allocation3 + $0x50] sm:$0xff]  ;;  %v2879_v16 = vpack.c.bf16 %v608_v59, %v605_v47  ;;  %v2883_v21 = vpack.c.bf16 %v614_v10, %v611_v20 }
 0x14f   : > { %v2871_v56 = vpack.c.bf16 %v607_v54, %v604_v50  ;;  %v2875_v62 = vpack.c.bf16 %v613_v55, %v610_v58 }
 0x151   : > { %v1036_v60 = vpop.permute.xlu1 %1035  ;;  %2872 = vmatprep.subr.bf16.mxu0 %v2871_v56  ;;  %v1034_v61 = vpop.permute.xlu0 %1033 }
 0x152   : > { %1044 = vst.msk [vmem:[#allocation3 + $0x28] sm:$0xf] %vm436_vm0, %v1036_v60  ;;  %v1037_v43 = vsel %vm471_vm14, %v1032_v45, %v1034_v61  ;;  %v1038_v1 = vsel %vm471_vm14, %v1034_v61, %v1036_v60  ;;  %2874 = vmatpush1.bf16.msra.mxu0 %v2873_v57  ;;  %vm1404_vm14 = vcmask 15368  }
 0x153   : > { %1043 = vst [vmem:[#allocation3 + $0x20] sm:$0xf] %v1038_v1  ;;  %1042 = vst [vmem:[#allocation3 + $0x18] sm:$0xf] %v1037_v43  ;;  %2876 = vmatprep.subr.bf16.mxu0 %v2875_v62 }
 0x155   : > { %v3507_v4 = vpop.permute.xlu1 %1072  ;;  %v1013_v5 = vpop.permute.xlu0 %1012 }
 0x156   : > { %v1018_v8 = vsel %vm450_vm15, %v1013_v5, %v1015_v46  ;;  %2878 = vmatpush1.bf16.msra.mxu0 %v2877_v3 }
 0x157   : > { %1023 = vst [vmem:[#allocation3] sm:$0xf0] %v1018_v8  ;;  %2551 = vmatprep.subr.msk.mxu0 %vm647_vm13, %v616_v9 }
 0x159   : > { %v3511_v11 = vpop.permute.xlu1 %1111  ;;  %v1052_v14 = vpop.permute.xlu0 %1051 }
 0x15a   : > { %v1057_v19 = vsel %vm492_vm8, %v1052_v14, %v1054_v52  ;;  %2552 = vmatpush1.msk.msra.mxu0 %vm647_vm13, %v615_v15 }
 0x15b   : > { %1062 = vst [vmem:[#allocation3 + $0x18] sm:$0xf0] %v1057_v19  ;;  %2880 = vmatprep.subr.bf16.mxu0 %v2879_v16  ;;  %2553 = vmatmul.mubr.msk.f32.vlgmr.msra.gmra.mrb[0].mxu0 %vm638_vm1, %v3424_v6 }
 0x15c   : > { %2882 = vmatpush3.bf16.msra.mxu0 %v2879_v16  ;;  %727 = vmatprep.mubr.f32.mxu0 %v3067_v0 }
 0x15d   : > { %v1017_v22 = vpop.permute.xlu1 %1016  ;;  %2884 = vmatprep.subr.bf16.mxu0 %v2883_v21  ;;  %v1075_v23 = vpop.permute.xlu0 %1074 }
 0x15e   : > { %v1019_v24 = vsel %vm450_vm15, %v1015_v46, %v1017_v22  ;;  %1025 = vst.msk [vmem:[#allocation3 + $0x10] sm:$0xf0] %vm458_vm11, %v1017_v22  ;;  %v1077_v26 = vsel %vm512_vm3, %v3507_v4, %v1075_v23  ;;  %v1162_v47 = vld [vmem:[#allocation3] sm:$0xff]  ;;  %vm2054_vm15 = vcmask 261120  }
 0x15f   : > { %1083 = vst.msk [vmem:[#allocation3 + $0x40] sm:$0xf] %vm436_vm0, %v1075_v23  ;;  %1024 = vst [vmem:[#allocation3 + $0x8] sm:$0xf0] %v1019_v24  ;;  %2554 = vmatmul.mubr.msk.f32.gmra.mrb[2].mxu0 %vm638_vm1, %v3429_v7 }
 0x160   : > { %1082 = vst [vmem:[#allocation3 + $0x38] sm:$0xf] %v1077_v26  ;;  %2886 = vmatpush3.bf16.msra.mxu0 %v2883_v21  ;;  %733 = vmatprep.mubr.f32.mxu0 %v3067_v0 }
 0x161   : > { %v1056_v28 = vpop.permute.xlu1 %1055  ;;  %2725 = vmatprep.subr.msk.mxu0 %vm647_vm13, %v617_v27  ;;  %v1095_v29 = vpop.permute.xlu0 %1094 }
 0x162   : > { %v1058_v30 = vsel %vm492_vm8, %v1054_v52, %v1056_v28  ;;  %1064 = vst.msk [vmem:[#allocation3 + $0x28] sm:$0xf0] %vm458_vm11, %v1056_v28  ;;  %v1097_v32 = vsel %vm533_vm4, %v3501_v51, %v1095_v29  ;;  %1103 = vst.msk [vmem:[#allocation3 + $0x40] sm:$0xf0] %vm458_vm11, %v1095_v29  ;;  %v1165_v40 = vld [vmem:[#allocation3 + $0x18] sm:$0xff] }
 0x163   : > { %1063 = vst [vmem:[#allocation3 + $0x20] sm:$0xf0] %v1058_v30  ;;  %1102 = vst [vmem:[#allocation3 + $0x38] sm:$0xf0] %v1097_v32  ;;  %2555 = vmatmul.mubr.msk.f32.gmra.mrb[4].mxu0 %vm638_vm1, %v3440_v12  ;;  %v2889_v48 = vpack.c.bf16 %v1165_v40, %v1162_v47 }
 0x164   : > { %2726 = vmatpush3.msk.msra.mxu0 %vm647_vm13, %v617_v27  ;;  %739 = vmatprep.mubr.f32.mxu0 %v3067_v0 }
 0x165   : > { %v1132_v33 = vpop.permute.xlu1 %1131  ;;  %v1114_v34 = vpop.permute.xlu0 %1113  ;;  %v1164_v38 = vld [vmem:[#allocation3 + $0x10] sm:$0xff] }
 0x166   : > { %v1116_v35 = vsel %vm553_vm5, %v3511_v11, %v1114_v34  ;;  %1122 = vst.msk [vmem:[#allocation3 + $0x58] sm:$0xf] %vm436_vm0, %v1114_v34  ;;  %v1163_v44 = vld [vmem:[#allocation3 + $0x8] sm:$0xff] }
 0x167   : > { %1121 = vst [vmem:[#allocation3 + $0x50] sm:$0xf] %v1116_v35  ;;  %2556 = vmatmul.mubr.msk.f32.gmra.mrb[6].mxu0 %vm638_vm1, %v3445_v13 }
 0x168   : > { %2727 = vmatprep.mubr.msk.f32.mxu0 %vm638_vm1, %v3424_v6 }
 0x169   : > { %v1478_v36 = vpop.permute.xlu1 %1477  ;;  %v1134_v37 = vpop.permute.xlu0 %1133  ;;  %v1167_v39 = vld [vmem:[#allocation3 + $0x28] sm:$0xff]  ;;  %v1170_v57 = vld [vmem:[#allocation3 + $0x40] sm:$0xff] }
 0x16a   : > { %1480 = vst.msk [vmem:[#allocation5 + $0x8] sm:$0xff] %vm1473_vm12, %v1478_v36  ;;  %v1136_v41 = vsel %vm574_vm6, %v1132_v33, %v1134_v37  ;;  %v2895_v42 = vpack.c.bf16 %v1167_v39, %v1164_v38  ;;  %v1166_v45 = vld [vmem:[#allocation3 + $0x20] sm:$0xff]  ;;  %v1169_v61 = vld [vmem:[#allocation3 + $0x38] sm:$0xff] }
 0x16b   : > { %1142 = vst.msk [vmem:[#allocation3 + $0x58] sm:$0xf0] %vm458_vm11, %v1134_v37  ;;  %1141 = vst [vmem:[#allocation3 + $0x50] sm:$0xf0] %v1136_v41  ;;  %2728 = vmatmul.mubr.msk.f32.vlgmr.msra.gmra.mrb[8].mxu0 %vm638_vm1, %v3429_v7  ;;  %v2887_v46 = vpack.c.bf16 %v1166_v45, %v1163_v44 }
 0x16c   : > { %2896 = vmatprep.subr.bf16.mxu0 %v2895_v42  ;;  %2730 = vmatprep.mubr.msk.f32.mxu0 %vm638_vm1, %v3440_v12 }
 0x16d   : > { %v1091_v50 = vpop.permute.xlu1 %1090  ;;  %2888 = vmatprep.subr.bf16.mxu1 %v2887_v46  ;;  %2898 = vmatpush3.bf16.msra.mxu0 %v2895_v42  ;;  %v1071_v52 = vpop.permute.xlu0 %1070 }
 0x16e   : > { %v1096_v53 = vsel %vm533_vm4, %v1091_v50, %v3501_v51  ;;  %v1076_v54 = vsel %vm512_vm3, %v1071_v52, %v3507_v4  ;;  %2890 = vmatpush1.bf16.msra.mxu1 %v2889_v48 }
 0x16f   : > { %1101 = vst [vmem:[#allocation3 + $0x30] sm:$0xf0] %v1096_v53  ;;  %1081 = vst [vmem:[#allocation3 + $0x30] sm:$0xf] %v1076_v54  ;;  %2731 = vmatmul.mubr.msk.f32.gmra.mrb[10].mxu0 %vm638_vm1, %v3445_v13 }
 0x170   : > { %2743 = vmatprep.mubr.msk.f32.mxu0 %vm638_vm1, %v3424_v6 }
 0x171   : > { %v1130_v55 = vpop.permute.xlu1 %1129  ;;  %v1110_v56 = vpop.permute.xlu0 %1109  ;;  %v1524_v15 = vld [vmem:[#allocation5 + $0x8] sm:$0xff] }
 0x172   : > { %v1173_v58 = vld [vmem:[#allocation3 + $0x58] sm:$0xff]  ;;  %v1135_v59 = vsel %vm574_vm6, %v1130_v55, %v1132_v33  ;;  %v1115_v51 = vsel %vm553_vm5, %v1110_v56, %v3511_v11  ;;  %v1172_v62 = vld [vmem:[#allocation3 + $0x50] sm:$0xff]  ;;  %v2903_v28 = vpack.c.bf16 %v1524_v15, %v3372_v49  ;;  %v1775_v33 = vld [vmem:[#allocation5] sm:$0xff]  ;;  %v844_v55 = vlaneseq }
 0x173   : > { %v2899_v60 = vpack.c.bf16 %v1173_v58, %v1170_v57  ;;  %1140 = vst [vmem:[#allocation3 + $0x48] sm:$0xf0] %v1135_v59  ;;  %1120 = vst [vmem:[#allocation3 + $0x48] sm:$0xf] %v1115_v51  ;;  %v2891_v63 = vpack.c.bf16 %v1172_v62, %v1169_v61  ;;  %v299_v59 = vld [vmem:[%s3856_s2] sm:$0x7] }
 0x174   : > { %v845_v56 = vshrl.u32 %v844_v55, 7 }
 0x175   : > { %2900 = vmatprep.subr.bf16.mxu0 %v2899_v60  ;;  %v1490_v43 = vpop.permute.xlu1 %1489  ;;  %2892 = vmatprep.subr.bf16.mxu1 %v2891_v63  ;;  %v1484_v1 = vpop.permute.xlu0 %1483 }
 0x176   : > { %2902 = vmatpush3.bf16.msra.mxu0 %v2899_v60  ;;  %1492 = vst.msk [vmem:[#allocation5 + $0x18] sm:$0xff] %vm1473_vm12, %v1490_v43  ;;  %1486 = vst.msk [vmem:[#allocation5 + $0x10] sm:$0xff] %vm1473_vm12, %v1484_v1  ;;  %v1168_v5 = vld [vmem:[#allocation3 + $0x30] sm:$0xff]  ;;  %v846_v57 = vsub.s32 0, %v845_v56  ;;  %v850_v51 = vsub.s32 1, %v845_v56 }
 0x178   : > { %v3624_v62 = vrot.slane %v299_v59, %v846_v57  ;;  %v3627_v63 = vrot.slane %v299_v59, %v850_v51 }
 0x179   : > { %v1153_v2 = vpop.permute.xlu1 %1152  ;;  %v1151_v3 = vpop.permute.xlu0 %1150 }
 0x17a   : > { %1161 = vst.msk [vmem:[#allocation3 + $0x70] sm:$0xf] %vm436_vm0, %v1153_v2  ;;  %v1155_v4 = vsel %vm594_vm9, %v1151_v3, %v1153_v2  ;;  %v1171_v8 = vld [vmem:[#allocation3 + $0x48] sm:$0xff]  ;;  %vm1552_vm0 = vcmask 588800  }
 0x17b   : > { %1160 = vst [vmem:[#allocation3 + $0x68] sm:$0xf] %v1155_v4  ;;  %v2893_v9 = vpack.c.bf16 %v1171_v8, %v1168_v5 }
 0x17d   : > { %v1496_v10 = vpop.permute.xlu1 %1495  ;;  %2894 = vmatpush1.bf16.msra.mxu1 %v2893_v9  ;;  %v1149_v11 = vpop.permute.xlu0 %1148  ;;  %v1526_v24 = vld [vmem:[#allocation5 + $0x18] sm:$0xff]  ;;  %v1525_v26 = vld [vmem:[#allocation5 + $0x10] sm:$0xff] }
 0x17e   : > { %1498 = vst.msk [vmem:[#allocation5 + $0x20] sm:$0xff] %vm1473_vm12, %v1496_v10  ;;  %v1154_v14 = vsel %vm594_vm9, %v1149_v11, %v1151_v3  ;;  %v2907_v29 = vpack.c.bf16 %v1526_v24, %v1525_v26 }
 0x17f   : > { %1159 = vst [vmem:[#allocation3 + $0x60] sm:$0xf] %v1154_v14 }
 0x181   : > { %v1730_v16 = vpop.permute.xlu1 %1729  ;;  %v1502_v19 = vpop.permute.xlu0 %1501  ;;  %v1176_v20 = vld [vmem:[#allocation3 + $0x70] sm:$0xf] }
 0x182   : > { %1732 = vst.msk [vmem:[#allocation5 + $0x8] sm:$0xff] %vm1473_vm12, %v1730_v16  ;;  %1504 = vst.msk [vmem:[#allocation5 + $0x28] sm:$0xff] %vm1473_vm12, %v1502_v19  ;;  %2741 = vmatprep.subr.msk.mxu0 %vm647_vm13, %v1176_v20  ;;  %v1175_v21 = vld [vmem:[#allocation3 + $0x68] sm:$0xf] }
 0x183   : > { %2578 = vmatprep.subr.msk.mxu1 %vm647_vm13, %v1175_v21  ;;  %2742 = vmatpush3.msk.msra.mxu0 %vm647_vm13, %v1176_v20 }
 0x184   : > { %2744 = vmatmul.mubr.msk.f32.vlgmr.msra.gmra.mrb[12].mxu0 %vm638_vm1, %v3429_v7 }
 0x185   : > { %v1514_v22 = vpop.permute.xlu1 %1513  ;;  %v1508_v23 = vpop.permute.xlu0 %1507  ;;  %2746 = vmatprep.mubr.msk.f32.mxu0 %vm638_vm1, %v3440_v12 }
 0x186   : > { %1516 = vst.msk [vmem:[#allocation5 + $0x38] sm:$0xff] %vm1473_vm12, %v1514_v22  ;;  %1510 = vst.msk [vmem:[#allocation5 + $0x30] sm:$0xff] %vm1473_vm12, %v1508_v23  ;;  %v1174_v27 = vld [vmem:[#allocation3 + $0x60] sm:$0xf] }
 0x187   : > { %2579 = vmatpush1.msk.msra.mxu1 %vm647_vm13, %v1174_v27 }
 0x188   : > { %2580 = vmatmul.mubr.msk.f32.vlgmr.msra.gmra.mrb[0].mxu1 %vm638_vm1, %v3424_v6  ;;  %2904 = vmatprep.subr.bf16.mxu1 %v2903_v28  ;;  %v1527_v6 = vld [vmem:[#allocation5 + $0x20] sm:$0xff] }
 0x189   : > { %v1742_v30 = vpop.permute.xlu1 %1741  ;;  %2906 = vmatpush3.bf16.msra.mxu1 %v2903_v28  ;;  %v1736_v32 = vpop.permute.xlu0 %1735  ;;  %1256 = vmatprep.mubr.f32.mxu1 %v3067_v0  ;;  %v1776_v34 = vld [vmem:[#allocation5 + $0x8] sm:$0xff] }
 0x18a   : > { %v1528_v35 = vld [vmem:[#allocation5 + $0x28] sm:$0xff]  ;;  %1744 = vst.msk [vmem:[#allocation5 + $0x18] sm:$0xff] %vm1473_vm12, %v1742_v30  ;;  %1738 = vst.msk [vmem:[#allocation5 + $0x10] sm:$0xff] %vm1473_vm12, %v1736_v32  ;;  %2908 = vmatprep.subr.bf16.mxu1 %v2907_v29  ;;  %2747 = vmatmul.mubr.msk.f32.gmra.mrb[14].mxu0 %vm638_vm1, %v3445_v13  ;;  %v2919_v49 = vpack.c.bf16 %v1776_v34, %v1775_v33  ;;  %v854_v34 = vsub.s32 2, %v845_v56 }
 0x18b   : > { %2791 = vmatprep.mubr.msk.f32.mxu0 %vm1552_vm0, %v3455_v17  ;;  %v2911_v36 = vpack.c.bf16 %v1528_v35, %v1527_v6 }
 0x18c   : > { %2581 = vmatmul.mubr.msk.f32.gmra.mrb[2].mxu1 %vm638_vm1, %v3429_v7  ;;  %2920 = vmatprep.subr.bf16.mxu0 %v2919_v49 }
 0x18d   : > { %v1754_v37 = vpop.permute.xlu1 %1753  ;;  %2910 = vmatpush3.bf16.msra.mxu1 %v2907_v29  ;;  %2922 = vmatpush3.bf16.msra.mxu0 %v2919_v49  ;;  %v1748_v38 = vpop.permute.xlu0 %1747  ;;  %v1529_v39 = vld [vmem:[#allocation5 + $0x30] sm:$0xff]  ;;  %v1530_v40 = vld [vmem:[#allocation5 + $0x38] sm:$0xff] }
 0x18e   : > { %1756 = vst.msk [vmem:[#allocation5 + $0x28] sm:$0xff] %vm1473_vm12, %v1754_v37  ;;  %1750 = vst.msk [vmem:[#allocation5 + $0x20] sm:$0xff] %vm1473_vm12, %v1748_v38  ;;  %2912 = vmatprep.subr.bf16.mxu1 %v2911_v36  ;;  %1262 = vmatprep.mubr.f32.mxu1 %v3067_v0  ;;  %v2915_v41 = vpack.c.bf16 %v1530_v40, %v1529_v39 }
 0x190   : > { %2582 = vmatmul.mubr.msk.f32.gmra.mrb[4].mxu1 %vm638_vm1, %v3440_v12 }
 0x191   : > { %v1760_v7 = vpop.permute.xlu1 %1759  ;;  %2914 = vmatpush3.bf16.msra.mxu1 %v2911_v36  ;;  %v1520_v42 = vpop.permute.xlu0 %1519  ;;  %1268 = vmatprep.mubr.f32.mxu1 %v3067_v0  ;;  %v1777_v44 = vld [vmem:[#allocation5 + $0x10] sm:$0xff]  ;;  %v1778_v45 = vld [vmem:[#allocation5 + $0x18] sm:$0xff] }
 0x192   : > { %1762 = vst.msk [vmem:[#allocation5 + $0x30] sm:$0xff] %vm1473_vm12, %v1760_v7  ;;  %1522 = vst.msk [vmem:[#allocation5 + $0x40] sm:$0xff] %vm1473_vm12, %v1520_v42  ;;  %2916 = vmatprep.subr.bf16.mxu1 %v2915_v41  ;;  %v2923_v46 = vpack.c.bf16 %v1778_v45, %v1777_v44  ;;  %v3649_v42 = vrot.slane %v299_v59, %v854_v34 }
 0x194   : > { %2583 = vmatmul.mubr.msk.f32.gmra.mrb[6].mxu1 %vm638_vm1, %v3445_v13  ;;  %2924 = vmatprep.subr.bf16.mxu0 %v2923_v46 }
 0x195   : > { %2918 = vmatpush3.bf16.msra.mxu1 %v2915_v41  ;;  %2926 = vmatpush3.bf16.msra.mxu0 %v2923_v46  ;;  %v1766_v12 = vpop.permute.xlu0 %1765  ;;  %v1779_v47 = vld [vmem:[#allocation5 + $0x20] sm:$0xff]  ;;  %v1780_v48 = vld [vmem:[#allocation5 + $0x28] sm:$0xff]  ;;  %v1772_v50 = vpop.permute.xlu1 %1771 }
 0x196   : > { %1768 = vst.msk [vmem:[#allocation5 + $0x38] sm:$0xff] %vm1473_vm12, %v1766_v12  ;;  %v2927_v0 = vpack.c.bf16 %v1780_v48, %v1779_v47  ;;  %2767 = vmatprep.mubr.msk.f32.mxu1 %vm1552_vm0, %v3455_v17 }
 0x198   : > { %2928 = vmatprep.subr.bf16.mxu0 %v2927_v0 }
 0x199   : > { %2930 = vmatpush3.bf16.msra.mxu0 %v2927_v0  ;;  %v1531_v52 = vld [vmem:[#allocation5 + $0x40] sm:$0xff]  ;;  %v1781_v13 = vld [vmem:[#allocation5 + $0x30] sm:$0xff] }
 0x19a   : > { %2765 = vmatprep.subr.mxu1 %v1531_v52  ;;  %1774 = vst.msk [vmem:[#allocation5 + $0x40] sm:$0xff] %vm1473_vm12, %v1772_v50 }
 0x19b   : > { %2766 = vmatpush3.msra.mxu1 %v1531_v52 }
 0x19c   : > { %2768 = vmatmul.mubr.msk.f32.vlgmr.msra.gmra.mrb[8].mxu1 %vm1552_vm0, %v3460_v18 }
 0x19d   : > { %v1782_v53 = vld [vmem:[#allocation5 + $0x38] sm:$0xff]  ;;  %2770 = vmatprep.mubr.msk.f32.mxu1 %vm1552_vm0, %v3471_v25 }
 0x19e   : > { %v2931_v54 = vpack.c.bf16 %v1782_v53, %v1781_v13 }
 0x1a0   : > { %2932 = vmatprep.subr.bf16.mxu0 %v2931_v54  ;;  %2771 = vmatmul.mubr.msk.f32.gmra.mrb[10].mxu1 %vm1552_vm0, %v3481_v31 }
 0x1a1   : > { %2934 = vmatpush3.bf16.msra.mxu0 %v2931_v54  ;;  %v1783_v17 = vld [vmem:[#allocation5 + $0x40] sm:$0xff] }
 0x1a2   : > { %2789 = vmatprep.subr.mxu0 %v1783_v17 }
 0x1a5   : > { %2790 = vmatpush3.msra.mxu0 %v1783_v17 }
 0x1a6   : > { %2792 = vmatmul.mubr.msk.f32.vlgmr.msra.gmra.mrb[16].mxu0 %vm1552_vm0, %v3460_v18  ;;  %v3617_v58 = vpop.permute.xlu0 %620  ;;  %v3622_v61 = vpop.permute.xlu1 %625 }
 0x1a7   : > { %2794 = vmatprep.mubr.msk.f32.mxu0 %vm1552_vm0, %v3471_v25 }
 0x1aa   : > { %2795 = vmatmul.mubr.msk.f32.gmra.mrb[18].mxu0 %vm1552_vm0, %v3481_v31  ;;  %v3632_v8 = vpop.permute.xlu1 %630  ;;  %v3638_v22 = vpop.permute.xlu0 %635 }
 0x22e   : > { %v723_v60 = vpop.f32.mrb[0].mxu0 }
 0x22f   : > { %v725_v18 = vpop.f32.mrb[1].mxu0  ;;  %v724_v25 = vadd.f32 %v723_v60, %v3617_v58 }
 0x230   : > { %v726_v31 = vadd.f32 %v725_v18, %v3617_v58 }
 0x231   : > { %v831_v43 = vmax.f32 %v724_v25, 0.0 }
 0x232   : > { %v729_v1 = vpop.f32.mrb[2].mxu0  ;;  %v832_v2 = vmax.f32 %v726_v31, 0.0 }
 0x233   : > { %v731_v3 = vpop.f32.mrb[3].mxu0  ;;  %v859_v4 = vmul.f32 %v3624_v62, %v831_v43  ;;  %v730_v5 = vadd.f32 %v729_v1, %v3622_v61 }
 0x234   : > { %v860_v9 = vmul.f32 %v3627_v63, %v832_v2  ;;  %v732_v10 = vadd.f32 %v731_v3, %v3622_v61 }
 0x235   : > { %v834_v11 = vmax.f32 %v730_v5, 0.0 }
 0x236   : > { %v735_v14 = vpop.f32.mrb[4].mxu0  ;;  %v871_v15 = vadd.f32 %v860_v9, %v859_v4  ;;  %v835_v16 = vmax.f32 %v732_v10, 0.0 }
 0x237   : > { %v737_v19 = vpop.f32.mrb[5].mxu0  ;;  %v862_v20 = vmul.f32 %v3624_v62, %v834_v11  ;;  %v736_v21 = vadd.f32 %v735_v14, %v3632_v8 }
 0x238   : > { %v863_v23 = vmul.f32 %v3627_v63, %v835_v16  ;;  %v738_v24 = vadd.f32 %v737_v19, %v3632_v8 }
 0x239   : > { %v837_v26 = vmax.f32 %v736_v21, 0.0 }
 0x23a   : > { %v741_v27 = vpop.f32.mrb[6].mxu0  ;;  %v877_v28 = vadd.f32 %v863_v23, %v862_v20  ;;  %v838_v29 = vmax.f32 %v738_v24, 0.0 }
 0x23b   : > { %v743_v30 = vpop.f32.mrb[7].mxu0  ;;  %v865_v32 = vmul.f32 %v3624_v62, %v837_v26  ;;  %v742_v33 = vadd.f32 %v741_v27, %v3638_v22 }
 0x23c   : > { %v866_v35 = vmul.f32 %v3627_v63, %v838_v29  ;;  %v744_v49 = vadd.f32 %v743_v30, %v3638_v22 }
 0x23d   : > { %v840_v6 = vmax.f32 %v742_v33, 0.0 }
 0x23e   : > { %v2729_v36 = vpop.f32.mrb[8].mxu0  ;;  %v882_v37 = vadd.f32 %v866_v35, %v865_v32  ;;  %v841_v38 = vmax.f32 %v744_v49, 0.0 }
 0x23f   : > { %v812_v39 = vpop.f32.mrb[9].mxu0  ;;  %v818_v40 = vadd.f32 %v2729_v36, %v3622_v61  ;;  %v868_v41 = vmul.f32 %v3624_v62, %v840_v6 }
 0x240   : > { %v813_v7 = vadd.f32 %v812_v39, %v3617_v58  ;;  %v869_v44 = vmul.f32 %v3627_v63, %v841_v38 }
 0x241   : > { %v836_v45 = vmax.f32 %v818_v40, 0.0 }
 0x242   : > { %v833_v46 = vmax.f32 %v813_v7, 0.0  ;;  %v2732_v12 = vpop.f32.mrb[10].mxu0  ;;  %v887_v47 = vadd.f32 %v869_v44, %v868_v41 }
 0x243   : > { %v822_v48 = vpop.f32.mrb[11].mxu0  ;;  %v864_v0 = vmul.f32 %v3649_v42, %v836_v45  ;;  %v828_v50 = vadd.f32 %v2732_v12, %v3638_v22 }
 0x244   : > { %v861_v52 = vmul.f32 %v3649_v42, %v833_v46  ;;  %v823_v13 = vadd.f32 %v822_v48, %v3632_v8 }
 0x245   : > { %v878_v53 = vsel %vm872_vm2, %v864_v0, 0.0  ;;  %v842_v54 = vmax.f32 %v828_v50, 0.0 }
 0x246   : > { %v839_v17 = vmax.f32 %v823_v13, 0.0  ;;  %v873_v55 = vsel %vm872_vm2, %v861_v52, 0.0  ;;  %v879_v56 = vadd.f32 %v878_v53, %v877_v28 }
 0x247   : > { %v874_v57 = vadd.f32 %v873_v55, %v871_v15  ;;  %v870_v59 = vmul.f32 %v3649_v42, %v842_v54  ;;  %v1535_v54 = vpop.permute.xlu1 %1534 }
 0x248   : > { %v867_v51 = vmul.f32 %v3649_v42, %v839_v17  ;;  %880 = vadd.xlane.f32.xlu1 %v879_v56 }
 0x249   : > { %875 = vadd.xlane.f32.xlu0 %v874_v57  ;;  %v888_v60 = vsel %vm872_vm2, %v870_v59, 0.0 }
 0x24a   : > { %v883_v18 = vsel %vm872_vm2, %v867_v51, 0.0  ;;  %v889_v25 = vadd.f32 %v888_v60, %v887_v47 }
 0x24b   : > { %v884_v31 = vadd.f32 %v883_v18, %v882_v37 }
 0x24d   : > { %885 = vadd.xlane.f32.xlu1 %v884_v31  ;;  %890 = vadd.xlane.f32.xlu0 %v889_v25  ;;  %v1540_v25 = vpop.permute.xlu0 %1539 }
 0x257   : > { %v2745_v43 = vpop.f32.mrb[12].mxu0 }
 0x258   : > { %v1341_v1 = vpop.f32.mrb[13].mxu0  ;;  %v1347_v3 = vadd.f32 %v2745_v43, %v3622_v61  ;;  %v1545_v43 = vpop.permute.xlu1 %1544 }
 0x259   : > { %v1342_v2 = vadd.f32 %v1341_v1, %v3617_v58 }
 0x25a   : > { %v1365_v16 = vmax.f32 %v1347_v3, 0.0 }
 0x25b   : > { %v1252_v4 = vpop.f32.mrb[0].mxu1  ;;  %v1362_v5 = vmax.f32 %v1342_v2, 0.0 }
 0x25c   : > { %v1253_v9 = vadd.f32 %v1252_v4, %v3617_v58  ;;  %v1254_v10 = vpop.f32.mrb[1].mxu1 }
 0x25d   : > { %v1255_v11 = vadd.f32 %v1254_v10, %v3617_v58  ;;  %v2748_v14 = vpop.f32.mrb[14].mxu0  ;;  %v1374_v19 = vmul.f32 %v1362_v5, %v3649_v42  ;;  %v1377_v58 = vmul.f32 %v1365_v16, %v3649_v42  ;;  %v2593_v5 = vld [vmem:[%s3857_s3] ss:$0 sm:$0xff] }
 0x25e   : > { %v1360_v15 = vmax.f32 %v1253_v9, 0.0  ;;  %v1351_v20 = vpop.f32.mrb[15].mxu0  ;;  %v1357_v37 = vadd.f32 %v2748_v14, %v3638_v22 }
 0x25f   : > { %v1361_v21 = vmax.f32 %v1255_v11, 0.0  ;;  %v1258_v23 = vpop.f32.mrb[2].mxu1  ;;  %v1352_v24 = vadd.f32 %v1351_v20, %v3632_v8  ;;  %v1385_v34 = vsel %vm872_vm2, %v1374_v19, 0.0  ;;  %v1390_v45 = vsel %vm872_vm2, %v1377_v58, 0.0 }
 0x260   : > { %v1372_v26 = vmul.f32 %v1360_v15, %v3624_v62  ;;  %v1259_v27 = vadd.f32 %v1258_v23, %v3622_v61  ;;  %v1260_v28 = vpop.f32.mrb[3].mxu1  ;;  %v1371_v48 = vmax.f32 %v1357_v37, 0.0  ;;  %v1550_v15 = vpop.permute.xlu1 %1549 }
 0x261   : > { %v1373_v29 = vmul.f32 %v1361_v21, %v3627_v63  ;;  %v1261_v30 = vadd.f32 %v1260_v28, %v3622_v61  ;;  %v1368_v33 = vmax.f32 %v1352_v24, 0.0 }
 0x262   : > { %v1363_v32 = vmax.f32 %v1259_v27, 0.0  ;;  %v1383_v59 = vmul.f32 %v1371_v48, %v3649_v42  ;;  %v1894_v48 = vld [vmem:[%s293_s19 + $0x8] sm:$0xff] }
 0x263   : > { %v1384_v35 = vadd.f32 %v1373_v29, %v1372_v26  ;;  %v1364_v49 = vmax.f32 %v1261_v30, 0.0  ;;  %v1264_v6 = vpop.f32.mrb[4].mxu1  ;;  %v1380_v44 = vmul.f32 %v1368_v33, %v3649_v42  ;;  %1897 = vst.msk [vmem:[#allocation6 + $0x48] sm:$0xff] %vm1895_vm7, %v1894_v48 }
 0x264   : > { %v1375_v36 = vmul.f32 %v1363_v32, %v3624_v62  ;;  %v1265_v38 = vadd.f32 %v1264_v6, %v3632_v8  ;;  %v1266_v39 = vpop.f32.mrb[5].mxu1  ;;  %v1400_v1 = vsel %vm872_vm2, %v1383_v59, 0.0 }
 0x265   : > { %v1376_v40 = vmul.f32 %v1364_v49, %v3627_v63  ;;  %v1267_v61 = vadd.f32 %v1266_v39, %v3632_v8  ;;  %v1386_v41 = vadd.f32 %v1385_v34, %v1384_v35  ;;  %v1395_v55 = vsel %vm872_vm2, %v1380_v44, 0.0 }
 0x266   : > { %v1366_v7 = vmax.f32 %v1265_v38, 0.0 }
 0x267   : > { %v1389_v46 = vadd.f32 %v1376_v40, %v1375_v36  ;;  %v1367_v12 = vmax.f32 %v1267_v61, 0.0  ;;  %v1270_v47 = vpop.f32.mrb[6].mxu1  ;;  %1387 = vadd.xlane.f32.xlu0 %v1386_v41 }
 0x268   : > { %v1378_v0 = vmul.f32 %v1366_v7, %v3624_v62  ;;  %v1271_v50 = vadd.f32 %v1270_v47, %v3638_v22  ;;  %v1272_v52 = vpop.f32.mrb[7].mxu1  ;;  %v1893_v47 = vld [vmem:[%s293_s19] sm:$0xff]  ;;  %s298_s19 = scalar_lea.vmem %s3860_s6, %s2630_s16 }
 0x269   : > { %v1379_v13 = vmul.f32 %v1367_v12, %v3627_v63  ;;  %v1273_v8 = vadd.f32 %v1272_v52, %v3638_v22  ;;  %v1391_v53 = vadd.f32 %v1390_v45, %v1389_v46  ;;  %1896 = vst.msk [vmem:[#allocation6 + $0x40] sm:$0xff] %vm1895_vm7, %v1893_v47  ;;  %v3103_v52 = vmov 80  }
 0x26a   : > { %v1369_v17 = vmax.f32 %v1271_v50, 0.0  ;;  %v3718_v50 = vld [vmem:[%s3859_s5 + $0x48] sm:$0xff]  ;;  %3029 = vset.pattern.permute.xlu1 %v3103_v52  ;;  %3030 = vset.pattern.permute.xlu0 %v3103_v52  ;;  %v2154_v52 = vld [vmem:[%s3859_s5 + $0x90] sm:$0xff] }
 0x26b   : > { %v1394_v56 = vadd.f32 %v1379_v13, %v1378_v0  ;;  %v1370_v57 = vmax.f32 %v1273_v8, 0.0  ;;  %1392 = vadd.xlane.f32.xlu0 %v1391_v53  ;;  %v1908_v0 = vld [vmem:[%s3859_s5 + $0x40] sm:$0xff]  ;;  %v3724_v13 = vld [vmem:[%s3859_s5 + $0x50] sm:$0xff]  ;;  %v3730_v8 = vld [vmem:[%s3859_s5 + $0x58] sm:$0xff] }
 0x26c   : > { %v1381_v51 = vmul.f32 %v1369_v17, %v3624_v62  ;;  %2817 = vmatprep.mubr.msk.f32.mxu1 %vm1932_vm10, %v1908_v0 }
 0x26d   : > { %v1382_v60 = vmul.f32 %v1370_v57, %v3627_v63  ;;  %v1396_v18 = vadd.f32 %v1395_v55, %v1394_v56 }
 0x26f   : > { %v1399_v31 = vadd.f32 %v1382_v60, %v1381_v51  ;;  %1397 = vadd.xlane.f32.xlu1 %v1396_v18  ;;  %v2769_v22 = vpop.f32.mrb[8].mxu1 }
 0x270   : > { %v1627_v2 = vpop.f32.mrb[9].mxu1  ;;  %v1633_v3 = vadd.f32 %v2769_v22, %v1540_v25 }
 0x271   : > { %v1401_v4 = vadd.f32 %v1400_v1, %v1399_v31  ;;  %v1628_v42 = vadd.f32 %v1627_v2, %v1535_v54 }
 0x272   : > { %v1647_v9 = vmax.f32 %v1633_v3, 0.0 }
 0x273   : > { %1402 = vadd.xlane.f32.xlu0 %v1401_v4  ;;  %v1646_v62 = vmax.f32 %v1628_v42, 0.0  ;;  %v2772_v63 = vpop.f32.mrb[10].mxu1 }
 0x274   : > { %v1637_v10 = vpop.f32.mrb[11].mxu1  ;;  %v1657_v11 = vmul.f32 %v2593_v5, %v1647_v9  ;;  %v1643_v20 = vadd.f32 %v2772_v63, %v1550_v15 }
 0x275   : > { %v1656_v14 = vmul.f32 %v2593_v5, %v1646_v62  ;;  %v1638_v21 = vadd.f32 %v1637_v10, %v1545_v43 }
 0x276   : > { %v1663_v16 = vsel %vm1473_vm12, %v1657_v11, 0.0  ;;  %v1649_v28 = vmax.f32 %v1643_v20, 0.0 }
 0x277   : > { %v1660_v19 = vsel %vm1473_vm12, %v1656_v14, 0.0  ;;  %1664 = vadd.xlane.f32.xlu0 %v1663_v16  ;;  %v1648_v30 = vmax.f32 %v1638_v21, 0.0  ;;  %v1906_v14 = vld [vmem:[#allocation6 + $0x40] sm:$0xff] }
 0x278   : > { %1661 = vadd.xlane.f32.xlu1 %v1660_v19  ;;  %v1659_v38 = vmul.f32 %v2593_v5, %v1649_v28  ;;  %v2032_v28 = vld [vmem:[%s3859_s5 + $0x70] sm:$0xff] }
 0x279   : > { %v2793_v23 = vpop.f32.mrb[16].mxu0  ;;  %v1658_v39 = vmul.f32 %v2593_v5, %v1648_v30  ;;  %v2152_v30 = vld [vmem:[%s3859_s5 + $0x80] sm:$0xff] }
 0x27a   : > { %v1856_v24 = vadd.f32 %v2793_v23, %v1540_v25  ;;  %v1850_v26 = vpop.f32.mrb[17].mxu0  ;;  %v1669_v7 = vsel %vm1473_vm12, %v1659_v38, 0.0  ;;  %v2030_v23 = vld [vmem:[%s3859_s5 + $0x60] sm:$0xff] }
 0x27b   : > { %v1851_v27 = vadd.f32 %v1850_v26, %v1535_v54  ;;  %v1666_v45 = vsel %vm1473_vm12, %v1658_v39, 0.0  ;;  %2831 = vmatprep.mubr.msk.f32.mxu0 %vm2054_vm15, %v2030_v23  ;;  %v2273_v26 = vld [vmem:[%s3859_s5 + $0xa0] sm:$0xff] }
 0x27c   : > { %v1870_v29 = vmax.f32 %v1856_v24, 0.0  ;;  %v3104_v24 = vmov 32  }
 0x27d   : > { %v1869_v58 = vmax.f32 %v1851_v27, 0.0  ;;  %v2796_v32 = vpop.f32.mrb[18].mxu0  ;;  %v2031_v27 = vld [vmem:[%s3859_s5 + $0x68] sm:$0xff] }
 0x27e   : > { %v1874_v33 = vmul.f32 %v2593_v5, %v1870_v29  ;;  %v1866_v34 = vadd.f32 %v2796_v32, %v1550_v15  ;;  %v1860_v35 = vpop.f32.mrb[19].mxu0  ;;  %v1907_v15 = vld [vmem:[#allocation6 + $0x48] sm:$0xff] }
 0x27f   : > { %v1873_v49 = vmul.f32 %v2593_v5, %v1869_v58  ;;  %v1861_v6 = vadd.f32 %v1860_v35, %v1545_v43  ;;  %v2951_v21 = vpack.c.bf16 %v1907_v15, %v1906_v14  ;;  %v2033_v29 = vld [vmem:[%s3859_s5 + $0x78] sm:$0xff]  ;;  %v3778_v58 = vld [vmem:[%s3859_s5 + $0x88] sm:$0xff]  ;;  %v3802_v35 = vld [vmem:[%s3859_s5 + $0xd0] sm:$0xff] }
 0x280   : > { %v1872_v36 = vmax.f32 %v1866_v34, 0.0  ;;  %v1880_v37 = vsel %vm1473_vm12, %v1874_v33, 0.0  ;;  %v3784_v32 = vld [vmem:[%s3859_s5 + $0x98] sm:$0xff]  ;;  %v3790_v33 = vld [vmem:[%s3859_s5 + $0xb0] sm:$0xff]  ;;  %v3796_v34 = vld [vmem:[%s3859_s5 + $0xc0] sm:$0xff] }
 0x281   : > { %v1871_v40 = vmax.f32 %v1861_v6, 0.0  ;;  %1881 = vadd.xlane.f32.xlu0 %v1880_v37  ;;  %v1877_v61 = vsel %vm1473_vm12, %v1873_v49, 0.0 }
 0x282   : > { %1878 = vadd.xlane.f32.xlu1 %v1877_v61  ;;  %v1876_v41 = vmul.f32 %v2593_v5, %v1872_v36 }
 0x283   : > { %v1875_v44 = vmul.f32 %v2593_v5, %v1871_v40 }
 0x284   : > { %v1886_v46 = vsel %vm1473_vm12, %v1876_v41, 0.0 }
 0x285   : > { %1670 = vadd.xlane.f32.xlu0 %v1669_v7  ;;  %v1883_v12 = vsel %vm1473_vm12, %v1875_v44, 0.0  ;;  %vm892_vm12 = vcmask 7168  }
 0x286   : > { %1667 = vadd.xlane.f32.xlu1 %v1666_v45 }
 0x289   : > { %1887 = vadd.xlane.f32.xlu0 %v1886_v46 }
 0x28a   : > { %1884 = vadd.xlane.f32.xlu1 %v1883_v12 }
 0x29b   : > { %1914 = vperm.xlu1 %3029, %v1908_v0  }
 0x29f   : > { %1919 = vperm.xlu0 %3030, %v3718_v50   ;;  %1924 = vperm.xlu1 %3029, %v3724_v13  }
 0x2a3   : > { %1929 = vperm.xlu1 %3029, %v3730_v8   ;;  %3032 = vset.pattern.permute.xlu0 %v3104_v24 }
 0x2a4   : > { %2168 = vperm.xlu0 %3032, %v2154_v52  }
 0x2a7   : > { %3031 = vset.pattern.permute.xlu1 %v3104_v24 }
 0x2a8   : > { %2036 = vperm.xlu1 %3031, %v2030_v23  }
 0x2ac   : > { %2041 = vperm.xlu1 %3031, %v2031_v27  }
 0x2b0   : > { %2046 = vperm.xlu1 %3031, %v2032_v28  }
 0x2b4   : > { %2051 = vperm.xlu1 %3031, %v2033_v29  }
 0x2b8   : > { %2158 = vperm.xlu1 %3031, %v2152_v30  }
 0x2bc   : > { %2163 = vperm.xlu1 %3031, %v3778_v58  }
 0x2c0   : > { %2173 = vperm.xlu1 %3031, %v3784_v32  }
 0x2c4   : > { %2283 = vperm.xlu1 %3031, %v2273_v26  }
 0x2c8   : > { %2293 = vperm.xlu1 %3031, %v3790_v33  }
 0x2cc   : > { %2303 = vperm.xlu1 %3031, %v3796_v34  }
 0x2d0   : > { %2313 = vperm.xlu1 %3031, %v3802_v35  }
 0x2d5   : > { %v881_v53 = vpop.xlane.xlu1 %880 }
 0x2d6   : > { %v876_v54 = vpop.xlane.xlu0 %875  ;;  %894 = vst.msk [vmem:[#allocation6 + $0x8] sm:$0xff] %vm892_vm12, %v881_v53  ;;  %v2278_v53 = vld [vmem:[%s3859_s5 + $0xc8] sm:$0xff] }
 0x2d7   : > { %893 = vst.msk [vmem:[#allocation6] sm:$0xff] %vm892_vm12, %v876_v54  ;;  %v2280_v54 = vld [vmem:[%s3859_s5 + $0xd8] sm:$0xff] }
 0x2da   : > { %v886_v17 = vpop.xlane.xlu1 %885  ;;  %v891_v55 = vpop.xlane.xlu0 %890 }
 0x2db   : > { %895 = vst.msk [vmem:[#allocation6 + $0x10] sm:$0xff] %vm892_vm12, %v886_v17  ;;  %896 = vst.msk [vmem:[#allocation6 + $0x18] sm:$0xff] %vm892_vm12, %v891_v55 }
 0x2f4   : > { %v1388_v56 = vpop.xlane.xlu0 %1387 }
 0x2f5   : > { %1405 = vst.msk [vmem:[#allocation6] sm:$0xff] %vm1404_vm14, %v1388_v56 }
 0x2f8   : > { %v1393_v57 = vpop.xlane.xlu0 %1392 }
 0x2f9   : > { %1406 = vst.msk [vmem:[#allocation6 + $0x8] sm:$0xff] %vm1404_vm14, %v1393_v57 }
 0x2fc   : > { %v1398_v59 = vpop.xlane.xlu1 %1397  ;;  %v1898_v60 = vld [vmem:[#allocation6] sm:$0xff] }
 0x2fd   : > { %1407 = vst.msk [vmem:[#allocation6 + $0x10] sm:$0xff] %vm1404_vm14, %v1398_v59 }
 0x300   : > { %v1403_v51 = vpop.xlane.xlu0 %1402  ;;  %v1899_v18 = vld [vmem:[#allocation6 + $0x8] sm:$0xff] }
 0x301   : > { %1408 = vst.msk [vmem:[#allocation6 + $0x18] sm:$0xff] %vm1404_vm14, %v1403_v51  ;;  %v2935_v25 = vpack.c.bf16 %v1899_v18, %v1898_v60 }
 0x303   : > { %2936 = vmatprep.subr.bf16.mxu1 %v2935_v25 }
 0x304   : > { %2938 = vmatpush3.bf16.msra.mxu1 %v2935_v25  ;;  %v1665_v31 = vpop.xlane.xlu0 %1664  ;;  %v1900_v22 = vld [vmem:[#allocation6 + $0x10] sm:$0xff] }
 0x305   : > { %v1662_v43 = vpop.xlane.xlu1 %1661  ;;  %1673 = vst.msk [vmem:[#allocation6 + $0x28] sm:$0xff] %vm892_vm12, %v1665_v31 }
 0x306   : > { %1672 = vst.msk [vmem:[#allocation6 + $0x20] sm:$0xff] %vm892_vm12, %v1662_v43 }
 0x308   : > { %v1901_v1 = vld [vmem:[#allocation6 + $0x18] sm:$0xff] }
 0x309   : > { %v2939_v2 = vpack.c.bf16 %v1901_v1, %v1900_v22 }
 0x30b   : > { %2940 = vmatprep.subr.bf16.mxu1 %v2939_v2 }
 0x30c   : > { %2942 = vmatpush3.bf16.msra.mxu1 %v2939_v2 }
 0x30e   : > { %v1882_v3 = vpop.xlane.xlu0 %1881 }
 0x30f   : > { %1890 = vst.msk [vmem:[#allocation6 + $0x28] sm:$0xff] %vm1404_vm14, %v1882_v3  ;;  %v1879_v4 = vpop.xlane.xlu1 %1878 }
 0x310   : > { %1889 = vst.msk [vmem:[#allocation6 + $0x20] sm:$0xff] %vm1404_vm14, %v1879_v4 }
 0x312   : > { %v1671_v5 = vpop.xlane.xlu0 %1670 }
 0x313   : > { %1675 = vst.msk [vmem:[#allocation6 + $0x38] sm:$0xff] %vm892_vm12, %v1671_v5  ;;  %v1668_v42 = vpop.xlane.xlu1 %1667 }
 0x314   : > { %1674 = vst.msk [vmem:[#allocation6 + $0x30] sm:$0xff] %vm892_vm12, %v1668_v42 }
 0x316   : > { %v1888_v9 = vpop.xlane.xlu0 %1887  ;;  %v1903_v62 = vld [vmem:[#allocation6 + $0x28] sm:$0xff] }
 0x317   : > { %1892 = vst.msk [vmem:[#allocation6 + $0x38] sm:$0xff] %vm1404_vm14, %v1888_v9  ;;  %v1885_v63 = vpop.xlane.xlu1 %1884  ;;  %v1902_v10 = vld [vmem:[#allocation6 + $0x20] sm:$0xff] }
 0x318   : > { %1891 = vst.msk [vmem:[#allocation6 + $0x30] sm:$0xff] %vm1404_vm14, %v1885_v63  ;;  %v2943_v11 = vpack.c.bf16 %v1903_v62, %v1902_v10 }
 0x31a   : > { %2944 = vmatprep.subr.bf16.mxu1 %v2943_v11 }
 0x31b   : > { %2946 = vmatpush3.bf16.msra.mxu1 %v2943_v11  ;;  %v1915_v49 = vpop.permute.xlu1 %1914 }
 0x31e   : > { %v1905_v16 = vld [vmem:[#allocation6 + $0x38] sm:$0xff]  ;;  %v1920_v36 = vpop.permute.xlu0 %1919 }
 0x31f   : > { %v1904_v19 = vld [vmem:[#allocation6 + $0x30] sm:$0xff]  ;;  %v1925_v6 = vpop.permute.xlu1 %1924 }
 0x320   : > { %v2947_v20 = vpack.c.bf16 %v1905_v16, %v1904_v19 }
 0x322   : > { %2948 = vmatprep.subr.bf16.mxu1 %v2947_v20 }
 0x323   : > { %2950 = vmatpush3.bf16.msra.mxu1 %v2947_v20  ;;  %v1930_v41 = vpop.permute.xlu1 %1929 }
 0x324   : > { %2952 = vmatprep.subr.bf16.mxu1 %v2951_v21 }
 0x327   : > { %2954 = vmatpush3.bf16.msra.mxu1 %v2951_v21  ;;  %v2037_v17 = vpop.permute.xlu1 %2036  ;;  %v2169_v21 = vpop.permute.xlu0 %2168 }
 0x32a   : > { %2818 = vmatmul.mubr.msk.f32.vlgmr.msra.gmra.mrb[12].mxu1 %vm1932_vm10, %v3718_v50 }
 0x32b   : > { %2820 = vmatprep.mubr.msk.f32.mxu1 %vm1932_vm10, %v3724_v13  ;;  %v2274_v13 = vld [vmem:[%s3859_s5 + $0xa8] sm:$0xff]  ;;  %v2042_v55 = vpop.permute.xlu1 %2041 }
 0x32c   : > { %2288 = vperm.xlu0 %3032, %v2274_v13  }
 0x32e   : > { %2821 = vmatmul.mubr.msk.f32.gmra.mrb[14].mxu1 %vm1932_vm10, %v3730_v8  ;;  %v2276_v8 = vld [vmem:[%s3859_s5 + $0xb8] sm:$0xff] }
 0x32f   : > { %2859 = vmatprep.mubr.msk.f32.mxu1 %vm2054_vm15, %v2273_v26  ;;  %v2047_v56 = vpop.permute.xlu1 %2046 }
 0x330   : > { %2298 = vperm.xlu0 %3032, %v2276_v8  }
 0x333   : > { %v2052_v25 = vpop.permute.xlu1 %2051 }
 0x334   : > { %2308 = vperm.xlu0 %3032, %v2278_v53  }
 0x337   : > { %v2159_v9 = vpop.permute.xlu1 %2158 }
 0x338   : > { %2318 = vperm.xlu0 %3032, %v2280_v54  }
 0x33b   : > { %v2164_v62 = vpop.permute.xlu1 %2163 }
 0x33f   : > { %v2174_v16 = vpop.permute.xlu1 %2173 }
 0x3fd   : > { %v2819_v37 = vpop.f32.mrb[12].mxu1 }
 0x3fe   : > { %v2013_v38 = vadd.f32 %v2819_v37, %v1920_v36  ;;  %v2007_v39 = vpop.f32.mrb[13].mxu1 }
 0x3ff   : > { %v2008_v40 = vadd.f32 %v2007_v39, %v1915_v49 }
 0x400   : > { %v2027_v61 = vmax.f32 %v2013_v38, 0.0 }
 0x401   : > { %v2026_v7 = vmax.f32 %v2008_v40, 0.0  ;;  %v2822_v44 = vpop.f32.mrb[14].mxu1 }
 0x402   : > { %v2023_v45 = vadd.f32 %v2822_v44, %v1930_v41  ;;  %v2017_v46 = vpop.f32.mrb[15].mxu1 }
 0x403   : > { %v2955_v12 = vpack.c.bf16 %v2027_v61, %v2026_v7  ;;  %v2018_v47 = vadd.f32 %v2017_v46, %v1925_v6 }
 0x404   : > { %v2029_v48 = vmax.f32 %v2023_v45, 0.0 }
 0x405   : > { %v2028_v0 = vmax.f32 %v2018_v47, 0.0  ;;  %2956 = vmatprep.subr.bf16.mxu0 %v2955_v12 }
 0x406   : > { %2958 = vmatpush3.bf16.msra.mxu0 %v2955_v12 }
 0x407   : > { %v2959_v50 = vpack.c.bf16 %v2029_v48, %v2028_v0 }
 0x409   : > { %2960 = vmatprep.subr.bf16.mxu0 %v2959_v50 }
 0x40a   : > { %2962 = vmatpush3.bf16.msra.mxu0 %v2959_v50 }
 0x40d   : > { %2832 = vmatmul.mubr.msk.f32.vlgmr.msra.gmra.mrb[20].mxu0 %vm2054_vm15, %v2031_v27 }
 0x40e   : > { %2834 = vmatprep.mubr.msk.f32.mxu0 %vm2054_vm15, %v2032_v28 }
 0x411   : > { %2835 = vmatmul.mubr.msk.f32.gmra.mrb[22].mxu0 %vm2054_vm15, %v2033_v29 }
 0x412   : > { %2845 = vmatprep.mubr.msk.f32.mxu0 %vm2054_vm15, %v2152_v30 }
 0x4e0   : > { %v2833_v57 = vpop.f32.mrb[20].mxu0 }
 0x4e1   : > { %v2135_v59 = vadd.f32 %v2833_v57, %v2042_v55  ;;  %v2129_v51 = vpop.f32.mrb[21].mxu0 }
 0x4e2   : > { %v2130_v60 = vadd.f32 %v2129_v51, %v2037_v17 }
 0x4e3   : > { %v2149_v18 = vmax.f32 %v2135_v59, 0.0 }
 0x4e4   : > { %v2148_v31 = vmax.f32 %v2130_v60, 0.0  ;;  %v2836_v43 = vpop.f32.mrb[22].mxu0 }
 0x4e5   : > { %v2145_v22 = vadd.f32 %v2836_v43, %v2052_v25  ;;  %v2139_v1 = vpop.f32.mrb[23].mxu0 }
 0x4e6   : > { %v2963_v2 = vpack.c.bf16 %v2149_v18, %v2148_v31  ;;  %v2140_v3 = vadd.f32 %v2139_v1, %v2047_v56 }
 0x4e7   : > { %v2151_v4 = vmax.f32 %v2145_v22, 0.0 }
 0x4e8   : > { %v2150_v5 = vmax.f32 %v2140_v3, 0.0  ;;  %2964 = vmatprep.subr.bf16.mxu0 %v2963_v2 }
 0x4e9   : > { %2966 = vmatpush3.bf16.msra.mxu0 %v2963_v2 }
 0x4ea   : > { %v2967_v42 = vpack.c.bf16 %v2151_v4, %v2150_v5 }
 0x4ec   : > { %2968 = vmatprep.subr.bf16.mxu0 %v2967_v42 }
 0x4ed   : > { %2970 = vmatpush3.bf16.msra.mxu0 %v2967_v42 }
 0x4f0   : > { %2846 = vmatmul.mubr.msk.f32.vlgmr.msra.gmra.mrb[24].mxu0 %vm2054_vm15, %v3778_v58  ;;  %v2289_v58 = vpop.permute.xlu0 %2288 }
 0x4f1   : > { %2848 = vmatprep.mubr.msk.f32.mxu0 %vm2054_vm15, %v2154_v52 }
 0x4f4   : > { %2849 = vmatmul.mubr.msk.f32.gmra.mrb[26].mxu0 %vm2054_vm15, %v3784_v32  ;;  %v2284_v32 = vpop.permute.xlu1 %2283  ;;  %v2299_v49 = vpop.permute.xlu0 %2298 }
 0x4f8   : > { %v2294_v36 = vpop.permute.xlu1 %2293  ;;  %v2309_v61 = vpop.permute.xlu0 %2308 }
 0x4fc   : > { %v2304_v7 = vpop.permute.xlu1 %2303  ;;  %v2319_v12 = vpop.permute.xlu0 %2318 }
 0x500   : > { %v2314_v0 = vpop.permute.xlu1 %2313 }
 0x5c3   : > { %v2847_v63 = vpop.f32.mrb[24].mxu0 }
 0x5c4   : > { %v2256_v10 = vadd.f32 %v2847_v63, %v2164_v62  ;;  %v2250_v11 = vpop.f32.mrb[25].mxu0 }
 0x5c5   : > { %v2251_v14 = vadd.f32 %v2250_v11, %v2159_v9 }
 0x5c6   : > { %v2270_v15 = vmax.f32 %v2256_v10, 0.0 }
 0x5c7   : > { %v2269_v19 = vmax.f32 %v2251_v14, 0.0  ;;  %v2850_v20 = vpop.f32.mrb[26].mxu0 }
 0x5c8   : > { %v2266_v23 = vadd.f32 %v2850_v20, %v2174_v16  ;;  %v2260_v24 = vpop.f32.mrb[27].mxu0 }
 0x5c9   : > { %v2971_v26 = vpack.c.bf16 %v2270_v15, %v2269_v19  ;;  %v2261_v27 = vadd.f32 %v2260_v24, %v2169_v21 }
 0x5ca   : > { %v2272_v28 = vmax.f32 %v2266_v23, 0.0 }
 0x5cb   : > { %v2271_v29 = vmax.f32 %v2261_v27, 0.0  ;;  %2972 = vmatprep.subr.bf16.mxu1 %v2971_v26 }
 0x5cc   : > { %2974 = vmatpush3.bf16.msra.mxu1 %v2971_v26 }
 0x5cd   : > { %v2975_v30 = vpack.c.bf16 %v2272_v28, %v2271_v29 }
 0x5cf   : > { %2976 = vmatprep.subr.bf16.mxu1 %v2975_v30 }
 0x5d0   : > { %2978 = vmatpush3.bf16.msra.mxu1 %v2975_v30 }
 0x5d3   : > { %2860 = vmatmul.mubr.msk.f32.vlgmr.msra.gmra.mrb[16].mxu1 %vm2054_vm15, %v2274_v13 }
 0x5d4   : > { %2862 = vmatprep.mubr.msk.f32.mxu1 %vm2054_vm15, %v3790_v33 }
 0x5d7   : > { %2863 = vmatmul.mubr.msk.f32.gmra.mrb[18].mxu1 %vm2054_vm15, %v2276_v8 }
 0x5d8   : > { %2865 = vmatprep.mubr.msk.f32.mxu1 %vm2054_vm15, %v3796_v34 }
 0x5db   : > { %2866 = vmatmul.mubr.msk.f32.gmra.mrb[20].mxu1 %vm2054_vm15, %v2278_v53 }
 0x5dc   : > { %2868 = vmatprep.mubr.msk.f32.mxu1 %vm2054_vm15, %v3802_v35 }
 0x5df   : > { %2869 = vmatmul.mubr.msk.f32.gmra.mrb[22].mxu1 %vm2054_vm15, %v2280_v54 }
 0x6a6   : > { %v2861_v6 = vpop.f32.mrb[16].mxu1 }
 0x6a7   : > { %v2409_v37 = vadd.f32 %v2861_v6, %v2289_v58  ;;  %v2403_v33 = vpop.f32.mrb[17].mxu1 }
 0x6a8   : > { %v2404_v38 = vadd.f32 %v2403_v33, %v2284_v32 }
 0x6a9   : > { %3043 = vtanh.f32 %v2409_v37 }
 0x6aa   : > { %3045 = vtanh.f32 %v2404_v38  ;;  %v2864_v39 = vpop.f32.mrb[18].mxu1 }
 0x6ab   : > { %v2419_v34 = vadd.f32 %v2864_v39, %v2299_v49  ;;  %v2413_v40 = vpop.f32.mrb[19].mxu1 }
 0x6ac   : > { %v2414_v41 = vadd.f32 %v2413_v40, %v2294_v36 }
 0x6ad   : > { %3047 = vtanh.f32 %v2419_v34 }
 0x6ae   : > { %3049 = vtanh.f32 %v2414_v41  ;;  %v2867_v35 = vpop.f32.mrb[20].mxu1 }
 0x6af   : > { %v2429_v44 = vadd.f32 %v2867_v35, %v2309_v61  ;;  %v2423_v45 = vpop.f32.mrb[21].mxu1 }
 0x6b0   : > { %v2424_v46 = vadd.f32 %v2423_v45, %v2304_v7 }
 0x6b1   : > { %3051 = vtanh.f32 %v2429_v44 }
 0x6b2   : > { %3053 = vtanh.f32 %v2424_v46  ;;  %v2870_v47 = vpop.f32.mrb[22].mxu1 }
 0x6b3   : > { %v3044_v48 = vpop.eup %3043  ;;  %v2439_v50 = vadd.f32 %v2870_v47, %v2319_v12  ;;  %v2433_v52 = vpop.f32.mrb[23].mxu1 }
 0x6b4   : > { %v3046_v13 = vpop.eup %3045  ;;  %2451 = vst.msk [vmem:[%s298_s19 + $0x8] sm:$0xff] %vm1895_vm7, %v3044_v48  ;;  %v2434_v8 = vadd.f32 %v2433_v52, %v2314_v0 }
 0x6b5   : > { %2450 = vst.msk [vmem:[%s298_s19] sm:$0xff] %vm1895_vm7, %v3046_v13  ;;  %3055 = vtanh.f32 %v2439_v50 }
 0x6b6   : > { %3057 = vtanh.f32 %v2434_v8 }
 0x6b7   : > { %v3048_v53 = vpop.eup %3047 }
 0x6b8   : > { %v3050_v54 = vpop.eup %3049  ;;  %2453 = vst.msk [vmem:[%s298_s19 + $0x18] sm:$0xff] %vm1895_vm7, %v3048_v53 }
 0x6b9   : > { %2452 = vst.msk [vmem:[%s298_s19 + $0x10] sm:$0xff] %vm1895_vm7, %v3050_v54 }
 0x6bb   : > { %v3052_v17 = vpop.eup %3051 }
 0x6bc   : > { %v3054_v55 = vpop.eup %3053  ;;  %2455 = vst.msk [vmem:[%s298_s19 + $0x28] sm:$0xff] %vm1895_vm7, %v3052_v17 }
 0x6bd   : > { %2454 = vst.msk [vmem:[%s298_s19 + $0x20] sm:$0xff] %vm1895_vm7, %v3054_v55 }
 0x6bf   : > { %v3056_v56 = vpop.eup %3055 }
 0x6c0   : > { %v3058_v57 = vpop.eup %3057  ;;  %2457 = vst.msk [vmem:[%s298_s19 + $0x38] sm:$0xff] %vm1895_vm7, %v3056_v56 }
 0x6c1   : > { %2456 = vst.msk [vmem:[%s298_s19 + $0x30] sm:$0xff] %vm1895_vm7, %v3058_v57 }
 0x6c2 PF: > { %s16_s21 = sadd.s32 1, %s3065_s21  }
 0x6c3   : > { %p13_p5 = scmp.ge.s32.totalorder %s16_s21, 4  }
 0x6c5   :  { %15 = sbr.rel (!%p13_p5) target bundleno = 1 (0x1), region = 82 }

</bundles_post_ra>
